<compile_context>
chip_gen: v7x
topology: tpu7x:2x2x1
jax: 0.10.0
libtpu: 0.0.40
codegen_flags: <defaults>
</compile_context>

<pallas_src>
import jax
import jax.numpy as jnp
from jax.experimental import pallas as pl
from jax.experimental.pallas import tpu as pltpu


# ----------------------------- Pallas kernels ------------------------------

def _conv_relu_pool_kernel(p0_ref, p1_ref, p2_ref, p3_ref, w_ref, b_ref, o_ref):
    """out = max_t relu(P_t @ W + b)  == 2x2-maxpool(relu(conv)).  P_t are the
    im2col patch matrices of the four 2x2-pool taps."""
    w = w_ref[...]
    b = b_ref[...]

    def tap(p_ref):
        y = jnp.dot(p_ref[...], w, preferred_element_type=jnp.float32) + b
        return jnp.maximum(y, 0.0)

    r = jnp.maximum(jnp.maximum(tap(p0_ref), tap(p1_ref)),
                    jnp.maximum(tap(p2_ref), tap(p3_ref)))
    o_ref[...] = r.astype(o_ref.dtype)


def _fc_tail_kernel(x_ref, w1_ref, b1_ref, w2_ref, b2_ref, w3_ref, b3_ref, o_ref):
    """softmax(relu(relu(x@w1+b1)@w2+b2)@w3+b3), all resident in VMEM."""
    h = jnp.dot(x_ref[...], w1_ref[...], preferred_element_type=jnp.float32)
    h = jnp.maximum(h + b1_ref[...], 0.0).astype(jnp.bfloat16)
    h = jnp.dot(h, w2_ref[...], preferred_element_type=jnp.float32)
    h = jnp.maximum(h + b2_ref[...], 0.0).astype(jnp.bfloat16)
    y = jnp.dot(h, w3_ref[...], preferred_element_type=jnp.float32) + b3_ref[...]

    m = jnp.max(y, axis=-1, keepdims=True)
    e = jnp.exp(y - m)
    s = jnp.sum(e, axis=-1, keepdims=True)
    o_ref[...] = e * pl.reciprocal(s, approx=True)


# ------------------------------ Pallas wrappers -----------------------------

def _pick_tile(m):
    """Largest M-tile that fits comfortably and divides M (whole M if small)."""
    if m <= 1024:
        return m
    for t in (1024, 512, 256, 128, 64, 32, 16, 8):
        if m % t == 0:
            return t
    return m


def conv_relu_pool(taps, w, b):
    """taps: 4 patch matrices (M, K) bf16; w: (K, Cout) bf16; b: (1, Cout) f32.
    Returns (M, Cout) bf16 = pooled-relu-conv activations."""
    M, K = taps[0].shape
    cout = w.shape[1]
    tm = _pick_tile(M)
    patch_spec = pl.BlockSpec((tm, K), lambda i: (i, 0))
    return pl.pallas_call(
        _conv_relu_pool_kernel,
        out_shape=jax.ShapeDtypeStruct((M, cout), jnp.bfloat16),
        grid=(M // tm,),
        in_specs=[patch_spec, patch_spec, patch_spec, patch_spec,
                  pl.BlockSpec((K, cout), lambda i: (0, 0)),   # weight resident
                  pl.BlockSpec((1, cout), lambda i: (0, 0))],  # bias resident
        out_specs=pl.BlockSpec((tm, cout), lambda i: (i, 0)),
        compiler_params=pltpu.CompilerParams(
            dimension_semantics=("parallel",)),
    )(*taps, w, b)


def fc_tail(x, w1, b1, w2, b2, w3, b3):
    """Fused fc1+relu -> fc2+relu -> fc3 -> softmax."""
    B = x.shape[0]
    N = w3.shape[1]

    def full(shape):
        return pl.BlockSpec(shape, lambda i: (0,) * len(shape))

    return pl.pallas_call(
        _fc_tail_kernel,
        out_shape=jax.ShapeDtypeStruct((B, N), jnp.float32),
        grid=(1,),
        in_specs=[full(x.shape), full(w1.shape), full(b1.shape),
                  full(w2.shape), full(b2.shape), full(w3.shape), full(b3.shape)],
        out_specs=full((B, N)),
        compiler_params=pltpu.CompilerParams(
            dimension_semantics=("arbitrary",)),
    )(x, w1, b1, w2, b2, w3, b3)


# ------------------------------- Model glue ---------------------------------

def pool_tap_patches(x_nhwc, kh, kw):
    """Return 4 im2col patch matrices (one per 2x2-pool tap), each of shape
    (B*POH*POW, kh*kw*C), column order (i, j, c) matching the conv weight
    re-layout.  max over the 4 taps of relu(P_t @ W + b) == pool(relu(conv))."""
    B, H, W, C = x_nhwc.shape
    OH, OW = H - kh + 1, W - kw + 1
    POH, POW = OH // 2, OW // 2
    taps = []
    for di in range(2):
        for dj in range(2):
            cols = []
            for i in range(kh):
                for j in range(kw):
                    sl = x_nhwc[:, di + i: di + i + 2 * POH: 2,
                                   dj + j: dj + j + 2 * POW: 2, :]  # (B,POH,POW,C)
                    cols.append(sl)
            p = jnp.stack(cols, axis=3)                  # (B,POH,POW,kh*kw,C)
            taps.append(p.reshape(B * POH * POW, kh * kw * C))
    return taps, (POH, POW)


def init_params(key):
    """Synthetic parameters with PyTorch conventions:
    conv W = (Cout, Cin, kh, kw), linear W = (out, in)."""
    ks = jax.random.split(key, 10)

    def u(k, shape, fan_in):
        bound = 1.0 / jnp.sqrt(fan_in)
        return jax.random.uniform(k, shape, jnp.float32, -bound, bound)

    return {
        "conv1_w": u(ks[0], (6, 3, 5, 5), 3 * 5 * 5),
        "conv1_b": u(ks[1], (6,), 3 * 5 * 5),
        "conv2_w": u(ks[2], (16, 6, 5, 5), 6 * 5 * 5),
        "conv2_b": u(ks[3], (16,), 6 * 5 * 5),
        "fc1_w": u(ks[4], (120, 400), 400),
        "fc1_b": u(ks[5], (120,), 400),
        "fc2_w": u(ks[6], (84, 120), 120),
        "fc2_b": u(ks[7], (84,), 120),
        "fc3_w": u(ks[8], (4, 84), 84),
        "fc3_b": u(ks[9], (4,), 84),
    }


def prepare_params(params):
    """One-time weight re-layout / cast (no per-forward transposes):
      * conv W -> (kh*kw*Cin, Cout) bf16
      * fc1 input columns permuted from NCHW-flatten order to our NHWC-flatten
        order, then transposed -> (400, 120) bf16
      * fc2/fc3 transposed -> bf16; all biases -> (1, N) f32."""
    def conv_w(w):
        co, ci, kh, kw = w.shape
        return (jnp.transpose(w, (2, 3, 1, 0))
                .reshape(kh * kw * ci, co).astype(jnp.bfloat16))

    fc1 = params["fc1_w"].reshape(120, 16, 5, 5)          # (out, c, h, w)
    fc1 = jnp.transpose(fc1, (0, 2, 3, 1)).reshape(120, 400)  # cols -> (h, w, c)

    return {
        "w1": conv_w(params["conv1_w"]),
        "b1": params["conv1_b"].reshape(1, -1).astype(jnp.float32),
        "w2": conv_w(params["conv2_w"]),
        "b2": params["conv2_b"].reshape(1, -1).astype(jnp.float32),
        "fc1_w": fc1.T.astype(jnp.bfloat16),
        "fc1_b": params["fc1_b"].reshape(1, -1).astype(jnp.float32),
        "fc2_w": params["fc2_w"].T.astype(jnp.bfloat16),
        "fc2_b": params["fc2_b"].reshape(1, -1).astype(jnp.float32),
        "fc3_w": params["fc3_w"].T.astype(jnp.bfloat16),
        "fc3_b": params["fc3_b"].reshape(1, -1).astype(jnp.float32),
    }


def forward(prep, x_nchw):
    """Forward pass of AD_V2_NeSy_0_net_c.  x_nchw: (B, 3, 32, 32) f32."""
    B = x_nchw.shape[0]
    x = jnp.transpose(x_nchw, (0, 2, 3, 1)).astype(jnp.bfloat16)   # NHWC bf16

    # conv1 (3->6, 5x5) + ReLU + 2x2 max-pool, fused in one kernel
    taps, (ph, pw) = pool_tap_patches(x, 5, 5)        # 4 x (B*196, 75)
    y = conv_relu_pool(taps, prep["w1"], prep["b1"])  # (B*196, 6) bf16
    y = y.reshape(B, ph, pw, 6)                       # (B, 14, 14, 6)

    # conv2 (6->16, 5x5) + ReLU + 2x2 max-pool, fused in one kernel
    taps, (ph, pw) = pool_tap_patches(y, 5, 5)        # 4 x (B*25, 150)
    y = conv_relu_pool(taps, prep["w2"], prep["b2"])  # (B*25, 16) bf16

    # flatten in (h, w, c) order; fc1_w columns were permuted to match
    flat = y.reshape(B, ph * pw * 16)                 # (B, 400)

    # fc1+relu -> fc2+relu -> fc3 -> softmax, fused in one kernel
    return fc_tail(flat, prep["fc1_w"], prep["fc1_b"],
                   prep["fc2_w"], prep["fc2_b"],
                   prep["fc3_w"], prep["fc3_b"])      # (B, 4) f32


def reference_forward(params, x_nchw):
    """Pure-JAX f32 reference matching the PyTorch module."""
    x = jnp.transpose(x_nchw, (0, 2, 3, 1))

    def conv(x, w, b):
        wt = jnp.transpose(w, (2, 3, 1, 0))           # HWIO
        y = jax.lax.conv_general_dilated(
            x, wt, (1, 1), "VALID",
            dimension_numbers=("NHWC", "HWIO", "NHWC"))
        return jax.nn.relu(y + b)

    def pool(x):
        return jax.lax.reduce_window(x, -jnp.inf, jax.lax.max,
                                     (1, 2, 2, 1), (1, 2, 2, 1), "VALID")

    y = pool(conv(x, params["conv1_w"], params["conv1_b"]))
    y = pool(conv(y, params["conv2_w"], params["conv2_b"]))
    flat = jnp.transpose(y, (0, 3, 1, 2)).reshape(x.shape[0], -1)  # NCHW flatten
    h = jax.nn.relu(flat @ params["fc1_w"].T + params["fc1_b"])
    h = jax.nn.relu(h @ params["fc2_w"].T + params["fc2_b"])
    return jax.nn.softmax(h @ params["fc3_w"].T + params["fc3_b"], axis=-1)


if __name__ == "__main__":
    key = jax.random.PRNGKey(0)
    pkey, xkey = jax.random.split(key)
    params = init_params(pkey)
    prep = prepare_params(params)

    # Module requires 32x32 spatial input (16*5*5 flatten); small batch = 2.
    x = jax.random.normal(xkey, (2, 3, 32, 32), dtype=jnp.float32)

    out = jax.jit(forward)(prep, x)
    out = jax.block_until_ready(out)

    assert out.shape == (2, 4), out.shape
    row_sums = jnp.sum(out, axis=-1)
    assert bool(jnp.all(jnp.abs(row_sums - 1.0) < 5e-3)), row_sums

    ref = reference_forward(params, x)
    assert bool(jnp.all(jnp.abs(out - ref) < 5e-2)), jnp.max(jnp.abs(out - ref))

    print("KERNEL_OK")
</pallas_src>

<mosaic_0001>
module attributes {stable_mosaic.version = 11 : i64} {
  func.func @_conv_relu_pool_kernel(%arg0: i32, %arg1: memref<392x75xbf16, #tpu.memory_space<vmem>>, %arg2: memref<392x75xbf16, #tpu.memory_space<vmem>>, %arg3: memref<392x75xbf16, #tpu.memory_space<vmem>>, %arg4: memref<392x75xbf16, #tpu.memory_space<vmem>>, %arg5: memref<75x6xbf16, #tpu.memory_space<vmem>>, %arg6: memref<1x6xf32, #tpu.memory_space<vmem>>, %arg7: memref<392x6xbf16, #tpu.memory_space<vmem>>) attributes {dimension_semantics = [#tpu.dimension_semantics<parallel>], iteration_bounds = array<i64: 1>, scalar_prefetch = 0 : i64, scratch_operands = 0 : i64, tpu.core_type = #tpu.core_type<tc>, window_params = [{transform_indices = @transform_0, window_bounds = array<i64: 392, 75>}, {transform_indices = @transform_1, window_bounds = array<i64: 392, 75>}, {transform_indices = @transform_2, window_bounds = array<i64: 392, 75>}, {transform_indices = @transform_3, window_bounds = array<i64: 392, 75>}, {pipeline_mode = #tpu.pipeline_mode<synchronous>, transform_indices = @transform_4, window_bounds = array<i64: 75, 6>}, {pipeline_mode = #tpu.pipeline_mode<synchronous>, transform_indices = @transform_5, window_bounds = array<i64: 1, 6>}, {transform_indices = @transform_6, window_bounds = array<i64: 392, 6>}]} {
    %c0 = arith.constant 0 : index
    %c0_0 = arith.constant 0 : index
    %0 = vector.load %arg5[%c0, %c0_0] : memref<75x6xbf16, #tpu.memory_space<vmem>>, vector<75x6xbf16>
    %c0_1 = arith.constant 0 : index
    %c0_2 = arith.constant 0 : index
    %1 = vector.load %arg6[%c0_1, %c0_2] : memref<1x6xf32, #tpu.memory_space<vmem>>, vector<1x6xf32>
    %c0_3 = arith.constant 0 : index
    %c0_4 = arith.constant 0 : index
    %2 = vector.load %arg1[%c0_3, %c0_4] : memref<392x75xbf16, #tpu.memory_space<vmem>>, vector<392x75xbf16>
    %cst = arith.constant dense<0.000000e+00> : vector<392x6xf32>
    %3 = tpu.matmul %2, %0, %cst {dimension_numbers = #tpu.dot_dimension_numbers<[1], [0], [0], [1], [0, 0, 1, 1], [], []>} : vector<392x75xbf16>, vector<75x6xbf16>, vector<392x6xf32> -> vector<392x6xf32>
    %4 = vector.broadcast %1 : vector<1x6xf32> to vector<392x6xf32>
    %5 = arith.addf %3, %4 : vector<392x6xf32>
    %cst_5 = arith.constant 0.000000e+00 : f32
    %6 = vector.broadcast %cst_5 : f32 to vector<392x6xf32>
    %7 = arith.maximumf %5, %6 : vector<392x6xf32>
    %c0_6 = arith.constant 0 : index
    %c0_7 = arith.constant 0 : index
    %8 = vector.load %arg2[%c0_6, %c0_7] : memref<392x75xbf16, #tpu.memory_space<vmem>>, vector<392x75xbf16>
    %cst_8 = arith.constant dense<0.000000e+00> : vector<392x6xf32>
    %9 = tpu.matmul %8, %0, %cst_8 {dimension_numbers = #tpu.dot_dimension_numbers<[1], [0], [0], [1], [0, 0, 1, 1], [], []>} : vector<392x75xbf16>, vector<75x6xbf16>, vector<392x6xf32> -> vector<392x6xf32>
    %10 = vector.broadcast %1 : vector<1x6xf32> to vector<392x6xf32>
    %11 = arith.addf %9, %10 : vector<392x6xf32>
    %cst_9 = arith.constant 0.000000e+00 : f32
    %12 = vector.broadcast %cst_9 : f32 to vector<392x6xf32>
    %13 = arith.maximumf %11, %12 : vector<392x6xf32>
    %14 = arith.maximumf %7, %13 : vector<392x6xf32>
    %c0_10 = arith.constant 0 : index
    %c0_11 = arith.constant 0 : index
    %15 = vector.load %arg3[%c0_10, %c0_11] : memref<392x75xbf16, #tpu.memory_space<vmem>>, vector<392x75xbf16>
    %cst_12 = arith.constant dense<0.000000e+00> : vector<392x6xf32>
    %16 = tpu.matmul %15, %0, %cst_12 {dimension_numbers = #tpu.dot_dimension_numbers<[1], [0], [0], [1], [0, 0, 1, 1], [], []>} : vector<392x75xbf16>, vector<75x6xbf16>, vector<392x6xf32> -> vector<392x6xf32>
    %17 = vector.broadcast %1 : vector<1x6xf32> to vector<392x6xf32>
    %18 = arith.addf %16, %17 : vector<392x6xf32>
    %cst_13 = arith.constant 0.000000e+00 : f32
    %19 = vector.broadcast %cst_13 : f32 to vector<392x6xf32>
    %20 = arith.maximumf %18, %19 : vector<392x6xf32>
    %c0_14 = arith.constant 0 : index
    %c0_15 = arith.constant 0 : index
    %21 = vector.load %arg4[%c0_14, %c0_15] : memref<392x75xbf16, #tpu.memory_space<vmem>>, vector<392x75xbf16>
    %cst_16 = arith.constant dense<0.000000e+00> : vector<392x6xf32>
    %22 = tpu.matmul %21, %0, %cst_16 {dimension_numbers = #tpu.dot_dimension_numbers<[1], [0], [0], [1], [0, 0, 1, 1], [], []>} : vector<392x75xbf16>, vector<75x6xbf16>, vector<392x6xf32> -> vector<392x6xf32>
    %23 = vector.broadcast %1 : vector<1x6xf32> to vector<392x6xf32>
    %24 = arith.addf %22, %23 : vector<392x6xf32>
    %cst_17 = arith.constant 0.000000e+00 : f32
    %25 = vector.broadcast %cst_17 : f32 to vector<392x6xf32>
    %26 = arith.maximumf %24, %25 : vector<392x6xf32>
    %27 = arith.maximumf %20, %26 : vector<392x6xf32>
    %28 = arith.maximumf %14, %27 : vector<392x6xf32>
    %29 = arith.truncf %28 : vector<392x6xf32> to vector<392x6xbf16>
    %c0_18 = arith.constant 0 : index
    %c0_19 = arith.constant 0 : index
    %30 = vector.load %arg7[%c0_18, %c0_19] : memref<392x6xbf16, #tpu.memory_space<vmem>>, vector<392x6xbf16>
    tpu.vector_store %arg7[%c0_18, %c0_19], %29 {strides = array<i32>} : memref<392x6xbf16, #tpu.memory_space<vmem>>, vector<392x6xbf16>,
    return
  }
  func.func @transform_0(%arg0: i32) -> (i32, i32) {
    %c0_i32 = arith.constant 0 : i32
    %c0_i32_0 = arith.constant 0 : i32
    return %arg0, %c0_i32 : i32, i32
  }
  func.func @transform_1(%arg0: i32) -> (i32, i32) {
    %c0_i32 = arith.constant 0 : i32
    %c0_i32_0 = arith.constant 0 : i32
    return %arg0, %c0_i32 : i32, i32
  }
  func.func @transform_2(%arg0: i32) -> (i32, i32) {
    %c0_i32 = arith.constant 0 : i32
    %c0_i32_0 = arith.constant 0 : i32
    return %arg0, %c0_i32 : i32, i32
  }
  func.func @transform_3(%arg0: i32) -> (i32, i32) {
    %c0_i32 = arith.constant 0 : i32
    %c0_i32_0 = arith.constant 0 : i32
    return %arg0, %c0_i32 : i32, i32
  }
  func.func @transform_4(%arg0: i32) -> (i32, i32) {
    %c0_i32 = arith.constant 0 : i32
    %c0_i32_0 = arith.constant 0 : i32
    %c0_i32_1 = arith.constant 0 : i32
    return %c0_i32, %c0_i32_0 : i32, i32
  }
  func.func @transform_5(%arg0: i32) -> (i32, i32) {
    %c0_i32 = arith.constant 0 : i32
    %c0_i32_0 = arith.constant 0 : i32
    %c0_i32_1 = arith.constant 0 : i32
    return %c0_i32, %c0_i32_0 : i32, i32
  }
  func.func @transform_6(%arg0: i32) -> (i32, i32) {
    %c0_i32 = arith.constant 0 : i32
    %c0_i32_0 = arith.constant 0 : i32
    return %arg0, %c0_i32 : i32, i32
  }
}

module attributes {stable_mosaic.version = 11 : i64} {
  func.func @_conv_relu_pool_kernel(%arg0: i32, %arg1: memref<50x150xbf16, #tpu.memory_space<vmem>>, %arg2: memref<50x150xbf16, #tpu.memory_space<vmem>>, %arg3: memref<50x150xbf16, #tpu.memory_space<vmem>>, %arg4: memref<50x150xbf16, #tpu.memory_space<vmem>>, %arg5: memref<150x16xbf16, #tpu.memory_space<vmem>>, %arg6: memref<1x16xf32, #tpu.memory_space<vmem>>, %arg7: memref<50x16xbf16, #tpu.memory_space<vmem>>) attributes {dimension_semantics = [#tpu.dimension_semantics<parallel>], iteration_bounds = array<i64: 1>, scalar_prefetch = 0 : i64, scratch_operands = 0 : i64, tpu.core_type = #tpu.core_type<tc>, window_params = [{transform_indices = @transform_0, window_bounds = array<i64: 50, 150>}, {transform_indices = @transform_1, window_bounds = array<i64: 50, 150>}, {transform_indices = @transform_2, window_bounds = array<i64: 50, 150>}, {transform_indices = @transform_3, window_bounds = array<i64: 50, 150>}, {pipeline_mode = #tpu.pipeline_mode<synchronous>, transform_indices = @transform_4, window_bounds = array<i64: 150, 16>}, {pipeline_mode = #tpu.pipeline_mode<synchronous>, transform_indices = @transform_5, window_bounds = array<i64: 1, 16>}, {transform_indices = @transform_6, window_bounds = array<i64: 50, 16>}]} {
    %c0 = arith.constant 0 : index
    %c0_0 = arith.constant 0 : index
    %0 = vector.load %arg5[%c0, %c0_0] : memref<150x16xbf16, #tpu.memory_space<vmem>>, vector<150x16xbf16>
    %c0_1 = arith.constant 0 : index
    %c0_2 = arith.constant 0 : index
    %1 = vector.load %arg6[%c0_1, %c0_2] : memref<1x16xf32, #tpu.memory_space<vmem>>, vector<1x16xf32>
    %c0_3 = arith.constant 0 : index
    %c0_4 = arith.constant 0 : index
    %2 = vector.load %arg1[%c0_3, %c0_4] : memref<50x150xbf16, #tpu.memory_space<vmem>>, vector<50x150xbf16>
    %cst = arith.constant dense<0.000000e+00> : vector<50x16xf32>
    %3 = tpu.matmul %2, %0, %cst {dimension_numbers = #tpu.dot_dimension_numbers<[1], [0], [0], [1], [0, 0, 1, 1], [], []>} : vector<50x150xbf16>, vector<150x16xbf16>, vector<50x16xf32> -> vector<50x16xf32>
    %4 = vector.broadcast %1 : vector<1x16xf32> to vector<50x16xf32>
    %5 = arith.addf %3, %4 : vector<50x16xf32>
    %cst_5 = arith.constant 0.000000e+00 : f32
    %6 = vector.broadcast %cst_5 : f32 to vector<50x16xf32>
    %7 = arith.maximumf %5, %6 : vector<50x16xf32>
    %c0_6 = arith.constant 0 : index
    %c0_7 = arith.constant 0 : index
    %8 = vector.load %arg2[%c0_6, %c0_7] : memref<50x150xbf16, #tpu.memory_space<vmem>>, vector<50x150xbf16>
    %cst_8 = arith.constant dense<0.000000e+00> : vector<50x16xf32>
    %9 = tpu.matmul %8, %0, %cst_8 {dimension_numbers = #tpu.dot_dimension_numbers<[1], [0], [0], [1], [0, 0, 1, 1], [], []>} : vector<50x150xbf16>, vector<150x16xbf16>, vector<50x16xf32> -> vector<50x16xf32>
    %10 = vector.broadcast %1 : vector<1x16xf32> to vector<50x16xf32>
    %11 = arith.addf %9, %10 : vector<50x16xf32>
    %cst_9 = arith.constant 0.000000e+00 : f32
    %12 = vector.broadcast %cst_9 : f32 to vector<50x16xf32>
    %13 = arith.maximumf %11, %12 : vector<50x16xf32>
    %14 = arith.maximumf %7, %13 : vector<50x16xf32>
    %c0_10 = arith.constant 0 : index
    %c0_11 = arith.constant 0 : index
    %15 = vector.load %arg3[%c0_10, %c0_11] : memref<50x150xbf16, #tpu.memory_space<vmem>>, vector<50x150xbf16>
    %cst_12 = arith.constant dense<0.000000e+00> : vector<50x16xf32>
    %16 = tpu.matmul %15, %0, %cst_12 {dimension_numbers = #tpu.dot_dimension_numbers<[1], [0], [0], [1], [0, 0, 1, 1], [], []>} : vector<50x150xbf16>, vector<150x16xbf16>, vector<50x16xf32> -> vector<50x16xf32>
    %17 = vector.broadcast %1 : vector<1x16xf32> to vector<50x16xf32>
    %18 = arith.addf %16, %17 : vector<50x16xf32>
    %cst_13 = arith.constant 0.000000e+00 : f32
    %19 = vector.broadcast %cst_13 : f32 to vector<50x16xf32>
    %20 = arith.maximumf %18, %19 : vector<50x16xf32>
    %c0_14 = arith.constant 0 : index
    %c0_15 = arith.constant 0 : index
    %21 = vector.load %arg4[%c0_14, %c0_15] : memref<50x150xbf16, #tpu.memory_space<vmem>>, vector<50x150xbf16>
    %cst_16 = arith.constant dense<0.000000e+00> : vector<50x16xf32>
    %22 = tpu.matmul %21, %0, %cst_16 {dimension_numbers = #tpu.dot_dimension_numbers<[1], [0], [0], [1], [0, 0, 1, 1], [], []>} : vector<50x150xbf16>, vector<150x16xbf16>, vector<50x16xf32> -> vector<50x16xf32>
    %23 = vector.broadcast %1 : vector<1x16xf32> to vector<50x16xf32>
    %24 = arith.addf %22, %23 : vector<50x16xf32>
    %cst_17 = arith.constant 0.000000e+00 : f32
    %25 = vector.broadcast %cst_17 : f32 to vector<50x16xf32>
    %26 = arith.maximumf %24, %25 : vector<50x16xf32>
    %27 = arith.maximumf %20, %26 : vector<50x16xf32>
    %28 = arith.maximumf %14, %27 : vector<50x16xf32>
    %29 = arith.truncf %28 : vector<50x16xf32> to vector<50x16xbf16>
    %c0_18 = arith.constant 0 : index
    %c0_19 = arith.constant 0 : index
    %30 = vector.load %arg7[%c0_18, %c0_19] : memref<50x16xbf16, #tpu.memory_space<vmem>>, vector<50x16xbf16>
    tpu.vector_store %arg7[%c0_18, %c0_19], %29 {strides = array<i32>} : memref<50x16xbf16, #tpu.memory_space<vmem>>, vector<50x16xbf16>,
    return
  }
  func.func @transform_0(%arg0: i32) -> (i32, i32) {
    %c0_i32 = arith.constant 0 : i32
    %c0_i32_0 = arith.constant 0 : i32
    return %arg0, %c0_i32 : i32, i32
  }
  func.func @transform_1(%arg0: i32) -> (i32, i32) {
    %c0_i32 = arith.constant 0 : i32
    %c0_i32_0 = arith.constant 0 : i32
    return %arg0, %c0_i32 : i32, i32
  }
  func.func @transform_2(%arg0: i32) -> (i32, i32) {
    %c0_i32 = arith.constant 0 : i32
    %c0_i32_0 = arith.constant 0 : i32
    return %arg0, %c0_i32 : i32, i32
  }
  func.func @transform_3(%arg0: i32) -> (i32, i32) {
    %c0_i32 = arith.constant 0 : i32
    %c0_i32_0 = arith.constant 0 : i32
    return %arg0, %c0_i32 : i32, i32
  }
  func.func @transform_4(%arg0: i32) -> (i32, i32) {
    %c0_i32 = arith.constant 0 : i32
    %c0_i32_0 = arith.constant 0 : i32
    %c0_i32_1 = arith.constant 0 : i32
    return %c0_i32, %c0_i32_0 : i32, i32
  }
  func.func @transform_5(%arg0: i32) -> (i32, i32) {
    %c0_i32 = arith.constant 0 : i32
    %c0_i32_0 = arith.constant 0 : i32
    %c0_i32_1 = arith.constant 0 : i32
    return %c0_i32, %c0_i32_0 : i32, i32
  }
  func.func @transform_6(%arg0: i32) -> (i32, i32) {
    %c0_i32 = arith.constant 0 : i32
    %c0_i32_0 = arith.constant 0 : i32
    return %arg0, %c0_i32 : i32, i32
  }
}

module attributes {stable_mosaic.version = 11 : i64} {
  func.func @_fc_tail_kernel(%arg0: i32, %arg1: memref<2x400xbf16, #tpu.memory_space<vmem>>, %arg2: memref<400x120xbf16, #tpu.memory_space<vmem>>, %arg3: memref<1x120xf32, #tpu.memory_space<vmem>>, %arg4: memref<120x84xbf16, #tpu.memory_space<vmem>>, %arg5: memref<1x84xf32, #tpu.memory_space<vmem>>, %arg6: memref<84x4xbf16, #tpu.memory_space<vmem>>, %arg7: memref<1x4xf32, #tpu.memory_space<vmem>>, %arg8: memref<2x4xf32, #tpu.memory_space<vmem>>) attributes {dimension_semantics = [#tpu.dimension_semantics<arbitrary>], iteration_bounds = array<i64: 1>, scalar_prefetch = 0 : i64, scratch_operands = 0 : i64, tpu.core_type = #tpu.core_type<tc>, window_params = [{pipeline_mode = #tpu.pipeline_mode<synchronous>, transform_indices = @transform_0, window_bounds = array<i64: 2, 400>}, {pipeline_mode = #tpu.pipeline_mode<synchronous>, transform_indices = @transform_1, window_bounds = array<i64: 400, 120>}, {pipeline_mode = #tpu.pipeline_mode<synchronous>, transform_indices = @transform_2, window_bounds = array<i64: 1, 120>}, {pipeline_mode = #tpu.pipeline_mode<synchronous>, transform_indices = @transform_3, window_bounds = array<i64: 120, 84>}, {pipeline_mode = #tpu.pipeline_mode<synchronous>, transform_indices = @transform_4, window_bounds = array<i64: 1, 84>}, {pipeline_mode = #tpu.pipeline_mode<synchronous>, transform_indices = @transform_5, window_bounds = array<i64: 84, 4>}, {pipeline_mode = #tpu.pipeline_mode<synchronous>, transform_indices = @transform_6, window_bounds = array<i64: 1, 4>}, {pipeline_mode = #tpu.pipeline_mode<synchronous>, transform_indices = @transform_7, window_bounds = array<i64: 2, 4>}]} {
    %c0 = arith.constant 0 : index
    %c0_0 = arith.constant 0 : index
    %0 = vector.load %arg1[%c0, %c0_0] : memref<2x400xbf16, #tpu.memory_space<vmem>>, vector<2x400xbf16>
    %c0_1 = arith.constant 0 : index
    %c0_2 = arith.constant 0 : index
    %1 = vector.load %arg2[%c0_1, %c0_2] : memref<400x120xbf16, #tpu.memory_space<vmem>>, vector<400x120xbf16>
    %cst = arith.constant dense<0.000000e+00> : vector<2x120xf32>
    %2 = tpu.matmul %0, %1, %cst {dimension_numbers = #tpu.dot_dimension_numbers<[1], [0], [0], [1], [0, 0, 1, 1], [], []>} : vector<2x400xbf16>, vector<400x120xbf16>, vector<2x120xf32> -> vector<2x120xf32>
    %c0_3 = arith.constant 0 : index
    %c0_4 = arith.constant 0 : index
    %3 = vector.load %arg3[%c0_3, %c0_4] : memref<1x120xf32, #tpu.memory_space<vmem>>, vector<1x120xf32>
    %4 = vector.broadcast %3 : vector<1x120xf32> to vector<2x120xf32>
    %5 = arith.addf %2, %4 : vector<2x120xf32>
    %cst_5 = arith.constant 0.000000e+00 : f32
    %6 = vector.broadcast %cst_5 : f32 to vector<2x120xf32>
    %7 = arith.maximumf %5, %6 : vector<2x120xf32>
    %8 = arith.truncf %7 : vector<2x120xf32> to vector<2x120xbf16>
    %c0_6 = arith.constant 0 : index
    %c0_7 = arith.constant 0 : index
    %9 = vector.load %arg4[%c0_6, %c0_7] : memref<120x84xbf16, #tpu.memory_space<vmem>>, vector<120x84xbf16>
    %cst_8 = arith.constant dense<0.000000e+00> : vector<2x84xf32>
    %10 = tpu.matmul %8, %9, %cst_8 {dimension_numbers = #tpu.dot_dimension_numbers<[1], [0], [0], [1], [0, 0, 1, 1], [], []>} : vector<2x120xbf16>, vector<120x84xbf16>, vector<2x84xf32> -> vector<2x84xf32>
    %c0_9 = arith.constant 0 : index
    %c0_10 = arith.constant 0 : index
    %11 = vector.load %arg5[%c0_9, %c0_10] : memref<1x84xf32, #tpu.memory_space<vmem>>, vector<1x84xf32>
    %12 = vector.broadcast %11 : vector<1x84xf32> to vector<2x84xf32>
    %13 = arith.addf %10, %12 : vector<2x84xf32>
    %cst_11 = arith.constant 0.000000e+00 : f32
    %14 = vector.broadcast %cst_11 : f32 to vector<2x84xf32>
    %15 = arith.maximumf %13, %14 : vector<2x84xf32>
    %16 = arith.truncf %15 : vector<2x84xf32> to vector<2x84xbf16>
    %c0_12 = arith.constant 0 : index
    %c0_13 = arith.constant 0 : index
    %17 = vector.load %arg6[%c0_12, %c0_13] : memref<84x4xbf16, #tpu.memory_space<vmem>>, vector<84x4xbf16>
    %cst_14 = arith.constant dense<0.000000e+00> : vector<2x4xf32>
    %18 = tpu.matmul %16, %17, %cst_14 {dimension_numbers = #tpu.dot_dimension_numbers<[1], [0], [0], [1], [0, 0, 1, 1], [], []>} : vector<2x84xbf16>, vector<84x4xbf16>, vector<2x4xf32> -> vector<2x4xf32>
    %c0_15 = arith.constant 0 : index
    %c0_16 = arith.constant 0 : index
    %19 = vector.load %arg7[%c0_15, %c0_16] : memref<1x4xf32, #tpu.memory_space<vmem>>, vector<1x4xf32>
    %20 = vector.broadcast %19 : vector<1x4xf32> to vector<2x4xf32>
    %21 = arith.addf %18, %20 : vector<2x4xf32>
    %cst_17 = arith.constant dense<0xFF800000> : vector<2xf32>
    %22 = vector.multi_reduction <maximumf>, %21, %cst_17 [1] : vector<2x4xf32> to vector<2xf32>
    %23 = vector.shape_cast %22 : vector<2xf32> to vector<2x1xf32>
    %24 = vector.broadcast %23 : vector<2x1xf32> to vector<2x4xf32>
    %25 = arith.subf %21, %24 : vector<2x4xf32>
    %26 = math.exp %25 : vector<2x4xf32>
    %cst_18 = arith.constant dense<0.000000e+00> : vector<2xf32>
    %27 = vector.multi_reduction <add>, %26, %cst_18 [1] : vector<2x4xf32> to vector<2xf32>
    %28 = vector.shape_cast %27 : vector<2xf32> to vector<2x1xf32>
    %29 = tpu.reciprocal %28 {approx = true} : vector<2x1xf32> -> vector<2x1xf32>
    %30 = vector.broadcast %29 : vector<2x1xf32> to vector<2x4xf32>
    %31 = arith.mulf %26, %30 : vector<2x4xf32>
    %c0_19 = arith.constant 0 : index
    %c0_20 = arith.constant 0 : index
    %32 = vector.load %arg8[%c0_19, %c0_20] : memref<2x4xf32, #tpu.memory_space<vmem>>, vector<2x4xf32>
    tpu.vector_store %arg8[%c0_19, %c0_20], %31 {strides = array<i32>} : memref<2x4xf32, #tpu.memory_space<vmem>>, vector<2x4xf32>,
    return
  }
  func.func @transform_0(%arg0: i32) -> (i32, i32) {
    %c0_i32 = arith.constant 0 : i32
    %c0_i32_0 = arith.constant 0 : i32
    %c0_i32_1 = arith.constant 0 : i32
    return %c0_i32, %c0_i32_0 : i32, i32
  }
  func.func @transform_1(%arg0: i32) -> (i32, i32) {
    %c0_i32 = arith.constant 0 : i32
    %c0_i32_0 = arith.constant 0 : i32
    %c0_i32_1 = arith.constant 0 : i32
    return %c0_i32, %c0_i32_0 : i32, i32
  }
  func.func @transform_2(%arg0: i32) -> (i32, i32) {
    %c0_i32 = arith.constant 0 : i32
    %c0_i32_0 = arith.constant 0 : i32
    %c0_i32_1 = arith.constant 0 : i32
    return %c0_i32, %c0_i32_0 : i32, i32
  }
  func.func @transform_3(%arg0: i32) -> (i32, i32) {
    %c0_i32 = arith.constant 0 : i32
    %c0_i32_0 = arith.constant 0 : i32
    %c0_i32_1 = arith.constant 0 : i32
    return %c0_i32, %c0_i32_0 : i32, i32
  }
  func.func @transform_4(%arg0: i32) -> (i32, i32) {
    %c0_i32 = arith.constant 0 : i32
    %c0_i32_0 = arith.constant 0 : i32
    %c0_i32_1 = arith.constant 0 : i32
    return %c0_i32, %c0_i32_0 : i32, i32
  }
  func.func @transform_5(%arg0: i32) -> (i32, i32) {
    %c0_i32 = arith.constant 0 : i32
    %c0_i32_0 = arith.constant 0 : i32
    %c0_i32_1 = arith.constant 0 : i32
    return %c0_i32, %c0_i32_0 : i32, i32
  }
  func.func @transform_6(%arg0: i32) -> (i32, i32) {
    %c0_i32 = arith.constant 0 : i32
    %c0_i32_0 = arith.constant 0 : i32
    %c0_i32_1 = arith.constant 0 : i32
    return %c0_i32, %c0_i32_0 : i32, i32
  }
  func.func @transform_7(%arg0: i32) -> (i32, i32) {
    %c0_i32 = arith.constant 0 : i32
    %c0_i32_0 = arith.constant 0 : i32
    %c0_i32_1 = arith.constant 0 : i32
    return %c0_i32, %c0_i32_0 : i32, i32
  }
}

</mosaic_0001>

<bundles_post_ra>
// kernel: forward.3
= control target key start
LH: loop header
LB: loop body
LE: loop exit
PB: predicated region body
PF: predicated region fallthrough
CT: control target
= control target key end

     0   :  { %v3562_v0 = vmov 0.0   ;;  %vm3563_vm0 = vmmov 0   ;;  %vm318_vm1 = vcmask 1044480   ;;  %vm319_vm2 = vcmask 1045504   ;;  %s4789_s4 = inlined_call_operand.vmem [shape: bf16[75,6], index: 4, kind: input, shape index: {}]   ;;  %s4790_s0 = inlined_call_operand.vmem [shape: bf16[392,75], index: 0, kind: input, shape index: {}]   ;;  %s4791_s1 = inlined_call_operand.vmem [shape: bf16[392,75], index: 1, kind: input, shape index: {}]   ;;  %s4792_s2 = inlined_call_operand.vmem [shape: bf16[392,75], index: 2, kind: input, shape index: {}]   ;;  %s4793_s3 = inlined_call_operand.vmem [shape: bf16[392,75], index: 3, kind: input, shape index: {}]   ;;  %s4794_s5 = inlined_call_operand.vmem [shape: f32[1,6], index: 5, kind: input, shape index: {}]   ;;  %s4795_s6 = inlined_call_operand.vmem [shape: bf16[392,6], index: 6, kind: output, shape index: {}]  }
   0x1   :  { %3012 = vmatprep.subr.bf16.mxu0 %v3562_v0  ;;  %3122 = vmatprep.subr.bf16.mxu1 %v3562_v0  ;;  %v3455_v1 = vld [vmem:[%s4789_s4] sm:$0xff]   ;;  %v3456_v2 = vld [vmem:[%s4789_s4 + $0x8] sm:$0xff]   ;;  %v3457_v3 = vld [vmem:[%s4789_s4 + $0x10] sm:$0xff]   ;;  %v3564_v4 = vmov 65535   ;;  %vm242_vm3 = vcmask 613376   ;;  %vm2534_vm4 = vcmask 44032  }
   0x2   :  { %3013 = vmatpush3.bf16.msra.mxu0 %v3455_v1  ;;  %3123 = vmatpush3.bf16.msra.mxu1 %v3455_v1  ;;  %v320_v5 = vsel %vm318_vm1, 4294967295, %v3564_v4  ;;  %v3458_v6 = vld [vmem:[%s4789_s4 + $0x18] sm:$0xff]   ;;  %v3459_v7 = vld [vmem:[%s4789_s4 + $0x20] sm:$0x3f]   ;;  %v3462_v12 = vld [vmem:[%s4790_s0 + $0x8] sm:$0xff]  }
   0x3   :  { %3014 = vmatprep.subr.bf16.mxu0 %v3562_v0  ;;  %3124 = vmatprep.subr.bf16.mxu1 %v3562_v0  ;;  %v321_v8 = vsel %vm319_vm2, %v320_v5, 0  ;;  %v3460_v10 = vld [vmem:[%s4790_s0] sm:$0xff]   ;;  %v3463_v13 = vld [vmem:[%s4791_s1 + $0x8] sm:$0xff]   ;;  %v3464_v14 = vld [vmem:[%s4790_s0 + $0x10] sm:$0xff]  }
   0x4   :  { %3022 = vmatprep.mubr.msk.bf16.mxu0 %vm3563_vm0, %v3562_v0  ;;  %3132 = vmatprep.mubr.msk.bf16.mxu1 %vm3563_vm0, %v3562_v0  ;;  %v323_v9 = vand.u32 %v3459_v7, %v321_v8  ;;  %v3461_v11 = vld [vmem:[%s4791_s1] sm:$0xff]   ;;  %v3465_v15 = vld [vmem:[%s4791_s1 + $0x10] sm:$0xff]   ;;  %v3466_v16 = vld [vmem:[%s4790_s0 + $0x18] sm:$0xff]  }
   0x5   :  { %v3467_v17 = vld [vmem:[%s4791_s1 + $0x18] sm:$0xff]   ;;  %v3468_v18 = vld [vmem:[%s4790_s0 + $0x20] sm:$0xff]   ;;  %v3470_v20 = vld [vmem:[%s4790_s0 + $0x28] sm:$0xff]  }
   0x6   :  { %3015 = vmatpush3.bf16.msra.mxu0 %v3456_v2  ;;  %3125 = vmatpush3.bf16.msra.mxu1 %v3456_v2  ;;  %v3469_v19 = vld [vmem:[%s4791_s1 + $0x20] sm:$0xff]   ;;  %v3471_v21 = vld [vmem:[%s4791_s1 + $0x28] sm:$0xff]   ;;  %v3472_v22 = vld [vmem:[%s4790_s0 + $0x30] sm:$0xff]  }
   0x7   :  { %3016 = vmatprep.subr.bf16.mxu0 %v3562_v0  ;;  %3126 = vmatprep.subr.bf16.mxu1 %v3562_v0  ;;  %v3473_v23 = vld [vmem:[%s4791_s1 + $0x30] sm:$0xff]   ;;  %v3474_v24 = vld [vmem:[%s4790_s0 + $0x38] sm:$0xff]   ;;  %v3476_v26 = vld [vmem:[%s4790_s0 + $0x40] sm:$0xff]  }
   0x8   :  { %v3475_v25 = vld [vmem:[%s4791_s1 + $0x38] sm:$0xff]   ;;  %v3477_v27 = vld [vmem:[%s4791_s1 + $0x40] sm:$0xff]   ;;  %v3478_v28 = vld [vmem:[%s4790_s0 + $0x48] sm:$0xff]  }
   0x9   :  { %v3479_v29 = vld [vmem:[%s4791_s1 + $0x48] sm:$0xff]   ;;  %v3480_v30 = vld [vmem:[%s4790_s0 + $0x50] sm:$0xff]   ;;  %v3482_v32 = vld [vmem:[%s4790_s0 + $0x58] sm:$0xff]  }
   0xa   :  { %3017 = vmatpush3.bf16.msra.mxu0 %v3457_v3  ;;  %3127 = vmatpush3.bf16.msra.mxu1 %v3457_v3  ;;  %v3481_v31 = vld [vmem:[%s4791_s1 + $0x50] sm:$0xff]   ;;  %v3483_v33 = vld [vmem:[%s4791_s1 + $0x58] sm:$0xff]   ;;  %v3484_v34 = vld [vmem:[%s4790_s0 + $0x60] sm:$0xff]  }
   0xb   :  { %3018 = vmatprep.subr.bf16.mxu0 %v3562_v0  ;;  %3128 = vmatprep.subr.bf16.mxu1 %v3562_v0  ;;  %v3485_v35 = vld [vmem:[%s4791_s1 + $0x60] sm:$0xff]   ;;  %v3486_v36 = vld [vmem:[%s4790_s0 + $0x68] sm:$0xff]   ;;  %v3488_v38 = vld [vmem:[%s4790_s0 + $0x70] sm:$0xff]  }
   0xc   :  { %v3487_v37 = vld [vmem:[%s4791_s1 + $0x68] sm:$0xff]   ;;  %v3489_v39 = vld [vmem:[%s4791_s1 + $0x70] sm:$0xff]   ;;  %v3490_v40 = vld [vmem:[%s4790_s0 + $0x78] sm:$0xff]  }
   0xd   :  { %v3491_v41 = vld [vmem:[%s4791_s1 + $0x78] sm:$0xff]   ;;  %v3492_v42 = vld [vmem:[%s4790_s0 + $0x80] sm:$0xff]   ;;  %v3494_v44 = vld [vmem:[%s4790_s0 + $0x88] sm:$0xff]  }
   0xe   :  { %3019 = vmatpush3.bf16.msra.mxu0 %v3458_v6  ;;  %3129 = vmatpush3.bf16.msra.mxu1 %v3458_v6  ;;  %v3493_v43 = vld [vmem:[%s4791_s1 + $0x80] sm:$0xff]   ;;  %v3495_v45 = vld [vmem:[%s4791_s1 + $0x88] sm:$0xff]   ;;  %v3496_v46 = vld [vmem:[%s4790_s0 + $0x90] sm:$0xff]  }
   0xf   :  { %3020 = vmatprep.subr.bf16.mxu0 %v3562_v0  ;;  %3130 = vmatprep.subr.bf16.mxu1 %v3562_v0  ;;  %v3497_v47 = vld [vmem:[%s4791_s1 + $0x90] sm:$0xff]   ;;  %v3498_v48 = vld [vmem:[%s4790_s0 + $0x98] sm:$0xff]   ;;  %v3500_v50 = vld [vmem:[%s4790_s0 + $0xa0] sm:$0xff]  }
  0x10   :  { %v3499_v49 = vld [vmem:[%s4791_s1 + $0x98] sm:$0xff]   ;;  %v3501_v51 = vld [vmem:[%s4791_s1 + $0xa0] sm:$0xff]   ;;  %v3502_v52 = vld [vmem:[%s4790_s0 + $0xa8] sm:$0xff]  }
  0x11   :  { %v3503_v53 = vld [vmem:[%s4791_s1 + $0xa8] sm:$0xff]   ;;  %v3504_v54 = vld [vmem:[%s4790_s0 + $0xb0] sm:$0xff]   ;;  %v3506_v56 = vld [vmem:[%s4790_s0 + $0xb8] sm:$0xff]  }
  0x12   :  { %3021 = vmatpush3.bf16.msra.mxu0 %v323_v9  ;;  %3131 = vmatpush3.bf16.msra.mxu1 %v323_v9  ;;  %v3505_v55 = vld [vmem:[%s4791_s1 + $0xb0] sm:$0xff]   ;;  %v3507_v57 = vld [vmem:[%s4791_s1 + $0xb8] sm:$0xff]   ;;  %v3508_v58 = vld [vmem:[%s4790_s0 + $0xc0] ss:$0 sps:$4 sm:$0xff]  }
  0x13   :  { %3232 = vmatprep.subr.bf16.mxu0 %v3562_v0  ;;  %3342 = vmatprep.subr.bf16.mxu1 %v3562_v0  ;;  %v3509_v59 = vld [vmem:[%s4791_s1 + $0xc0] ss:$0 sps:$4 sm:$0xff]   ;;  %v3512_v62 = vld [vmem:[%s4792_s2 + $0x8] sm:$0xff]   ;;  %v3514_v8 = vld [vmem:[%s4792_s2 + $0x10] sm:$0xff]  }
  0x14   :  { %v3510_v60 = vld [vmem:[%s4792_s2] sm:$0xff]   ;;  %v3513_v63 = vld [vmem:[%s4793_s3 + $0x8] sm:$0xff]  }
  0x15   :  { %3023 = vmatmul.mubr.msk.bf16.vlgmr.msra.gmra.mrb[0].mxu0 %vm242_vm3, %v3460_v10  ;;  %3133 = vmatmul.mubr.msk.bf16.vlgmr.msra.gmra.mrb[0].mxu1 %vm242_vm3, %v3461_v11  ;;  %v3511_v61 = vld [vmem:[%s4793_s3] sm:$0xff]  }
  0x16   :  { %3233 = vmatpush3.bf16.msra.mxu0 %v3455_v1  ;;  %3343 = vmatpush3.bf16.msra.mxu1 %v3455_v1  ;;  %v3962_v1 = vld [vmem:[%s4794_s5] ss:$0 sm:$0xff] }
  0x17   :  { %3026 = vmatprep.mubr.msk.bf16.mxu0 %vm3563_vm0, %v3562_v0  ;;  %3136 = vmatprep.mubr.msk.bf16.mxu1 %vm3563_vm0, %v3562_v0 }
  0x18   :  { %3234 = vmatprep.subr.bf16.mxu0 %v3562_v0  ;;  %3344 = vmatprep.subr.bf16.mxu1 %v3562_v0 }
  0x1a   :  { %3235 = vmatpush3.bf16.msra.mxu0 %v3456_v2  ;;  %3345 = vmatpush3.bf16.msra.mxu1 %v3456_v2 }
  0x1b   :  { %3236 = vmatprep.subr.bf16.mxu0 %v3562_v0  ;;  %3346 = vmatprep.subr.bf16.mxu1 %v3562_v0 }
  0x1d   :  { %3027 = vmatmul.mubr.msk.bf16.gmra.mrb[4].mxu0 %vm242_vm3, %v3462_v12  ;;  %3137 = vmatmul.mubr.msk.bf16.gmra.mrb[4].mxu1 %vm242_vm3, %v3463_v13 }
  0x1e   :  { %3030 = vmatprep.mubr.msk.bf16.mxu0 %vm3563_vm0, %v3562_v0  ;;  %3140 = vmatprep.mubr.msk.bf16.mxu1 %vm3563_vm0, %v3562_v0 }
  0x1f   :  { %3237 = vmatpush3.bf16.msra.mxu0 %v3457_v3  ;;  %3347 = vmatpush3.bf16.msra.mxu1 %v3457_v3 }
  0x20   :  { %3238 = vmatprep.subr.bf16.mxu0 %v3562_v0  ;;  %3348 = vmatprep.subr.bf16.mxu1 %v3562_v0 }
  0x23   :  { %3239 = vmatpush3.bf16.msra.mxu0 %v3458_v6  ;;  %3349 = vmatpush3.bf16.msra.mxu1 %v3458_v6 }
  0x24   :  { %3240 = vmatprep.subr.bf16.mxu0 %v3562_v0  ;;  %3350 = vmatprep.subr.bf16.mxu1 %v3562_v0 }
  0x25   :  { %3031 = vmatmul.mubr.msk.bf16.gmra.mrb[8].mxu0 %vm242_vm3, %v3464_v14  ;;  %3141 = vmatmul.mubr.msk.bf16.gmra.mrb[8].mxu1 %vm242_vm3, %v3465_v15 }
  0x26   :  { %3034 = vmatprep.mubr.msk.bf16.mxu0 %vm3563_vm0, %v3562_v0  ;;  %3144 = vmatprep.mubr.msk.bf16.mxu1 %vm3563_vm0, %v3562_v0 }
  0x27   :  { %3241 = vmatpush3.bf16.msra.mxu0 %v323_v9  ;;  %3351 = vmatpush3.bf16.msra.mxu1 %v323_v9  ;;  %v3515_v9 = vld [vmem:[%s4793_s3 + $0x10] sm:$0xff]  }
  0x2d   :  { %3035 = vmatmul.mubr.msk.bf16.gmra.mrb[12].mxu0 %vm242_vm3, %v3466_v16  ;;  %3145 = vmatmul.mubr.msk.bf16.gmra.mrb[12].mxu1 %vm242_vm3, %v3467_v17 }
  0x2e   :  { %3038 = vmatprep.mubr.msk.bf16.mxu0 %vm3563_vm0, %v3562_v0  ;;  %3148 = vmatprep.mubr.msk.bf16.mxu1 %vm3563_vm0, %v3562_v0 }
  0x35   :  { %3039 = vmatmul.mubr.msk.bf16.gmra.mrb[16].mxu0 %vm242_vm3, %v3468_v18  ;;  %3149 = vmatmul.mubr.msk.bf16.gmra.mrb[16].mxu1 %vm242_vm3, %v3469_v19 }
  0x36   :  { %3042 = vmatprep.mubr.msk.bf16.mxu0 %vm3563_vm0, %v3562_v0  ;;  %3152 = vmatprep.mubr.msk.bf16.mxu1 %vm3563_vm0, %v3562_v0 }
  0x3d   :  { %3043 = vmatmul.mubr.msk.bf16.gmra.mrb[20].mxu0 %vm242_vm3, %v3470_v20  ;;  %3153 = vmatmul.mubr.msk.bf16.gmra.mrb[20].mxu1 %vm242_vm3, %v3471_v21 }
  0x3e   :  { %3046 = vmatprep.mubr.msk.bf16.mxu0 %vm3563_vm0, %v3562_v0  ;;  %3156 = vmatprep.mubr.msk.bf16.mxu1 %vm3563_vm0, %v3562_v0 }
  0x45   :  { %3047 = vmatmul.mubr.msk.bf16.gmra.mrb[24].mxu0 %vm242_vm3, %v3472_v22  ;;  %3157 = vmatmul.mubr.msk.bf16.gmra.mrb[24].mxu1 %vm242_vm3, %v3473_v23 }
  0x46   :  { %3050 = vmatprep.mubr.msk.bf16.mxu0 %vm3563_vm0, %v3562_v0  ;;  %3160 = vmatprep.mubr.msk.bf16.mxu1 %vm3563_vm0, %v3562_v0 }
  0x4d   :  { %3051 = vmatmul.mubr.msk.bf16.gmra.mrb[28].mxu0 %vm242_vm3, %v3474_v24  ;;  %3161 = vmatmul.mubr.msk.bf16.gmra.mrb[28].mxu1 %vm242_vm3, %v3475_v25 }
  0x4e   :  { %3054 = vmatprep.mubr.msk.bf16.mxu0 %vm3563_vm0, %v3562_v0  ;;  %3164 = vmatprep.mubr.msk.bf16.mxu1 %vm3563_vm0, %v3562_v0 }
  0x55   :  { %3055 = vmatmul.mubr.msk.bf16.gmra.mrb[32].mxu0 %vm242_vm3, %v3476_v26  ;;  %3165 = vmatmul.mubr.msk.bf16.gmra.mrb[32].mxu1 %vm242_vm3, %v3477_v27 }
  0x56   :  { %3058 = vmatprep.mubr.msk.bf16.mxu0 %vm3563_vm0, %v3562_v0  ;;  %3168 = vmatprep.mubr.msk.bf16.mxu1 %vm3563_vm0, %v3562_v0 }
  0x5d   :  { %3059 = vmatmul.mubr.msk.bf16.gmra.mrb[36].mxu0 %vm242_vm3, %v3478_v28  ;;  %3169 = vmatmul.mubr.msk.bf16.gmra.mrb[36].mxu1 %vm242_vm3, %v3479_v29  ;;  %v3516_v28 = vld [vmem:[%s4792_s2 + $0x18] sm:$0xff]  }
  0x5e   :  { %3062 = vmatprep.mubr.msk.bf16.mxu0 %vm3563_vm0, %v3562_v0  ;;  %3172 = vmatprep.mubr.msk.bf16.mxu1 %vm3563_vm0, %v3562_v0  ;;  %v3517_v29 = vld [vmem:[%s4793_s3 + $0x18] sm:$0xff]  }
  0x65   :  { %3063 = vmatmul.mubr.msk.bf16.gmra.mrb[40].mxu0 %vm242_vm3, %v3480_v30  ;;  %3173 = vmatmul.mubr.msk.bf16.gmra.mrb[40].mxu1 %vm242_vm3, %v3481_v31 }
  0x66   :  { %3066 = vmatprep.mubr.msk.bf16.mxu0 %vm3563_vm0, %v3562_v0  ;;  %3176 = vmatprep.mubr.msk.bf16.mxu1 %vm3563_vm0, %v3562_v0 }
  0x6d   :  { %3067 = vmatmul.mubr.msk.bf16.gmra.mrb[44].mxu0 %vm242_vm3, %v3482_v32  ;;  %3177 = vmatmul.mubr.msk.bf16.gmra.mrb[44].mxu1 %vm242_vm3, %v3483_v33 }
  0x6e   :  { %3070 = vmatprep.mubr.msk.bf16.mxu0 %vm3563_vm0, %v3562_v0  ;;  %3180 = vmatprep.mubr.msk.bf16.mxu1 %vm3563_vm0, %v3562_v0 }
  0x75   :  { %3071 = vmatmul.mubr.msk.bf16.gmra.mrb[48].mxu0 %vm242_vm3, %v3484_v34  ;;  %3181 = vmatmul.mubr.msk.bf16.gmra.mrb[48].mxu1 %vm242_vm3, %v3485_v35 }
  0x76   :  { %3074 = vmatprep.mubr.msk.bf16.mxu0 %vm3563_vm0, %v3562_v0  ;;  %3184 = vmatprep.mubr.msk.bf16.mxu1 %vm3563_vm0, %v3562_v0 }
  0x7d   :  { %3075 = vmatmul.mubr.msk.bf16.gmra.mrb[52].mxu0 %vm242_vm3, %v3486_v36  ;;  %3185 = vmatmul.mubr.msk.bf16.gmra.mrb[52].mxu1 %vm242_vm3, %v3487_v37 }
  0x7e   :  { %3078 = vmatprep.mubr.msk.bf16.mxu0 %vm3563_vm0, %v3562_v0  ;;  %3188 = vmatprep.mubr.msk.bf16.mxu1 %vm3563_vm0, %v3562_v0 }
  0x85   :  { %3079 = vmatmul.mubr.msk.bf16.gmra.mrb[56].mxu0 %vm242_vm3, %v3488_v38  ;;  %3189 = vmatmul.mubr.msk.bf16.gmra.mrb[56].mxu1 %vm242_vm3, %v3489_v39 }
  0x86   :  { %3082 = vmatprep.mubr.msk.bf16.mxu0 %vm3563_vm0, %v3562_v0  ;;  %3192 = vmatprep.mubr.msk.bf16.mxu1 %vm3563_vm0, %v3562_v0 }
  0x8d   :  { %3083 = vmatmul.mubr.msk.bf16.gmra.mrb[60].mxu0 %vm242_vm3, %v3490_v40  ;;  %3193 = vmatmul.mubr.msk.bf16.gmra.mrb[60].mxu1 %vm242_vm3, %v3491_v41 }
  0x8e   :  { %3086 = vmatprep.mubr.msk.bf16.mxu0 %vm3563_vm0, %v3562_v0  ;;  %3196 = vmatprep.mubr.msk.bf16.mxu1 %vm3563_vm0, %v3562_v0 }
  0x95   :  { %3087 = vmatmul.mubr.msk.bf16.gmra.mrb[64].mxu0 %vm242_vm3, %v3492_v42  ;;  %3197 = vmatmul.mubr.msk.bf16.gmra.mrb[64].mxu1 %vm242_vm3, %v3493_v43 }
  0x96   :  { %3090 = vmatprep.mubr.msk.bf16.mxu0 %vm3563_vm0, %v3562_v0  ;;  %3200 = vmatprep.mubr.msk.bf16.mxu1 %vm3563_vm0, %v3562_v0 }
  0x9d   :  { %3091 = vmatmul.mubr.msk.bf16.gmra.mrb[68].mxu0 %vm242_vm3, %v3494_v44  ;;  %3201 = vmatmul.mubr.msk.bf16.gmra.mrb[68].mxu1 %vm242_vm3, %v3495_v45 }
  0x9e   :  { %3094 = vmatprep.mubr.msk.bf16.mxu0 %vm3563_vm0, %v3562_v0  ;;  %3204 = vmatprep.mubr.msk.bf16.mxu1 %vm3563_vm0, %v3562_v0 }
  0xa5   :  { %3095 = vmatmul.mubr.msk.bf16.gmra.mrb[72].mxu0 %vm242_vm3, %v3496_v46  ;;  %3205 = vmatmul.mubr.msk.bf16.gmra.mrb[72].mxu1 %vm242_vm3, %v3497_v47 }
  0xa6   :  { %3098 = vmatprep.mubr.msk.bf16.mxu0 %vm3563_vm0, %v3562_v0  ;;  %3208 = vmatprep.mubr.msk.bf16.mxu1 %vm3563_vm0, %v3562_v0 }
  0xad   :  { %3099 = vmatmul.mubr.msk.bf16.gmra.mrb[76].mxu0 %vm242_vm3, %v3498_v48  ;;  %3209 = vmatmul.mubr.msk.bf16.gmra.mrb[76].mxu1 %vm242_vm3, %v3499_v49  ;;  %v3518_v48 = vld [vmem:[%s4792_s2 + $0x20] sm:$0xff]  }
  0xae   :  { %3102 = vmatprep.mubr.msk.bf16.mxu0 %vm3563_vm0, %v3562_v0  ;;  %3212 = vmatprep.mubr.msk.bf16.mxu1 %vm3563_vm0, %v3562_v0  ;;  %v3519_v49 = vld [vmem:[%s4793_s3 + $0x20] sm:$0xff]  }
  0xb5   :  { %3103 = vmatmul.mubr.msk.bf16.gmra.mrb[80].mxu0 %vm242_vm3, %v3500_v50  ;;  %3213 = vmatmul.mubr.msk.bf16.gmra.mrb[80].mxu1 %vm242_vm3, %v3501_v51 }
  0xb6   :  { %3106 = vmatprep.mubr.msk.bf16.mxu0 %vm3563_vm0, %v3562_v0  ;;  %3216 = vmatprep.mubr.msk.bf16.mxu1 %vm3563_vm0, %v3562_v0 }
  0xbd   :  { %3107 = vmatmul.mubr.msk.bf16.gmra.mrb[84].mxu0 %vm242_vm3, %v3502_v52  ;;  %3217 = vmatmul.mubr.msk.bf16.gmra.mrb[84].mxu1 %vm242_vm3, %v3503_v53 }
  0xbe   :  { %3110 = vmatprep.mubr.msk.bf16.mxu0 %vm3563_vm0, %v3562_v0  ;;  %3220 = vmatprep.mubr.msk.bf16.mxu1 %vm3563_vm0, %v3562_v0 }
  0xc5   :  { %3111 = vmatmul.mubr.msk.bf16.gmra.mrb[88].mxu0 %vm242_vm3, %v3504_v54  ;;  %3221 = vmatmul.mubr.msk.bf16.gmra.mrb[88].mxu1 %vm242_vm3, %v3505_v55 }
  0xc6   :  { %3114 = vmatprep.mubr.msk.bf16.mxu0 %vm3563_vm0, %v3562_v0  ;;  %3224 = vmatprep.mubr.msk.bf16.mxu1 %vm3563_vm0, %v3562_v0 }
  0xcd   :  { %3115 = vmatmul.mubr.msk.bf16.gmra.mrb[92].mxu0 %vm242_vm3, %v3506_v56  ;;  %3225 = vmatmul.mubr.msk.bf16.gmra.mrb[92].mxu1 %vm242_vm3, %v3507_v57 }
  0xce   :  { %3118 = vmatprep.mubr.msk.bf16.mxu0 %vm3563_vm0, %v3562_v0  ;;  %3228 = vmatprep.mubr.msk.bf16.mxu1 %vm3563_vm0, %v3562_v0 }
  0xd5   :  { %3119 = vmatmul.mubr.msk.bf16.gmra.mrb[96].mxu0 %vm242_vm3, %v3508_v58  ;;  %3229 = vmatmul.mubr.msk.bf16.gmra.mrb[96].mxu1 %vm242_vm3, %v3509_v59 }
  0xd6   :  { %3242 = vmatprep.mubr.msk.bf16.mxu0 %vm3563_vm0, %v3562_v0  ;;  %3352 = vmatprep.mubr.msk.bf16.mxu1 %vm3563_vm0, %v3562_v0 }
  0xdd   :  { %3243 = vmatmul.mubr.msk.bf16.vlgmr.msra.gmra.mrb[100].mxu0 %vm242_vm3, %v3510_v60  ;;  %3353 = vmatmul.mubr.msk.bf16.vlgmr.msra.gmra.mrb[100].mxu1 %vm242_vm3, %v3511_v61 }
  0xde   :  { %3246 = vmatprep.mubr.msk.bf16.mxu0 %vm3563_vm0, %v3562_v0  ;;  %3356 = vmatprep.mubr.msk.bf16.mxu1 %vm3563_vm0, %v3562_v0 }
  0xe5   :  { %3247 = vmatmul.mubr.msk.bf16.gmra.mrb[104].mxu0 %vm242_vm3, %v3512_v62  ;;  %3357 = vmatmul.mubr.msk.bf16.gmra.mrb[104].mxu1 %vm242_vm3, %v3513_v63 }
  0xe6   :  { %3250 = vmatprep.mubr.msk.bf16.mxu0 %vm3563_vm0, %v3562_v0  ;;  %3360 = vmatprep.mubr.msk.bf16.mxu1 %vm3563_vm0, %v3562_v0 }
  0xe8   :  { %v359_v2 = vpop.f32.mrb[0].mxu0  ;;  %v887_v3 = vpop.f32.mrb[0].mxu1 }
  0xe9   :  { %v360_v4 = vadd.f32 %v3962_v1, %v359_v2  ;;  %v888_v5 = vadd.f32 %v3962_v1, %v887_v3  ;;  %v3024_v6 = vpop.f32.mrb[1].mxu0  ;;  %v3134_v7 = vpop.f32.mrb[1].mxu1 }
  0xea   :  { %v362_v10 = vpop.f32.mrb[2].mxu0  ;;  %v890_v11 = vpop.f32.mrb[2].mxu1  ;;  %v3520_v6 = vld [vmem:[%s4792_s2 + $0x28] sm:$0xff]  }
  0xeb   :  { %v557_v12 = vmax.f32 %v360_v4, 0.0  ;;  %v1085_v13 = vmax.f32 %v888_v5, 0.0  ;;  %v363_v14 = vadd.f32 %v3962_v1, %v362_v10  ;;  %v891_v15 = vadd.f32 %v3962_v1, %v890_v11  ;;  %v3025_v16 = vpop.f32.mrb[3].mxu0  ;;  %v3135_v17 = vpop.f32.mrb[3].mxu1  ;;  %v3521_v7 = vld [vmem:[%s4793_s3 + $0x28] sm:$0xff]  }
  0xed   :  { %v3978_v18 = vmax.f32 %v557_v12, %v1085_v13  ;;  %v558_v19 = vmax.f32 %v363_v14, 0.0  ;;  %v1086_v20 = vmax.f32 %v891_v15, 0.0  ;;  %3251 = vmatmul.mubr.msk.bf16.gmra.mrb[108].mxu0 %vm242_vm3, %v3514_v8  ;;  %3361 = vmatmul.mubr.msk.bf16.gmra.mrb[108].mxu1 %vm242_vm3, %v3515_v9 }
  0xee   :  { %3254 = vmatprep.mubr.msk.bf16.mxu0 %vm3563_vm0, %v3562_v0  ;;  %3364 = vmatprep.mubr.msk.bf16.mxu1 %vm3563_vm0, %v3562_v0 }
  0xef   :  { %v3986_v21 = vmax.f32 %v558_v19, %v1086_v20 }
  0xf0   :  { %v367_v22 = vpop.f32.mrb[4].mxu0  ;;  %v895_v23 = vpop.f32.mrb[4].mxu1 }
  0xf1   :  { %v368_v24 = vadd.f32 %v3962_v1, %v367_v22  ;;  %v896_v25 = vadd.f32 %v3962_v1, %v895_v23  ;;  %v3028_v26 = vpop.f32.mrb[5].mxu0  ;;  %v3138_v27 = vpop.f32.mrb[5].mxu1 }
  0xf2   :  { %v370_v30 = vpop.f32.mrb[6].mxu0  ;;  %v898_v31 = vpop.f32.mrb[6].mxu1 }
  0xf3   :  { %v559_v32 = vmax.f32 %v368_v24, 0.0  ;;  %v1087_v33 = vmax.f32 %v896_v25, 0.0  ;;  %v371_v34 = vadd.f32 %v3962_v1, %v370_v30  ;;  %v899_v35 = vadd.f32 %v3962_v1, %v898_v31  ;;  %v3029_v36 = vpop.f32.mrb[7].mxu0  ;;  %v3139_v37 = vpop.f32.mrb[7].mxu1 }
  0xf5   :  { %v3998_v38 = vmax.f32 %v559_v32, %v1087_v33  ;;  %v560_v39 = vmax.f32 %v371_v34, 0.0  ;;  %v1088_v40 = vmax.f32 %v899_v35, 0.0  ;;  %3255 = vmatmul.mubr.msk.bf16.gmra.mrb[112].mxu0 %vm242_vm3, %v3516_v28  ;;  %3365 = vmatmul.mubr.msk.bf16.gmra.mrb[112].mxu1 %vm242_vm3, %v3517_v29  ;;  %v3522_v28 = vld [vmem:[%s4792_s2 + $0x30] sm:$0xff]  }
  0xf6   :  { %3258 = vmatprep.mubr.msk.bf16.mxu0 %vm3563_vm0, %v3562_v0  ;;  %3368 = vmatprep.mubr.msk.bf16.mxu1 %vm3563_vm0, %v3562_v0  ;;  %v3523_v29 = vld [vmem:[%s4793_s3 + $0x30] sm:$0xff]  }
  0xf7   :  { %v4006_v41 = vmax.f32 %v560_v39, %v1088_v40 }
  0xf8   :  { %v375_v42 = vpop.f32.mrb[8].mxu0  ;;  %v903_v43 = vpop.f32.mrb[8].mxu1 }
  0xf9   :  { %v376_v44 = vadd.f32 %v3962_v1, %v375_v42  ;;  %v904_v45 = vadd.f32 %v3962_v1, %v903_v43  ;;  %v3032_v46 = vpop.f32.mrb[9].mxu0  ;;  %v3142_v47 = vpop.f32.mrb[9].mxu1 }
  0xfa   :  { %v378_v50 = vpop.f32.mrb[10].mxu0  ;;  %v906_v51 = vpop.f32.mrb[10].mxu1 }
  0xfb   :  { %v561_v52 = vmax.f32 %v376_v44, 0.0  ;;  %v1089_v53 = vmax.f32 %v904_v45, 0.0  ;;  %v379_v54 = vadd.f32 %v3962_v1, %v378_v50  ;;  %v907_v55 = vadd.f32 %v3962_v1, %v906_v51  ;;  %v3033_v56 = vpop.f32.mrb[11].mxu0  ;;  %v3143_v57 = vpop.f32.mrb[11].mxu1  ;;  %v3524_v50 = vld [vmem:[%s4792_s2 + $0x38] sm:$0xff]  }
  0xfc   :  { %v3525_v51 = vld [vmem:[%s4793_s3 + $0x38] sm:$0xff]  }
  0xfd   :  { %v4018_v58 = vmax.f32 %v561_v52, %v1089_v53  ;;  %v562_v59 = vmax.f32 %v379_v54, 0.0  ;;  %v1090_v60 = vmax.f32 %v907_v55, 0.0  ;;  %3259 = vmatmul.mubr.msk.bf16.gmra.mrb[116].mxu0 %vm242_vm3, %v3518_v48  ;;  %3369 = vmatmul.mubr.msk.bf16.gmra.mrb[116].mxu1 %vm242_vm3, %v3519_v49 }
  0xfe   :  { %3262 = vmatprep.mubr.msk.bf16.mxu0 %vm3563_vm0, %v3562_v0  ;;  %3372 = vmatprep.mubr.msk.bf16.mxu1 %vm3563_vm0, %v3562_v0 }
  0xff   :  { %v4026_v61 = vmax.f32 %v562_v59, %v1090_v60 }
 0x100   :  { %v383_v62 = vpop.f32.mrb[12].mxu0  ;;  %v911_v63 = vpop.f32.mrb[12].mxu1 }
 0x101   :  { %v384_v2 = vadd.f32 %v3962_v1, %v383_v62  ;;  %v912_v3 = vadd.f32 %v3962_v1, %v911_v63  ;;  %v3036_v4 = vpop.f32.mrb[13].mxu0  ;;  %v3146_v5 = vpop.f32.mrb[13].mxu1 }
 0x102   :  { %v386_v8 = vpop.f32.mrb[14].mxu0  ;;  %v914_v9 = vpop.f32.mrb[14].mxu1 }
 0x103   :  { %v563_v10 = vmax.f32 %v384_v2, 0.0  ;;  %v1091_v11 = vmax.f32 %v912_v3, 0.0  ;;  %v387_v12 = vadd.f32 %v3962_v1, %v386_v8  ;;  %v915_v13 = vadd.f32 %v3962_v1, %v914_v9  ;;  %v3037_v14 = vpop.f32.mrb[15].mxu0  ;;  %v3147_v15 = vpop.f32.mrb[15].mxu1 }
 0x105   :  { %v4038_v16 = vmax.f32 %v563_v10, %v1091_v11  ;;  %v564_v17 = vmax.f32 %v387_v12, 0.0  ;;  %v1092_v19 = vmax.f32 %v915_v13, 0.0  ;;  %3263 = vmatmul.mubr.msk.bf16.gmra.mrb[120].mxu0 %vm242_vm3, %v3520_v6  ;;  %3373 = vmatmul.mubr.msk.bf16.gmra.mrb[120].mxu1 %vm242_vm3, %v3521_v7  ;;  %v3526_v10 = vld [vmem:[%s4792_s2 + $0x40] sm:$0xff]  }
 0x106   :  { %3266 = vmatprep.mubr.msk.bf16.mxu0 %vm3563_vm0, %v3562_v0  ;;  %3376 = vmatprep.mubr.msk.bf16.mxu1 %vm3563_vm0, %v3562_v0  ;;  %v3527_v11 = vld [vmem:[%s4793_s3 + $0x40] sm:$0xff]  }
 0x107   :  { %v4046_v20 = vmax.f32 %v564_v17, %v1092_v19 }
 0x108   :  { %v391_v22 = vpop.f32.mrb[16].mxu0  ;;  %v919_v23 = vpop.f32.mrb[16].mxu1 }
 0x109   :  { %v392_v24 = vadd.f32 %v3962_v1, %v391_v22  ;;  %v920_v25 = vadd.f32 %v3962_v1, %v919_v23  ;;  %v3040_v26 = vpop.f32.mrb[17].mxu0  ;;  %v3150_v27 = vpop.f32.mrb[17].mxu1 }
 0x10a   :  { %v394_v30 = vpop.f32.mrb[18].mxu0  ;;  %v922_v31 = vpop.f32.mrb[18].mxu1 }
 0x10b   :  { %v565_v32 = vmax.f32 %v392_v24, 0.0  ;;  %v1093_v33 = vmax.f32 %v920_v25, 0.0  ;;  %v395_v34 = vadd.f32 %v3962_v1, %v394_v30  ;;  %v923_v35 = vadd.f32 %v3962_v1, %v922_v31  ;;  %v3041_v36 = vpop.f32.mrb[19].mxu0  ;;  %v3151_v37 = vpop.f32.mrb[19].mxu1 }
 0x10d   :  { %v4058_v39 = vmax.f32 %v565_v32, %v1093_v33  ;;  %v566_v40 = vmax.f32 %v395_v34, 0.0  ;;  %v1094_v42 = vmax.f32 %v923_v35, 0.0  ;;  %3267 = vmatmul.mubr.msk.bf16.gmra.mrb[124].mxu0 %vm242_vm3, %v3522_v28  ;;  %3377 = vmatmul.mubr.msk.bf16.gmra.mrb[124].mxu1 %vm242_vm3, %v3523_v29  ;;  %v3528_v34 = vld [vmem:[%s4792_s2 + $0x48] sm:$0xff]  }
 0x10e   :  { %3270 = vmatprep.mubr.msk.bf16.mxu0 %vm3563_vm0, %v3562_v0  ;;  %3380 = vmatprep.mubr.msk.bf16.mxu1 %vm3563_vm0, %v3562_v0  ;;  %v3529_v35 = vld [vmem:[%s4793_s3 + $0x48] sm:$0xff]  }
 0x10f   :  { %v4066_v43 = vmax.f32 %v566_v40, %v1094_v42 }
 0x110   :  { %v399_v44 = vpop.f32.mrb[20].mxu0  ;;  %v927_v45 = vpop.f32.mrb[20].mxu1 }
 0x111   :  { %v400_v46 = vadd.f32 %v3962_v1, %v399_v44  ;;  %v928_v47 = vadd.f32 %v3962_v1, %v927_v45  ;;  %v3044_v48 = vpop.f32.mrb[21].mxu0  ;;  %v3154_v49 = vpop.f32.mrb[21].mxu1 }
 0x112   :  { %v402_v52 = vpop.f32.mrb[22].mxu0  ;;  %v930_v53 = vpop.f32.mrb[22].mxu1 }
 0x113   :  { %v567_v54 = vmax.f32 %v400_v46, 0.0  ;;  %v1095_v55 = vmax.f32 %v928_v47, 0.0  ;;  %v403_v56 = vadd.f32 %v3962_v1, %v402_v52  ;;  %v931_v57 = vadd.f32 %v3962_v1, %v930_v53  ;;  %v3045_v59 = vpop.f32.mrb[23].mxu0  ;;  %v3155_v60 = vpop.f32.mrb[23].mxu1 }
 0x114   :  { %v3530_v59 = vld [vmem:[%s4792_s2 + $0x50] sm:$0xff]  }
 0x115   :  { %v4078_v62 = vmax.f32 %v567_v54, %v1095_v55  ;;  %v568_v63 = vmax.f32 %v403_v56, 0.0  ;;  %v1096_v2 = vmax.f32 %v931_v57, 0.0  ;;  %3271 = vmatmul.mubr.msk.bf16.gmra.mrb[128].mxu0 %vm242_vm3, %v3524_v50  ;;  %3381 = vmatmul.mubr.msk.bf16.gmra.mrb[128].mxu1 %vm242_vm3, %v3525_v51  ;;  %v3531_v60 = vld [vmem:[%s4793_s3 + $0x50] sm:$0xff]  }
 0x116   :  { %3274 = vmatprep.mubr.msk.bf16.mxu0 %vm3563_vm0, %v3562_v0  ;;  %3384 = vmatprep.mubr.msk.bf16.mxu1 %vm3563_vm0, %v3562_v0 }
 0x117   :  { %v4086_v3 = vmax.f32 %v568_v63, %v1096_v2 }
 0x118   :  { %v407_v4 = vpop.f32.mrb[24].mxu0  ;;  %v935_v5 = vpop.f32.mrb[24].mxu1 }
 0x119   :  { %v408_v6 = vadd.f32 %v3962_v1, %v407_v4  ;;  %v936_v7 = vadd.f32 %v3962_v1, %v935_v5  ;;  %v3048_v8 = vpop.f32.mrb[25].mxu0  ;;  %v3158_v9 = vpop.f32.mrb[25].mxu1 }
 0x11a   :  { %v410_v12 = vpop.f32.mrb[26].mxu0  ;;  %v938_v13 = vpop.f32.mrb[26].mxu1 }
 0x11b   :  { %v569_v14 = vmax.f32 %v408_v6, 0.0  ;;  %v1097_v15 = vmax.f32 %v936_v7, 0.0  ;;  %v411_v17 = vadd.f32 %v3962_v1, %v410_v12  ;;  %v939_v19 = vadd.f32 %v3962_v1, %v938_v13  ;;  %v3049_v22 = vpop.f32.mrb[27].mxu0  ;;  %v3159_v23 = vpop.f32.mrb[27].mxu1 }
 0x11d   :  { %v4098_v24 = vmax.f32 %v569_v14, %v1097_v15  ;;  %v570_v25 = vmax.f32 %v411_v17, 0.0  ;;  %v1098_v26 = vmax.f32 %v939_v19, 0.0  ;;  %3275 = vmatmul.mubr.msk.bf16.gmra.mrb[132].mxu0 %vm242_vm3, %v3526_v10  ;;  %3385 = vmatmul.mubr.msk.bf16.gmra.mrb[132].mxu1 %vm242_vm3, %v3527_v11 }
 0x11e   :  { %3278 = vmatprep.mubr.msk.bf16.mxu0 %vm3563_vm0, %v3562_v0  ;;  %3388 = vmatprep.mubr.msk.bf16.mxu1 %vm3563_vm0, %v3562_v0 }
 0x11f   :  { %v4106_v27 = vmax.f32 %v570_v25, %v1098_v26  ;;  %v3532_v25 = vld [vmem:[%s4792_s2 + $0x58] sm:$0xff]  }
 0x120   :  { %v415_v28 = vpop.f32.mrb[28].mxu0  ;;  %v943_v29 = vpop.f32.mrb[28].mxu1  ;;  %v3533_v26 = vld [vmem:[%s4793_s3 + $0x58] sm:$0xff]  }
 0x121   :  { %v416_v30 = vadd.f32 %v3962_v1, %v415_v28  ;;  %v944_v31 = vadd.f32 %v3962_v1, %v943_v29  ;;  %v3052_v32 = vpop.f32.mrb[29].mxu0  ;;  %v3162_v33 = vpop.f32.mrb[29].mxu1 }
 0x122   :  { %v418_v36 = vpop.f32.mrb[30].mxu0  ;;  %v946_v37 = vpop.f32.mrb[30].mxu1 }
 0x123   :  { %v571_v40 = vmax.f32 %v416_v30, 0.0  ;;  %v1099_v42 = vmax.f32 %v944_v31, 0.0  ;;  %v419_v44 = vadd.f32 %v3962_v1, %v418_v36  ;;  %v947_v45 = vadd.f32 %v3962_v1, %v946_v37  ;;  %v3053_v46 = vpop.f32.mrb[31].mxu0  ;;  %v3163_v47 = vpop.f32.mrb[31].mxu1 }
 0x125   :  { %v4118_v48 = vmax.f32 %v571_v40, %v1099_v42  ;;  %v572_v49 = vmax.f32 %v419_v44, 0.0  ;;  %v1100_v50 = vmax.f32 %v947_v45, 0.0  ;;  %3279 = vmatmul.mubr.msk.bf16.gmra.mrb[136].mxu0 %vm242_vm3, %v3528_v34  ;;  %3389 = vmatmul.mubr.msk.bf16.gmra.mrb[136].mxu1 %vm242_vm3, %v3529_v35 }
 0x126   :  { %3282 = vmatprep.mubr.msk.bf16.mxu0 %vm3563_vm0, %v3562_v0  ;;  %3392 = vmatprep.mubr.msk.bf16.mxu1 %vm3563_vm0, %v3562_v0 }
 0x127   :  { %v4126_v51 = vmax.f32 %v572_v49, %v1100_v50 }
 0x128   :  { %v423_v52 = vpop.f32.mrb[32].mxu0  ;;  %v951_v53 = vpop.f32.mrb[32].mxu1 }
 0x129   :  { %v424_v54 = vadd.f32 %v3962_v1, %v423_v52  ;;  %v952_v55 = vadd.f32 %v3962_v1, %v951_v53  ;;  %v3056_v56 = vpop.f32.mrb[33].mxu0  ;;  %v3166_v57 = vpop.f32.mrb[33].mxu1  ;;  %v3534_v52 = vld [vmem:[%s4792_s2 + $0x60] sm:$0xff]  }
 0x12a   :  { %v426_v63 = vpop.f32.mrb[34].mxu0  ;;  %v954_v2 = vpop.f32.mrb[34].mxu1  ;;  %v3535_v53 = vld [vmem:[%s4793_s3 + $0x60] sm:$0xff]  }
 0x12b   :  { %v573_v4 = vmax.f32 %v424_v54, 0.0  ;;  %v1101_v5 = vmax.f32 %v952_v55, 0.0  ;;  %v427_v6 = vadd.f32 %v3962_v1, %v426_v63  ;;  %v955_v7 = vadd.f32 %v3962_v1, %v954_v2  ;;  %v3057_v8 = vpop.f32.mrb[35].mxu0  ;;  %v3167_v9 = vpop.f32.mrb[35].mxu1 }
 0x12d   :  { %v4138_v10 = vmax.f32 %v573_v4, %v1101_v5  ;;  %v574_v11 = vmax.f32 %v427_v6, 0.0  ;;  %v1102_v12 = vmax.f32 %v955_v7, 0.0  ;;  %3283 = vmatmul.mubr.msk.bf16.gmra.mrb[140].mxu0 %vm242_vm3, %v3530_v59  ;;  %3393 = vmatmul.mubr.msk.bf16.gmra.mrb[140].mxu1 %vm242_vm3, %v3531_v60 }
 0x12e   :  { %3286 = vmatprep.mubr.msk.bf16.mxu0 %vm3563_vm0, %v3562_v0  ;;  %3396 = vmatprep.mubr.msk.bf16.mxu1 %vm3563_vm0, %v3562_v0 }
 0x12f   :  { %v4146_v13 = vmax.f32 %v574_v11, %v1102_v12 }
 0x130   :  { %v431_v14 = vpop.f32.mrb[36].mxu0  ;;  %v959_v15 = vpop.f32.mrb[36].mxu1 }
 0x131   :  { %v432_v17 = vadd.f32 %v3962_v1, %v431_v14  ;;  %v960_v19 = vadd.f32 %v3962_v1, %v959_v15  ;;  %v3060_v22 = vpop.f32.mrb[37].mxu0  ;;  %v3170_v23 = vpop.f32.mrb[37].mxu1 }
 0x132   :  { %v434_v28 = vpop.f32.mrb[38].mxu0  ;;  %v962_v29 = vpop.f32.mrb[38].mxu1 }
 0x133   :  { %v575_v30 = vmax.f32 %v432_v17, 0.0  ;;  %v1103_v31 = vmax.f32 %v960_v19, 0.0  ;;  %v435_v32 = vadd.f32 %v3962_v1, %v434_v28  ;;  %v963_v33 = vadd.f32 %v3962_v1, %v962_v29  ;;  %v3061_v34 = vpop.f32.mrb[39].mxu0  ;;  %v3171_v35 = vpop.f32.mrb[39].mxu1  ;;  %v3536_v17 = vld [vmem:[%s4792_s2 + $0x68] sm:$0xff]  }
 0x134   :  { %v3537_v19 = vld [vmem:[%s4793_s3 + $0x68] sm:$0xff]  }
 0x135   :  { %v4158_v36 = vmax.f32 %v575_v30, %v1103_v31  ;;  %v576_v37 = vmax.f32 %v435_v32, 0.0  ;;  %v1104_v40 = vmax.f32 %v963_v33, 0.0  ;;  %3287 = vmatmul.mubr.msk.bf16.gmra.mrb[144].mxu0 %vm242_vm3, %v3532_v25  ;;  %3397 = vmatmul.mubr.msk.bf16.gmra.mrb[144].mxu1 %vm242_vm3, %v3533_v26 }
 0x136   :  { %3290 = vmatprep.mubr.msk.bf16.mxu0 %vm3563_vm0, %v3562_v0  ;;  %3400 = vmatprep.mubr.msk.bf16.mxu1 %vm3563_vm0, %v3562_v0 }
 0x137   :  { %v4166_v42 = vmax.f32 %v576_v37, %v1104_v40 }
 0x138   :  { %v439_v44 = vpop.f32.mrb[40].mxu0  ;;  %v967_v45 = vpop.f32.mrb[40].mxu1 }
 0x139   :  { %v440_v46 = vadd.f32 %v3962_v1, %v439_v44  ;;  %v968_v47 = vadd.f32 %v3962_v1, %v967_v45  ;;  %v3064_v49 = vpop.f32.mrb[41].mxu0  ;;  %v3174_v50 = vpop.f32.mrb[41].mxu1 }
 0x13a   :  { %v442_v54 = vpop.f32.mrb[42].mxu0  ;;  %v970_v55 = vpop.f32.mrb[42].mxu1  ;;  %v3538_v49 = vld [vmem:[%s4792_s2 + $0x70] sm:$0xff]  }
 0x13b   :  { %v577_v56 = vmax.f32 %v440_v46, 0.0  ;;  %v1105_v57 = vmax.f32 %v968_v47, 0.0  ;;  %v443_v59 = vadd.f32 %v3962_v1, %v442_v54  ;;  %v971_v60 = vadd.f32 %v3962_v1, %v970_v55  ;;  %v3065_v63 = vpop.f32.mrb[43].mxu0  ;;  %v3175_v2 = vpop.f32.mrb[43].mxu1  ;;  %v3539_v50 = vld [vmem:[%s4793_s3 + $0x70] sm:$0xff]  }
 0x13d   :  { %v4178_v4 = vmax.f32 %v577_v56, %v1105_v57  ;;  %v578_v5 = vmax.f32 %v443_v59, 0.0  ;;  %v1106_v6 = vmax.f32 %v971_v60, 0.0  ;;  %3291 = vmatmul.mubr.msk.bf16.gmra.mrb[148].mxu0 %vm242_vm3, %v3534_v52  ;;  %3401 = vmatmul.mubr.msk.bf16.gmra.mrb[148].mxu1 %vm242_vm3, %v3535_v53 }
 0x13e   :  { %3294 = vmatprep.mubr.msk.bf16.mxu0 %vm3563_vm0, %v3562_v0  ;;  %3404 = vmatprep.mubr.msk.bf16.mxu1 %vm3563_vm0, %v3562_v0 }
 0x13f   :  { %v4186_v7 = vmax.f32 %v578_v5, %v1106_v6 }
 0x140   :  { %v447_v8 = vpop.f32.mrb[44].mxu0  ;;  %v975_v9 = vpop.f32.mrb[44].mxu1 }
 0x141   :  { %v448_v11 = vadd.f32 %v3962_v1, %v447_v8  ;;  %v976_v12 = vadd.f32 %v3962_v1, %v975_v9  ;;  %v3068_v14 = vpop.f32.mrb[45].mxu0  ;;  %v3178_v15 = vpop.f32.mrb[45].mxu1 }
 0x142   :  { %v450_v22 = vpop.f32.mrb[46].mxu0  ;;  %v978_v23 = vpop.f32.mrb[46].mxu1 }
 0x143   :  { %v579_v25 = vmax.f32 %v448_v11, 0.0  ;;  %v1107_v26 = vmax.f32 %v976_v12, 0.0  ;;  %v451_v28 = vadd.f32 %v3962_v1, %v450_v22  ;;  %v979_v29 = vadd.f32 %v3962_v1, %v978_v23  ;;  %v3069_v30 = vpop.f32.mrb[47].mxu0  ;;  %v3179_v31 = vpop.f32.mrb[47].mxu1 }
 0x145   :  { %v4198_v32 = vmax.f32 %v579_v25, %v1107_v26  ;;  %v580_v33 = vmax.f32 %v451_v28, 0.0  ;;  %v1108_v34 = vmax.f32 %v979_v29, 0.0  ;;  %3295 = vmatmul.mubr.msk.bf16.gmra.mrb[152].mxu0 %vm242_vm3, %v3536_v17  ;;  %3405 = vmatmul.mubr.msk.bf16.gmra.mrb[152].mxu1 %vm242_vm3, %v3537_v19  ;;  %v3540_v17 = vld [vmem:[%s4792_s2 + $0x78] sm:$0xff]  }
 0x146   :  { %3298 = vmatprep.mubr.msk.bf16.mxu0 %vm3563_vm0, %v3562_v0  ;;  %3408 = vmatprep.mubr.msk.bf16.mxu1 %vm3563_vm0, %v3562_v0  ;;  %v3541_v19 = vld [vmem:[%s4793_s3 + $0x78] sm:$0xff]  }
 0x147   :  { %v4206_v35 = vmax.f32 %v580_v33, %v1108_v34 }
 0x148   :  { %v455_v37 = vpop.f32.mrb[48].mxu0  ;;  %v983_v40 = vpop.f32.mrb[48].mxu1 }
 0x149   :  { %v456_v44 = vadd.f32 %v3962_v1, %v455_v37  ;;  %v984_v45 = vadd.f32 %v3962_v1, %v983_v40  ;;  %v3072_v46 = vpop.f32.mrb[49].mxu0  ;;  %v3182_v47 = vpop.f32.mrb[49].mxu1 }
 0x14a   :  { %v458_v52 = vpop.f32.mrb[50].mxu0  ;;  %v986_v53 = vpop.f32.mrb[50].mxu1 }
 0x14b   :  { %v581_v54 = vmax.f32 %v456_v44, 0.0  ;;  %v1109_v55 = vmax.f32 %v984_v45, 0.0  ;;  %v459_v56 = vadd.f32 %v3962_v1, %v458_v52  ;;  %v987_v57 = vadd.f32 %v3962_v1, %v986_v53  ;;  %v3073_v59 = vpop.f32.mrb[51].mxu0  ;;  %v3183_v60 = vpop.f32.mrb[51].mxu1  ;;  %v3542_v52 = vld [vmem:[%s4792_s2 + $0x80] sm:$0xff]  }
 0x14c   :  { %v3543_v53 = vld [vmem:[%s4793_s3 + $0x80] sm:$0xff]  }
 0x14d   :  { %v4218_v63 = vmax.f32 %v581_v54, %v1109_v55  ;;  %v582_v2 = vmax.f32 %v459_v56, 0.0  ;;  %v1110_v5 = vmax.f32 %v987_v57, 0.0  ;;  %3299 = vmatmul.mubr.msk.bf16.gmra.mrb[156].mxu0 %vm242_vm3, %v3538_v49  ;;  %3409 = vmatmul.mubr.msk.bf16.gmra.mrb[156].mxu1 %vm242_vm3, %v3539_v50 }
 0x14e   :  { %3302 = vmatprep.mubr.msk.bf16.mxu0 %vm3563_vm0, %v3562_v0  ;;  %3412 = vmatprep.mubr.msk.bf16.mxu1 %vm3563_vm0, %v3562_v0 }
 0x14f   :  { %v4226_v6 = vmax.f32 %v582_v2, %v1110_v5 }
 0x150   :  { %v463_v8 = vpop.f32.mrb[52].mxu0  ;;  %v991_v9 = vpop.f32.mrb[52].mxu1 }
 0x151   :  { %v464_v11 = vadd.f32 %v3962_v1, %v463_v8  ;;  %v992_v12 = vadd.f32 %v3962_v1, %v991_v9  ;;  %v3076_v14 = vpop.f32.mrb[53].mxu0  ;;  %v3186_v15 = vpop.f32.mrb[53].mxu1 }
 0x152   :  { %v466_v22 = vpop.f32.mrb[54].mxu0  ;;  %v994_v23 = vpop.f32.mrb[54].mxu1 }
 0x153   :  { %v583_v25 = vmax.f32 %v464_v11, 0.0  ;;  %v1111_v26 = vmax.f32 %v992_v12, 0.0  ;;  %v467_v28 = vadd.f32 %v3962_v1, %v466_v22  ;;  %v995_v29 = vadd.f32 %v3962_v1, %v994_v23  ;;  %v3077_v30 = vpop.f32.mrb[55].mxu0  ;;  %v3187_v31 = vpop.f32.mrb[55].mxu1 }
 0x155   :  { %v4238_v33 = vmax.f32 %v583_v25, %v1111_v26  ;;  %v584_v34 = vmax.f32 %v467_v28, 0.0  ;;  %v1112_v37 = vmax.f32 %v995_v29, 0.0  ;;  %3303 = vmatmul.mubr.msk.bf16.gmra.mrb[160].mxu0 %vm242_vm3, %v3540_v17  ;;  %3413 = vmatmul.mubr.msk.bf16.gmra.mrb[160].mxu1 %vm242_vm3, %v3541_v19  ;;  %v3544_v25 = vld [vmem:[%s4792_s2 + $0x88] sm:$0xff]  }
 0x156   :  { %3306 = vmatprep.mubr.msk.bf16.mxu0 %vm3563_vm0, %v3562_v0  ;;  %3416 = vmatprep.mubr.msk.bf16.mxu1 %vm3563_vm0, %v3562_v0  ;;  %v3545_v26 = vld [vmem:[%s4793_s3 + $0x88] sm:$0xff]  }
 0x157   :  { %v4246_v40 = vmax.f32 %v584_v34, %v1112_v37 }
 0x158   :  { %v471_v44 = vpop.f32.mrb[56].mxu0  ;;  %v999_v45 = vpop.f32.mrb[56].mxu1 }
 0x159   :  { %v472_v46 = vadd.f32 %v3962_v1, %v471_v44  ;;  %v1000_v47 = vadd.f32 %v3962_v1, %v999_v45  ;;  %v3080_v49 = vpop.f32.mrb[57].mxu0  ;;  %v3190_v50 = vpop.f32.mrb[57].mxu1 }
 0x15a   :  { %v474_v54 = vpop.f32.mrb[58].mxu0  ;;  %v1002_v55 = vpop.f32.mrb[58].mxu1 }
 0x15b   :  { %v585_v56 = vmax.f32 %v472_v46, 0.0  ;;  %v1113_v57 = vmax.f32 %v1000_v47, 0.0  ;;  %v475_v59 = vadd.f32 %v3962_v1, %v474_v54  ;;  %v1003_v60 = vadd.f32 %v3962_v1, %v1002_v55  ;;  %v3081_v2 = vpop.f32.mrb[59].mxu0  ;;  %v3191_v5 = vpop.f32.mrb[59].mxu1 }
 0x15d   :  { %v4258_v8 = vmax.f32 %v585_v56, %v1113_v57  ;;  %v586_v9 = vmax.f32 %v475_v59, 0.0  ;;  %v1114_v11 = vmax.f32 %v1003_v60, 0.0  ;;  %3307 = vmatmul.mubr.msk.bf16.gmra.mrb[164].mxu0 %vm242_vm3, %v3542_v52  ;;  %3417 = vmatmul.mubr.msk.bf16.gmra.mrb[164].mxu1 %vm242_vm3, %v3543_v53  ;;  %v3546_v59 = vld [vmem:[%s4792_s2 + $0x90] sm:$0xff]  }
 0x15e   :  { %3310 = vmatprep.mubr.msk.bf16.mxu0 %vm3563_vm0, %v3562_v0  ;;  %3420 = vmatprep.mubr.msk.bf16.mxu1 %vm3563_vm0, %v3562_v0  ;;  %v3547_v60 = vld [vmem:[%s4793_s3 + $0x90] sm:$0xff]  }
 0x15f   :  { %v4266_v12 = vmax.f32 %v586_v9, %v1114_v11 }
 0x160   :  { %v479_v14 = vpop.f32.mrb[60].mxu0  ;;  %v1007_v15 = vpop.f32.mrb[60].mxu1 }
 0x161   :  { %v480_v17 = vadd.f32 %v3962_v1, %v479_v14  ;;  %v1008_v19 = vadd.f32 %v3962_v1, %v1007_v15  ;;  %v3084_v22 = vpop.f32.mrb[61].mxu0  ;;  %v3194_v23 = vpop.f32.mrb[61].mxu1 }
 0x162   :  { %v482_v28 = vpop.f32.mrb[62].mxu0  ;;  %v1010_v29 = vpop.f32.mrb[62].mxu1 }
 0x163   :  { %v587_v30 = vmax.f32 %v480_v17, 0.0  ;;  %v1115_v31 = vmax.f32 %v1008_v19, 0.0  ;;  %v483_v34 = vadd.f32 %v3962_v1, %v482_v28  ;;  %v1011_v37 = vadd.f32 %v3962_v1, %v1010_v29  ;;  %v3085_v44 = vpop.f32.mrb[63].mxu0  ;;  %v3195_v45 = vpop.f32.mrb[63].mxu1 }
 0x164   :  { %v3548_v44 = vld [vmem:[%s4792_s2 + $0x98] sm:$0xff]  }
 0x165   :  { %v4278_v46 = vmax.f32 %v587_v30, %v1115_v31  ;;  %v588_v47 = vmax.f32 %v483_v34, 0.0  ;;  %v1116_v49 = vmax.f32 %v1011_v37, 0.0  ;;  %3311 = vmatmul.mubr.msk.bf16.gmra.mrb[168].mxu0 %vm242_vm3, %v3544_v25  ;;  %3421 = vmatmul.mubr.msk.bf16.gmra.mrb[168].mxu1 %vm242_vm3, %v3545_v26  ;;  %v3549_v45 = vld [vmem:[%s4793_s3 + $0x98] sm:$0xff]  }
 0x166   :  { %3314 = vmatprep.mubr.msk.bf16.mxu0 %vm3563_vm0, %v3562_v0  ;;  %3424 = vmatprep.mubr.msk.bf16.mxu1 %vm3563_vm0, %v3562_v0 }
 0x167   :  { %v4286_v50 = vmax.f32 %v588_v47, %v1116_v49 }
 0x168   :  { %v487_v52 = vpop.f32.mrb[64].mxu0  ;;  %v1015_v53 = vpop.f32.mrb[64].mxu1 }
 0x169   :  { %v488_v54 = vadd.f32 %v3962_v1, %v487_v52  ;;  %v1016_v55 = vadd.f32 %v3962_v1, %v1015_v53  ;;  %v3088_v56 = vpop.f32.mrb[65].mxu0  ;;  %v3198_v57 = vpop.f32.mrb[65].mxu1 }
 0x16a   :  { %v490_v2 = vpop.f32.mrb[66].mxu0  ;;  %v1018_v5 = vpop.f32.mrb[66].mxu1 }
 0x16b   :  { %v589_v9 = vmax.f32 %v488_v54, 0.0  ;;  %v1117_v11 = vmax.f32 %v1016_v55, 0.0  ;;  %v491_v14 = vadd.f32 %v3962_v1, %v490_v2  ;;  %v1019_v15 = vadd.f32 %v3962_v1, %v1018_v5  ;;  %v3089_v17 = vpop.f32.mrb[67].mxu0  ;;  %v3199_v19 = vpop.f32.mrb[67].mxu1 }
 0x16d   :  { %v4298_v22 = vmax.f32 %v589_v9, %v1117_v11  ;;  %v590_v23 = vmax.f32 %v491_v14, 0.0  ;;  %v1118_v25 = vmax.f32 %v1019_v15, 0.0  ;;  %3315 = vmatmul.mubr.msk.bf16.gmra.mrb[172].mxu0 %vm242_vm3, %v3546_v59  ;;  %3425 = vmatmul.mubr.msk.bf16.gmra.mrb[172].mxu1 %vm242_vm3, %v3547_v60 }
 0x16e   :  { %3318 = vmatprep.mubr.msk.bf16.mxu0 %vm3563_vm0, %v3562_v0  ;;  %3428 = vmatprep.mubr.msk.bf16.mxu1 %vm3563_vm0, %v3562_v0 }
 0x16f   :  { %v4306_v26 = vmax.f32 %v590_v23, %v1118_v25  ;;  %v3550_v23 = vld [vmem:[%s4792_s2 + $0xa0] sm:$0xff]  }
 0x170   :  { %v495_v28 = vpop.f32.mrb[68].mxu0  ;;  %v1023_v29 = vpop.f32.mrb[68].mxu1  ;;  %v3551_v25 = vld [vmem:[%s4793_s3 + $0xa0] sm:$0xff]  }
 0x171   :  { %v496_v30 = vadd.f32 %v3962_v1, %v495_v28  ;;  %v1024_v31 = vadd.f32 %v3962_v1, %v1023_v29  ;;  %v3092_v34 = vpop.f32.mrb[69].mxu0  ;;  %v3202_v37 = vpop.f32.mrb[69].mxu1 }
 0x172   :  { %v498_v47 = vpop.f32.mrb[70].mxu0  ;;  %v1026_v49 = vpop.f32.mrb[70].mxu1 }
 0x173   :  { %v591_v52 = vmax.f32 %v496_v30, 0.0  ;;  %v1119_v53 = vmax.f32 %v1024_v31, 0.0  ;;  %v499_v54 = vadd.f32 %v3962_v1, %v498_v47  ;;  %v1027_v55 = vadd.f32 %v3962_v1, %v1026_v49  ;;  %v3093_v56 = vpop.f32.mrb[71].mxu0  ;;  %v3203_v57 = vpop.f32.mrb[71].mxu1 }
 0x175   :  { %v4318_v59 = vmax.f32 %v591_v52, %v1119_v53  ;;  %v592_v60 = vmax.f32 %v499_v54, 0.0  ;;  %v1120_v2 = vmax.f32 %v1027_v55, 0.0  ;;  %3319 = vmatmul.mubr.msk.bf16.gmra.mrb[176].mxu0 %vm242_vm3, %v3548_v44  ;;  %3429 = vmatmul.mubr.msk.bf16.gmra.mrb[176].mxu1 %vm242_vm3, %v3549_v45 }
 0x176   :  { %3322 = vmatprep.mubr.msk.bf16.mxu0 %vm3563_vm0, %v3562_v0  ;;  %3432 = vmatprep.mubr.msk.bf16.mxu1 %vm3563_vm0, %v3562_v0 }
 0x177   :  { %v4326_v5 = vmax.f32 %v592_v60, %v1120_v2 }
 0x178   :  { %v503_v9 = vpop.f32.mrb[72].mxu0  ;;  %v1031_v11 = vpop.f32.mrb[72].mxu1 }
 0x179   :  { %v504_v14 = vadd.f32 %v3962_v1, %v503_v9  ;;  %v1032_v15 = vadd.f32 %v3962_v1, %v1031_v11  ;;  %v3096_v17 = vpop.f32.mrb[73].mxu0  ;;  %v3206_v19 = vpop.f32.mrb[73].mxu1  ;;  %v3552_v9 = vld [vmem:[%s4792_s2 + $0xa8] sm:$0xff]  }
 0x17a   :  { %v506_v28 = vpop.f32.mrb[74].mxu0  ;;  %v1034_v29 = vpop.f32.mrb[74].mxu1  ;;  %v3553_v11 = vld [vmem:[%s4793_s3 + $0xa8] sm:$0xff]  }
 0x17b   :  { %v593_v30 = vmax.f32 %v504_v14, 0.0  ;;  %v1121_v31 = vmax.f32 %v1032_v15, 0.0  ;;  %v507_v34 = vadd.f32 %v3962_v1, %v506_v28  ;;  %v1035_v37 = vadd.f32 %v3962_v1, %v1034_v29  ;;  %v3097_v44 = vpop.f32.mrb[75].mxu0  ;;  %v3207_v45 = vpop.f32.mrb[75].mxu1 }
 0x17d   :  { %v4338_v47 = vmax.f32 %v593_v30, %v1121_v31  ;;  %v594_v49 = vmax.f32 %v507_v34, 0.0  ;;  %v1122_v52 = vmax.f32 %v1035_v37, 0.0  ;;  %3323 = vmatmul.mubr.msk.bf16.gmra.mrb[180].mxu0 %vm242_vm3, %v3550_v23  ;;  %3433 = vmatmul.mubr.msk.bf16.gmra.mrb[180].mxu1 %vm242_vm3, %v3551_v25 }
 0x17e   :  { %3326 = vmatprep.mubr.msk.bf16.mxu0 %vm3563_vm0, %v3562_v0  ;;  %3436 = vmatprep.mubr.msk.bf16.mxu1 %vm3563_vm0, %v3562_v0 }
 0x17f   :  { %v4346_v53 = vmax.f32 %v594_v49, %v1122_v52 }
 0x180   :  { %v511_v54 = vpop.f32.mrb[76].mxu0  ;;  %v1039_v55 = vpop.f32.mrb[76].mxu1 }
 0x181   :  { %v512_v56 = vadd.f32 %v3962_v1, %v511_v54  ;;  %v1040_v57 = vadd.f32 %v3962_v1, %v1039_v55  ;;  %v3100_v60 = vpop.f32.mrb[77].mxu0  ;;  %v3210_v2 = vpop.f32.mrb[77].mxu1 }
 0x182   :  { %v514_v14 = vpop.f32.mrb[78].mxu0  ;;  %v1042_v15 = vpop.f32.mrb[78].mxu1 }
 0x183   :  { %v595_v17 = vmax.f32 %v512_v56, 0.0  ;;  %v1123_v19 = vmax.f32 %v1040_v57, 0.0  ;;  %v515_v23 = vadd.f32 %v3962_v1, %v514_v14  ;;  %v1043_v25 = vadd.f32 %v3962_v1, %v1042_v15  ;;  %v3101_v28 = vpop.f32.mrb[79].mxu0  ;;  %v3211_v29 = vpop.f32.mrb[79].mxu1  ;;  %v3554_v56 = vld [vmem:[%s4792_s2 + $0xb0] sm:$0xff]  }
 0x184   :  { %v3555_v57 = vld [vmem:[%s4793_s3 + $0xb0] sm:$0xff]  }
 0x185   :  { %v4358_v30 = vmax.f32 %v595_v17, %v1123_v19  ;;  %v596_v31 = vmax.f32 %v515_v23, 0.0  ;;  %v1124_v34 = vmax.f32 %v1043_v25, 0.0  ;;  %3327 = vmatmul.mubr.msk.bf16.gmra.mrb[184].mxu0 %vm242_vm3, %v3552_v9  ;;  %3437 = vmatmul.mubr.msk.bf16.gmra.mrb[184].mxu1 %vm242_vm3, %v3553_v11 }
 0x186   :  { %3330 = vmatprep.mubr.msk.bf16.mxu0 %vm3563_vm0, %v3562_v0  ;;  %3440 = vmatprep.mubr.msk.bf16.mxu1 %vm3563_vm0, %v3562_v0 }
 0x187   :  { %v4366_v37 = vmax.f32 %v596_v31, %v1124_v34 }
 0x188   :  { %v519_v44 = vpop.f32.mrb[80].mxu0  ;;  %v1047_v45 = vpop.f32.mrb[80].mxu1 }
 0x189   :  { %v520_v49 = vadd.f32 %v3962_v1, %v519_v44  ;;  %v1048_v52 = vadd.f32 %v3962_v1, %v1047_v45  ;;  %v3104_v54 = vpop.f32.mrb[81].mxu0  ;;  %v3214_v55 = vpop.f32.mrb[81].mxu1 }
 0x18a   :  { %v522_v60 = vpop.f32.mrb[82].mxu0  ;;  %v1050_v2 = vpop.f32.mrb[82].mxu1  ;;  %v3556_v54 = vld [vmem:[%s4792_s2 + $0xb8] sm:$0xff]  }
 0x18b   :  { %v597_v9 = vmax.f32 %v520_v49, 0.0  ;;  %v1125_v11 = vmax.f32 %v1048_v52, 0.0  ;;  %v523_v14 = vadd.f32 %v3962_v1, %v522_v60  ;;  %v1051_v15 = vadd.f32 %v3962_v1, %v1050_v2  ;;  %v3105_v17 = vpop.f32.mrb[83].mxu0  ;;  %v3215_v19 = vpop.f32.mrb[83].mxu1  ;;  %v3557_v55 = vld [vmem:[%s4793_s3 + $0xb8] sm:$0xff]  }
 0x18d   :  { %v4378_v23 = vmax.f32 %v597_v9, %v1125_v11  ;;  %v598_v25 = vmax.f32 %v523_v14, 0.0  ;;  %v1126_v28 = vmax.f32 %v1051_v15, 0.0  ;;  %3331 = vmatmul.mubr.msk.bf16.gmra.mrb[188].mxu0 %vm242_vm3, %v3554_v56  ;;  %3441 = vmatmul.mubr.msk.bf16.gmra.mrb[188].mxu1 %vm242_vm3, %v3555_v57  ;;  %v4399_v9 = vld [vmem:[%s4794_s5] ss:$0 sm:$0xff] }
 0x18e   :  { %3334 = vmatprep.mubr.msk.bf16.mxu0 %vm3563_vm0, %v3562_v0  ;;  %3444 = vmatprep.mubr.msk.bf16.mxu1 %vm3563_vm0, %v3562_v0 }
 0x18f   :  { %v4386_v29 = vmax.f32 %v598_v25, %v1126_v28 }
 0x190   :  { %v527_v31 = vpop.f32.mrb[84].mxu0  ;;  %v1055_v34 = vpop.f32.mrb[84].mxu1 }
 0x191   :  { %v528_v44 = vadd.f32 %v3962_v1, %v527_v31  ;;  %v1056_v45 = vadd.f32 %v3962_v1, %v1055_v34  ;;  %v3108_v49 = vpop.f32.mrb[85].mxu0  ;;  %v3218_v52 = vpop.f32.mrb[85].mxu1 }
 0x192   :  { %v530_v56 = vpop.f32.mrb[86].mxu0  ;;  %v1058_v57 = vpop.f32.mrb[86].mxu1 }
 0x193   :  { %v599_v60 = vmax.f32 %v528_v44, 0.0  ;;  %v1127_v2 = vmax.f32 %v1056_v45, 0.0  ;;  %v531_v1 = vadd.f32 %v4399_v9, %v530_v56  ;;  %v1059_v11 = vadd.f32 %v4399_v9, %v1058_v57  ;;  %v3109_v14 = vpop.f32.mrb[87].mxu0  ;;  %v3219_v15 = vpop.f32.mrb[87].mxu1 }
 0x195   :  { %v4403_v17 = vmax.f32 %v599_v60, %v1127_v2  ;;  %v600_v19 = vmax.f32 %v531_v1, 0.0  ;;  %v1128_v25 = vmax.f32 %v1059_v11, 0.0  ;;  %3335 = vmatmul.mubr.msk.bf16.gmra.mrb[192].mxu0 %vm242_vm3, %v3556_v54  ;;  %3445 = vmatmul.mubr.msk.bf16.gmra.mrb[192].mxu1 %vm242_vm3, %v3557_v55  ;;  %v3558_v54 = vld [vmem:[%s4792_s2 + $0xc0] ss:$0 sps:$4 sm:$0xff]  }
 0x196   :  { %3338 = vmatprep.mubr.msk.bf16.mxu0 %vm3563_vm0, %v3562_v0  ;;  %3448 = vmatprep.mubr.msk.bf16.mxu1 %vm3563_vm0, %v3562_v0  ;;  %v3559_v55 = vld [vmem:[%s4793_s3 + $0xc0] ss:$0 sps:$4 sm:$0xff]  }
 0x197   :  { %v4411_v28 = vmax.f32 %v600_v19, %v1128_v25 }
 0x198   :  { %v535_v31 = vpop.f32.mrb[88].mxu0  ;;  %v1063_v34 = vpop.f32.mrb[88].mxu1 }
 0x199   :  { %4796 = vst [vmem:[#allocation2_spill] sm:$0xff] %v4411_v28  ;;  %v536_v44 = vadd.f32 %v4399_v9, %v535_v31  ;;  %v1064_v45 = vadd.f32 %v4399_v9, %v1063_v34  ;;  %v3112_v49 = vpop.f32.mrb[89].mxu0  ;;  %v3222_v52 = vpop.f32.mrb[89].mxu1 }
 0x19a   :  { %v538_v56 = vpop.f32.mrb[90].mxu0  ;;  %v1066_v0 = vpop.f32.mrb[90].mxu1 }
 0x19b   :  { %v601_v57 = vmax.f32 %v536_v44, 0.0  ;;  %v1129_v60 = vmax.f32 %v1064_v45, 0.0  ;;  %v539_v2 = vadd.f32 %v4399_v9, %v538_v56  ;;  %v1067_v1 = vadd.f32 %v4399_v9, %v1066_v0  ;;  %v3113_v11 = vpop.f32.mrb[91].mxu0  ;;  %v3223_v14 = vpop.f32.mrb[91].mxu1 }
 0x19d   :  { %v4423_v15 = vmax.f32 %v601_v57, %v1129_v60  ;;  %v602_v19 = vmax.f32 %v539_v2, 0.0  ;;  %v1130_v25 = vmax.f32 %v1067_v1, 0.0  ;;  %3339 = vmatmul.mubr.msk.bf16.gmra.mrb[196].mxu0 %vm242_vm3, %v3558_v54  ;;  %3449 = vmatmul.mubr.msk.bf16.gmra.mrb[196].mxu1 %vm242_vm3, %v3559_v55 }
 0x19f   :  { %4797 = vst [vmem:[#allocation3_spill] sm:$0xff] %v4423_v15  ;;  %v4427_v31 = vmax.f32 %v602_v19, %v1130_v25 }
 0x1a0   :  { %v543_v34 = vpop.f32.mrb[92].mxu0  ;;  %v1071_v49 = vpop.f32.mrb[92].mxu1 }
 0x1a1   :  { %4798 = vst [vmem:[#allocation4_spill] sm:$0xff] %v4427_v31  ;;  %v544_v44 = vadd.f32 %v4399_v9, %v543_v34  ;;  %v1072_v45 = vadd.f32 %v4399_v9, %v1071_v49  ;;  %v3116_v52 = vpop.f32.mrb[93].mxu0  ;;  %v3226_v56 = vpop.f32.mrb[93].mxu1 }
 0x1a2   :  { %v546_v0 = vpop.f32.mrb[94].mxu0  ;;  %v1074_v11 = vpop.f32.mrb[94].mxu1 }
 0x1a3   :  { %v603_v57 = vmax.f32 %v544_v44, 0.0  ;;  %v1131_v60 = vmax.f32 %v1072_v45, 0.0  ;;  %v547_v2 = vadd.f32 %v4399_v9, %v546_v0  ;;  %v1075_v54 = vadd.f32 %v4399_v9, %v1074_v11  ;;  %v3117_v1 = vpop.f32.mrb[95].mxu0  ;;  %v3227_v55 = vpop.f32.mrb[95].mxu1 }
 0x1a5   :  { %v4433_v14 = vmax.f32 %v603_v57, %v1131_v60  ;;  %v604_v19 = vmax.f32 %v547_v2, 0.0  ;;  %v1132_v25 = vmax.f32 %v1075_v54, 0.0 }
 0x1a7   :  { %v4435_v31 = vmax.f32 %v604_v19, %v1132_v25 }
 0x1a8   :  { %v551_v34 = vpop.f32.mrb[96].mxu0  ;;  %v1079_v49 = vpop.f32.mrb[96].mxu1 }
 0x1a9   :  { %4799 = vst [vmem:[#allocation5_spill] sm:$0xff] %v4435_v31  ;;  %v552_v52 = vadd.f32 %v4399_v9, %v551_v34  ;;  %v1080_v56 = vadd.f32 %v4399_v9, %v1079_v49  ;;  %v3120_v44 = vpop.f32.mrb[97].mxu0  ;;  %v3230_v45 = vpop.f32.mrb[97].mxu1 }
 0x1aa   :  { %v554_v15 = vpop.f32.mrb[98].mxu0  ;;  %v1082_v0 = vpop.f32.mrb[98].mxu1 }
 0x1ab   :  { %v605_v28 = vmax.f32 %v552_v52, 0.0  ;;  %v1133_v11 = vmax.f32 %v1080_v56, 0.0  ;;  %v3121_v1 = vpop.f32.mrb[99].mxu0  ;;  %v3231_v55 = vpop.f32.mrb[99].mxu1 }
 0x1ad   :  { %v4439_v57 = vmax.f32 %v605_v28, %v1133_v11 }
 0x1af   :  { %4800 = vst [vmem:[#allocation6_spill] sm:$0xff] %v4439_v57 }
 0x1b0   :  { %v1464_v60 = vpop.f32.mrb[100].mxu0  ;;  %v1992_v2 = vpop.f32.mrb[100].mxu1 }
 0x1b1   :  { %v1465_v54 = vadd.f32 %v4399_v9, %v1464_v60  ;;  %v1993_v19 = vadd.f32 %v4399_v9, %v1992_v2  ;;  %v3244_v25 = vpop.f32.mrb[101].mxu0  ;;  %v3354_v34 = vpop.f32.mrb[101].mxu1 }
 0x1b2   :  { %v1467_v31 = vpop.f32.mrb[102].mxu0  ;;  %v1995_v49 = vpop.f32.mrb[102].mxu1 }
 0x1b3   :  { %v1662_v44 = vmax.f32 %v1465_v54, 0.0  ;;  %v2190_v45 = vmax.f32 %v1993_v19, 0.0  ;;  %v1468_v15 = vadd.f32 %v4399_v9, %v1467_v31  ;;  %v1996_v52 = vadd.f32 %v4399_v9, %v1995_v49  ;;  %v3245_v56 = vpop.f32.mrb[103].mxu0  ;;  %v3355_v0 = vpop.f32.mrb[103].mxu1 }
 0x1b5   :  { %v2239_v28 = vmax.f32 %v1662_v44, %v2190_v45  ;;  %v1663_v11 = vmax.f32 %v1468_v15, 0.0  ;;  %v2191_v1 = vmax.f32 %v1996_v52, 0.0 }
 0x1b7   :  { %v2288_v55 = vmax.f32 %v3978_v18, %v2239_v28  ;;  %v2240_v60 = vmax.f32 %v1663_v11, %v2191_v1 }
 0x1b8   :  { %v1472_v2 = vpop.f32.mrb[104].mxu0  ;;  %v2000_v25 = vpop.f32.mrb[104].mxu1 }
 0x1b9   :  { %v2843_v34 = vpack.c.bf16 %v2288_v55, %v2288_v55  ;;  %v2289_v57 = vmax.f32 %v3986_v21, %v2240_v60  ;;  %v1473_v54 = vadd.f32 %v4399_v9, %v1472_v2  ;;  %v2001_v31 = vadd.f32 %v4399_v9, %v2000_v25  ;;  %v3248_v19 = vpop.f32.mrb[105].mxu0  ;;  %v3358_v49 = vpop.f32.mrb[105].mxu1 }
 0x1ba   :  { %v1475_v56 = vpop.f32.mrb[106].mxu0  ;;  %v2003_v0 = vpop.f32.mrb[106].mxu1 }
 0x1bb   :  { %2535 = vst.msk [vmem:[%s4795_s6] sm:$0xf] %vm2534_vm4, %v2843_v34  ;;  %v2844_v18 = vpack.c.bf16 %v2289_v57, %v2289_v57  ;;  %v1664_v44 = vmax.f32 %v1473_v54, 0.0  ;;  %v2192_v45 = vmax.f32 %v2001_v31, 0.0  ;;  %v1476_v15 = vadd.f32 %v4399_v9, %v1475_v56  ;;  %v3249_v52 = vpop.f32.mrb[107].mxu0  ;;  %v3359_v21 = vpop.f32.mrb[107].mxu1 }
 0x1bc   :  { %v2004_v28 = vadd.f32 %v4399_v9, %v2003_v0 }
 0x1bd   :  { %2536 = vst.msk [vmem:[%s4795_s6 + $0x4] sm:$0xf] %vm2534_vm4, %v2844_v18  ;;  %v2241_v11 = vmax.f32 %v1664_v44, %v2192_v45  ;;  %v1665_v1 = vmax.f32 %v1476_v15, 0.0 }
 0x1be   :  { %v2193_v55 = vmax.f32 %v2004_v28, 0.0 }
 0x1bf   :  { %v2290_v60 = vmax.f32 %v3998_v38, %v2241_v11 }
 0x1c0   :  { %v2242_v2 = vmax.f32 %v1665_v1, %v2193_v55  ;;  %v1480_v57 = vpop.f32.mrb[108].mxu0  ;;  %v2008_v25 = vpop.f32.mrb[108].mxu1 }
 0x1c1   :  { %v2845_v34 = vpack.c.bf16 %v2290_v60, %v2290_v60  ;;  %v1481_v54 = vadd.f32 %v4399_v9, %v1480_v57  ;;  %v2009_v31 = vadd.f32 %v4399_v9, %v2008_v25  ;;  %v3252_v19 = vpop.f32.mrb[109].mxu0  ;;  %v3362_v49 = vpop.f32.mrb[109].mxu1 }
 0x1c2   :  { %v2291_v56 = vmax.f32 %v4006_v41, %v2242_v2  ;;  %v1483_v0 = vpop.f32.mrb[110].mxu0  ;;  %v2011_v52 = vpop.f32.mrb[110].mxu1 }
 0x1c3   :  { %2537 = vst.msk [vmem:[%s4795_s6 + $0x8] sm:$0xf] %vm2534_vm4, %v2845_v34  ;;  %v1666_v38 = vmax.f32 %v1481_v54, 0.0  ;;  %v2194_v18 = vmax.f32 %v2009_v31, 0.0  ;;  %v1484_v44 = vadd.f32 %v4399_v9, %v1483_v0  ;;  %v2012_v45 = vadd.f32 %v4399_v9, %v2011_v52  ;;  %v3253_v15 = vpop.f32.mrb[111].mxu0  ;;  %v3363_v21 = vpop.f32.mrb[111].mxu1 }
 0x1c4   :  { %v2846_v28 = vpack.c.bf16 %v2291_v56, %v2291_v56 }
 0x1c5   :  { %v2243_v11 = vmax.f32 %v1666_v38, %v2194_v18  ;;  %v1667_v1 = vmax.f32 %v1484_v44, 0.0  ;;  %v2195_v55 = vmax.f32 %v2012_v45, 0.0 }
 0x1c6   :  { %2538 = vst.msk [vmem:[%s4795_s6 + $0xc] sm:$0xf] %vm2534_vm4, %v2846_v28 }
 0x1c7   :  { %v2292_v41 = vmax.f32 %v4018_v58, %v2243_v11  ;;  %v2244_v60 = vmax.f32 %v1667_v1, %v2195_v55 }
 0x1c8   :  { %v1488_v2 = vpop.f32.mrb[112].mxu0  ;;  %v2016_v57 = vpop.f32.mrb[112].mxu1 }
 0x1c9   :  { %v2847_v25 = vpack.c.bf16 %v2292_v41, %v2292_v41  ;;  %v2293_v34 = vmax.f32 %v4026_v61, %v2244_v60  ;;  %v1489_v54 = vadd.f32 %v4399_v9, %v1488_v2  ;;  %v2017_v31 = vadd.f32 %v4399_v9, %v2016_v57  ;;  %v3256_v19 = vpop.f32.mrb[113].mxu0  ;;  %v3366_v49 = vpop.f32.mrb[113].mxu1 }
 0x1ca   :  { %v1491_v56 = vpop.f32.mrb[114].mxu0  ;;  %v2019_v0 = vpop.f32.mrb[114].mxu1 }
 0x1cb   :  { %2539 = vst.msk [vmem:[%s4795_s6 + $0x10] sm:$0xf] %vm2534_vm4, %v2847_v25  ;;  %v2848_v58 = vpack.c.bf16 %v2293_v34, %v2293_v34  ;;  %v1668_v52 = vmax.f32 %v1489_v54, 0.0  ;;  %v2196_v38 = vmax.f32 %v2017_v31, 0.0  ;;  %v1492_v18 = vadd.f32 %v4399_v9, %v1491_v56  ;;  %v3257_v44 = vpop.f32.mrb[115].mxu0  ;;  %v3367_v61 = vpop.f32.mrb[115].mxu1 }
 0x1cc   :  { %v2020_v45 = vadd.f32 %v4399_v9, %v2019_v0 }
 0x1cd   :  { %2540 = vst.msk [vmem:[%s4795_s6 + $0x14] sm:$0xf] %vm2534_vm4, %v2848_v58  ;;  %v2245_v15 = vmax.f32 %v1668_v52, %v2196_v38  ;;  %v1669_v21 = vmax.f32 %v1492_v18, 0.0 }
 0x1ce   :  { %v2197_v28 = vmax.f32 %v2020_v45, 0.0 }
 0x1cf   :  { %v2294_v11 = vmax.f32 %v4038_v16, %v2245_v15 }
 0x1d0   :  { %v2246_v1 = vmax.f32 %v1669_v21, %v2197_v28  ;;  %v1496_v55 = vpop.f32.mrb[116].mxu0  ;;  %v2024_v41 = vpop.f32.mrb[116].mxu1 }
 0x1d1   :  { %v2849_v60 = vpack.c.bf16 %v2294_v11, %v2294_v11  ;;  %v1497_v2 = vadd.f32 %v4399_v9, %v1496_v55  ;;  %v2025_v57 = vadd.f32 %v4399_v9, %v2024_v41  ;;  %v3260_v25 = vpop.f32.mrb[117].mxu0  ;;  %v3370_v34 = vpop.f32.mrb[117].mxu1 }
 0x1d2   :  { %v2295_v54 = vmax.f32 %v4046_v20, %v2246_v1  ;;  %v1499_v31 = vpop.f32.mrb[118].mxu0  ;;  %v2027_v19 = vpop.f32.mrb[118].mxu1 }
 0x1d3   :  { %2541 = vst.msk [vmem:[%s4795_s6 + $0x18] sm:$0xf] %vm2534_vm4, %v2849_v60  ;;  %v1670_v16 = vmax.f32 %v1497_v2, 0.0  ;;  %v2198_v49 = vmax.f32 %v2025_v57, 0.0  ;;  %v1500_v56 = vadd.f32 %v4399_v9, %v1499_v31  ;;  %v2028_v0 = vadd.f32 %v4399_v9, %v2027_v19  ;;  %v3261_v58 = vpop.f32.mrb[119].mxu0  ;;  %v3371_v52 = vpop.f32.mrb[119].mxu1 }
 0x1d4   :  { %v2850_v38 = vpack.c.bf16 %v2295_v54, %v2295_v54 }
 0x1d5   :  { %v2247_v18 = vmax.f32 %v1670_v16, %v2198_v49  ;;  %v1671_v44 = vmax.f32 %v1500_v56, 0.0  ;;  %v2199_v61 = vmax.f32 %v2028_v0, 0.0 }
 0x1d6   :  { %2542 = vst.msk [vmem:[%s4795_s6 + $0x1c] sm:$0xf] %vm2534_vm4, %v2850_v38 }
 0x1d7   :  { %v2296_v20 = vmax.f32 %v4058_v39, %v2247_v18  ;;  %v2248_v45 = vmax.f32 %v1671_v44, %v2199_v61 }
 0x1d8   :  { %v1504_v15 = vpop.f32.mrb[120].mxu0  ;;  %v2032_v21 = vpop.f32.mrb[120].mxu1 }
 0x1d9   :  { %v2851_v28 = vpack.c.bf16 %v2296_v20, %v2296_v20  ;;  %v2297_v11 = vmax.f32 %v4066_v43, %v2248_v45  ;;  %v1505_v1 = vadd.f32 %v4399_v9, %v1504_v15  ;;  %v2033_v55 = vadd.f32 %v4399_v9, %v2032_v21  ;;  %v3264_v41 = vpop.f32.mrb[121].mxu0  ;;  %v3374_v60 = vpop.f32.mrb[121].mxu1 }
 0x1da   :  { %v1507_v2 = vpop.f32.mrb[122].mxu0  ;;  %v2035_v57 = vpop.f32.mrb[122].mxu1 }
 0x1db   :  { %2543 = vst.msk [vmem:[%s4795_s6 + $0x20] sm:$0xf] %vm2534_vm4, %v2851_v28  ;;  %v2852_v39 = vpack.c.bf16 %v2297_v11, %v2297_v11  ;;  %v1672_v25 = vmax.f32 %v1505_v1, 0.0  ;;  %v2200_v34 = vmax.f32 %v2033_v55, 0.0  ;;  %v1508_v54 = vadd.f32 %v4399_v9, %v1507_v2  ;;  %v3265_v31 = vpop.f32.mrb[123].mxu0  ;;  %v3375_v43 = vpop.f32.mrb[123].mxu1 }
 0x1dc   :  { %v2036_v19 = vadd.f32 %v4399_v9, %v2035_v57 }
 0x1dd   :  { %2544 = vst.msk [vmem:[%s4795_s6 + $0x24] sm:$0xf] %vm2534_vm4, %v2852_v39  ;;  %v2249_v16 = vmax.f32 %v1672_v25, %v2200_v34  ;;  %v1673_v49 = vmax.f32 %v1508_v54, 0.0 }
 0x1de   :  { %v2201_v56 = vmax.f32 %v2036_v19, 0.0 }
 0x1df   :  { %v2298_v0 = vmax.f32 %v4078_v62, %v2249_v16 }
 0x1e0   :  { %v2250_v58 = vmax.f32 %v1673_v49, %v2201_v56  ;;  %v1512_v52 = vpop.f32.mrb[124].mxu0  ;;  %v2040_v38 = vpop.f32.mrb[124].mxu1 }
 0x1e1   :  { %v2853_v18 = vpack.c.bf16 %v2298_v0, %v2298_v0  ;;  %v1513_v44 = vadd.f32 %v4399_v9, %v1512_v52  ;;  %v2041_v61 = vadd.f32 %v4399_v9, %v2040_v38  ;;  %v3268_v20 = vpop.f32.mrb[125].mxu0  ;;  %v3378_v45 = vpop.f32.mrb[125].mxu1 }
 0x1e2   :  { %v2299_v15 = vmax.f32 %v4086_v3, %v2250_v58  ;;  %v1515_v21 = vpop.f32.mrb[126].mxu0  ;;  %v2043_v28 = vpop.f32.mrb[126].mxu1 }
 0x1e3   :  { %2545 = vst.msk [vmem:[%s4795_s6 + $0x28] sm:$0xf] %vm2534_vm4, %v2853_v18  ;;  %v1674_v62 = vmax.f32 %v1513_v44, 0.0  ;;  %v2202_v11 = vmax.f32 %v2041_v61, 0.0  ;;  %v1516_v1 = vadd.f32 %v4399_v9, %v1515_v21  ;;  %v2044_v55 = vadd.f32 %v4399_v9, %v2043_v28  ;;  %v3269_v41 = vpop.f32.mrb[127].mxu0  ;;  %v3379_v60 = vpop.f32.mrb[127].mxu1 }
 0x1e4   :  { %v2854_v2 = vpack.c.bf16 %v2299_v15, %v2299_v15 }
 0x1e5   :  { %v2251_v57 = vmax.f32 %v1674_v62, %v2202_v11  ;;  %v1675_v39 = vmax.f32 %v1516_v1, 0.0  ;;  %v2203_v25 = vmax.f32 %v2044_v55, 0.0 }
 0x1e6   :  { %2546 = vst.msk [vmem:[%s4795_s6 + $0x2c] sm:$0xf] %vm2534_vm4, %v2854_v2 }
 0x1e7   :  { %v2300_v3 = vmax.f32 %v4098_v24, %v2251_v57  ;;  %v2252_v34 = vmax.f32 %v1675_v39, %v2203_v25 }
 0x1e8   :  { %v1520_v54 = vpop.f32.mrb[128].mxu0  ;;  %v2048_v31 = vpop.f32.mrb[128].mxu1 }
 0x1e9   :  { %v2855_v43 = vpack.c.bf16 %v2300_v3, %v2300_v3  ;;  %v2301_v19 = vmax.f32 %v4106_v27, %v2252_v34  ;;  %v1521_v16 = vadd.f32 %v4399_v9, %v1520_v54  ;;  %v2049_v49 = vadd.f32 %v4399_v9, %v2048_v31  ;;  %v3272_v56 = vpop.f32.mrb[129].mxu0  ;;  %v3382_v0 = vpop.f32.mrb[129].mxu1 }
 0x1ea   :  { %v1523_v58 = vpop.f32.mrb[130].mxu0  ;;  %v2051_v52 = vpop.f32.mrb[130].mxu1 }
 0x1eb   :  { %2547 = vst.msk [vmem:[%s4795_s6 + $0x30] sm:$0xf] %vm2534_vm4, %v2855_v43  ;;  %v2856_v24 = vpack.c.bf16 %v2301_v19, %v2301_v19  ;;  %v1676_v38 = vmax.f32 %v1521_v16, 0.0  ;;  %v2204_v18 = vmax.f32 %v2049_v49, 0.0  ;;  %v1524_v44 = vadd.f32 %v4399_v9, %v1523_v58  ;;  %v3273_v61 = vpop.f32.mrb[131].mxu0  ;;  %v3383_v27 = vpop.f32.mrb[131].mxu1 }
 0x1ec   :  { %v2052_v20 = vadd.f32 %v4399_v9, %v2051_v52 }
 0x1ed   :  { %2548 = vst.msk [vmem:[%s4795_s6 + $0x34] sm:$0xf] %vm2534_vm4, %v2856_v24  ;;  %v2253_v45 = vmax.f32 %v1676_v38, %v2204_v18  ;;  %v1677_v15 = vmax.f32 %v1524_v44, 0.0 }
 0x1ee   :  { %v2205_v21 = vmax.f32 %v2052_v20, 0.0 }
 0x1ef   :  { %v2302_v28 = vmax.f32 %v4118_v48, %v2253_v45 }
 0x1f0   :  { %v2254_v62 = vmax.f32 %v1677_v15, %v2205_v21  ;;  %v1528_v11 = vpop.f32.mrb[132].mxu0  ;;  %v2056_v1 = vpop.f32.mrb[132].mxu1 }
 0x1f1   :  { %v2857_v55 = vpack.c.bf16 %v2302_v28, %v2302_v28  ;;  %v1529_v41 = vadd.f32 %v4399_v9, %v1528_v11  ;;  %v2057_v60 = vadd.f32 %v4399_v9, %v2056_v1  ;;  %v3276_v2 = vpop.f32.mrb[133].mxu0  ;;  %v3386_v57 = vpop.f32.mrb[133].mxu1 }
 0x1f2   :  { %v2303_v39 = vmax.f32 %v4126_v51, %v2254_v62  ;;  %v1531_v25 = vpop.f32.mrb[134].mxu0  ;;  %v2059_v3 = vpop.f32.mrb[134].mxu1 }
 0x1f3   :  { %2549 = vst.msk [vmem:[%s4795_s6 + $0x38] sm:$0xf] %vm2534_vm4, %v2857_v55  ;;  %v1678_v48 = vmax.f32 %v1529_v41, 0.0  ;;  %v2206_v34 = vmax.f32 %v2057_v60, 0.0  ;;  %v1532_v54 = vadd.f32 %v4399_v9, %v1531_v25  ;;  %v2060_v31 = vadd.f32 %v4399_v9, %v2059_v3  ;;  %v3277_v43 = vpop.f32.mrb[135].mxu0  ;;  %v3387_v19 = vpop.f32.mrb[135].mxu1 }
 0x1f4   :  { %v2858_v16 = vpack.c.bf16 %v2303_v39, %v2303_v39 }
 0x1f5   :  { %v2255_v49 = vmax.f32 %v1678_v48, %v2206_v34  ;;  %v1679_v56 = vmax.f32 %v1532_v54, 0.0  ;;  %v2207_v0 = vmax.f32 %v2060_v31, 0.0 }
 0x1f6   :  { %2550 = vst.msk [vmem:[%s4795_s6 + $0x3c] sm:$0xf] %vm2534_vm4, %v2858_v16 }
 0x1f7   :  { %v2304_v51 = vmax.f32 %v4138_v10, %v2255_v49  ;;  %v2256_v58 = vmax.f32 %v1679_v56, %v2207_v0 }
 0x1f8   :  { %v1536_v52 = vpop.f32.mrb[136].mxu0  ;;  %v2064_v24 = vpop.f32.mrb[136].mxu1 }
 0x1f9   :  { %v2859_v38 = vpack.c.bf16 %v2304_v51, %v2304_v51  ;;  %v2305_v18 = vmax.f32 %v4146_v13, %v2256_v58  ;;  %v1537_v44 = vadd.f32 %v4399_v9, %v1536_v52  ;;  %v2065_v61 = vadd.f32 %v4399_v9, %v2064_v24  ;;  %v3280_v27 = vpop.f32.mrb[137].mxu0  ;;  %v3390_v20 = vpop.f32.mrb[137].mxu1 }
 0x1fa   :  { %v1539_v45 = vpop.f32.mrb[138].mxu0  ;;  %v2067_v15 = vpop.f32.mrb[138].mxu1 }
 0x1fb   :  { %2551 = vst.msk [vmem:[%s4795_s6 + $0x40] sm:$0xf] %vm2534_vm4, %v2859_v38  ;;  %v2860_v10 = vpack.c.bf16 %v2305_v18, %v2305_v18  ;;  %v1680_v21 = vmax.f32 %v1537_v44, 0.0  ;;  %v2208_v28 = vmax.f32 %v2065_v61, 0.0  ;;  %v1540_v62 = vadd.f32 %v4399_v9, %v1539_v45  ;;  %v3281_v11 = vpop.f32.mrb[139].mxu0  ;;  %v3391_v13 = vpop.f32.mrb[139].mxu1 }
 0x1fc   :  { %v2068_v1 = vadd.f32 %v4399_v9, %v2067_v15 }
 0x1fd   :  { %2552 = vst.msk [vmem:[%s4795_s6 + $0x44] sm:$0xf] %vm2534_vm4, %v2860_v10  ;;  %v2257_v55 = vmax.f32 %v1680_v21, %v2208_v28  ;;  %v1681_v41 = vmax.f32 %v1540_v62, 0.0 }
 0x1fe   :  { %v2209_v60 = vmax.f32 %v2068_v1, 0.0 }
 0x1ff   :  { %v2306_v2 = vmax.f32 %v4158_v36, %v2257_v55 }
 0x200   :  { %v2258_v57 = vmax.f32 %v1681_v41, %v2209_v60  ;;  %v1544_v39 = vpop.f32.mrb[140].mxu0  ;;  %v2072_v25 = vpop.f32.mrb[140].mxu1 }
 0x201   :  { %v2861_v3 = vpack.c.bf16 %v2306_v2, %v2306_v2  ;;  %v1545_v48 = vadd.f32 %v4399_v9, %v1544_v39  ;;  %v2073_v34 = vadd.f32 %v4399_v9, %v2072_v25  ;;  %v3284_v54 = vpop.f32.mrb[141].mxu0  ;;  %v3394_v31 = vpop.f32.mrb[141].mxu1 }
 0x202   :  { %v2307_v43 = vmax.f32 %v4166_v42, %v2258_v57  ;;  %v1547_v19 = vpop.f32.mrb[142].mxu0  ;;  %v2075_v16 = vpop.f32.mrb[142].mxu1 }
 0x203   :  { %2553 = vst.msk [vmem:[%s4795_s6 + $0x48] sm:$0xf] %vm2534_vm4, %v2861_v3  ;;  %v1682_v36 = vmax.f32 %v1545_v48, 0.0  ;;  %v2210_v49 = vmax.f32 %v2073_v34, 0.0  ;;  %v1548_v56 = vadd.f32 %v4399_v9, %v1547_v19  ;;  %v2076_v0 = vadd.f32 %v4399_v9, %v2075_v16  ;;  %v3285_v51 = vpop.f32.mrb[143].mxu0  ;;  %v3395_v58 = vpop.f32.mrb[143].mxu1 }
 0x204   :  { %v2862_v52 = vpack.c.bf16 %v2307_v43, %v2307_v43 }
 0x205   :  { %v2259_v24 = vmax.f32 %v1682_v36, %v2210_v49  ;;  %v1683_v38 = vmax.f32 %v1548_v56, 0.0  ;;  %v2211_v18 = vmax.f32 %v2076_v0, 0.0 }
 0x206   :  { %2554 = vst.msk [vmem:[%s4795_s6 + $0x4c] sm:$0xf] %vm2534_vm4, %v2862_v52 }
 0x207   :  { %v2308_v42 = vmax.f32 %v4178_v4, %v2259_v24  ;;  %v2260_v44 = vmax.f32 %v1683_v38, %v2211_v18 }
 0x208   :  { %v1552_v61 = vpop.f32.mrb[144].mxu0  ;;  %v2080_v27 = vpop.f32.mrb[144].mxu1 }
 0x209   :  { %v2863_v20 = vpack.c.bf16 %v2308_v42, %v2308_v42  ;;  %v2309_v45 = vmax.f32 %v4186_v7, %v2260_v44  ;;  %v1553_v15 = vadd.f32 %v4399_v9, %v1552_v61  ;;  %v2081_v10 = vadd.f32 %v4399_v9, %v2080_v27  ;;  %v3288_v21 = vpop.f32.mrb[145].mxu0  ;;  %v3398_v28 = vpop.f32.mrb[145].mxu1 }
 0x20a   :  { %v1555_v62 = vpop.f32.mrb[146].mxu0  ;;  %v2083_v11 = vpop.f32.mrb[146].mxu1 }
 0x20b   :  { %2555 = vst.msk [vmem:[%s4795_s6 + $0x50] sm:$0xf] %vm2534_vm4, %v2863_v20  ;;  %v2864_v4 = vpack.c.bf16 %v2309_v45, %v2309_v45  ;;  %v1684_v13 = vmax.f32 %v1553_v15, 0.0  ;;  %v2212_v1 = vmax.f32 %v2081_v10, 0.0  ;;  %v1556_v55 = vadd.f32 %v4399_v9, %v1555_v62  ;;  %v3289_v41 = vpop.f32.mrb[147].mxu0  ;;  %v3399_v7 = vpop.f32.mrb[147].mxu1 }
 0x20c   :  { %v2084_v60 = vadd.f32 %v4399_v9, %v2083_v11 }
 0x20d   :  { %2556 = vst.msk [vmem:[%s4795_s6 + $0x54] sm:$0xf] %vm2534_vm4, %v2864_v4  ;;  %v2261_v2 = vmax.f32 %v1684_v13, %v2212_v1  ;;  %v1685_v57 = vmax.f32 %v1556_v55, 0.0 }
 0x20e   :  { %v2213_v39 = vmax.f32 %v2084_v60, 0.0 }
 0x20f   :  { %v2310_v25 = vmax.f32 %v4198_v32, %v2261_v2 }
 0x210   :  { %v2262_v3 = vmax.f32 %v1685_v57, %v2213_v39  ;;  %v1560_v48 = vpop.f32.mrb[148].mxu0  ;;  %v2088_v34 = vpop.f32.mrb[148].mxu1 }
 0x211   :  { %v2865_v54 = vpack.c.bf16 %v2310_v25, %v2310_v25  ;;  %v1561_v31 = vadd.f32 %v4399_v9, %v1560_v48  ;;  %v2089_v43 = vadd.f32 %v4399_v9, %v2088_v34  ;;  %v3292_v19 = vpop.f32.mrb[149].mxu0  ;;  %v3402_v16 = vpop.f32.mrb[149].mxu1 }
 0x212   :  { %v2311_v36 = vmax.f32 %v4206_v35, %v2262_v3  ;;  %v1563_v49 = vpop.f32.mrb[150].mxu0  ;;  %v2091_v56 = vpop.f32.mrb[150].mxu1 }
 0x213   :  { %2557 = vst.msk [vmem:[%s4795_s6 + $0x58] sm:$0xf] %vm2534_vm4, %v2865_v54  ;;  %v1686_v32 = vmax.f32 %v1561_v31, 0.0  ;;  %v2214_v0 = vmax.f32 %v2089_v43, 0.0  ;;  %v1564_v51 = vadd.f32 %v4399_v9, %v1563_v49  ;;  %v2092_v58 = vadd.f32 %v4399_v9, %v2091_v56  ;;  %v3293_v52 = vpop.f32.mrb[151].mxu0  ;;  %v3403_v24 = vpop.f32.mrb[151].mxu1 }
 0x214   :  { %v2866_v38 = vpack.c.bf16 %v2311_v36, %v2311_v36 }
 0x215   :  { %v2263_v18 = vmax.f32 %v1686_v32, %v2214_v0  ;;  %v1687_v42 = vmax.f32 %v1564_v51, 0.0  ;;  %v2215_v44 = vmax.f32 %v2092_v58, 0.0 }
 0x216   :  { %2558 = vst.msk [vmem:[%s4795_s6 + $0x5c] sm:$0xf] %vm2534_vm4, %v2866_v38 }
 0x217   :  { %v2312_v35 = vmax.f32 %v4218_v63, %v2263_v18  ;;  %v2264_v61 = vmax.f32 %v1687_v42, %v2215_v44 }
 0x218   :  { %v1568_v27 = vpop.f32.mrb[152].mxu0  ;;  %v2096_v20 = vpop.f32.mrb[152].mxu1 }
 0x219   :  { %v2867_v45 = vpack.c.bf16 %v2312_v35, %v2312_v35  ;;  %v2313_v15 = vmax.f32 %v4226_v6, %v2264_v61  ;;  %v1569_v10 = vadd.f32 %v4399_v9, %v1568_v27  ;;  %v2097_v21 = vadd.f32 %v4399_v9, %v2096_v20  ;;  %v3296_v28 = vpop.f32.mrb[153].mxu0  ;;  %v3406_v62 = vpop.f32.mrb[153].mxu1 }
 0x21a   :  { %v1571_v11 = vpop.f32.mrb[154].mxu0  ;;  %v2099_v4 = vpop.f32.mrb[154].mxu1 }
 0x21b   :  { %2559 = vst.msk [vmem:[%s4795_s6 + $0x60] sm:$0xf] %vm2534_vm4, %v2867_v45  ;;  %v2868_v63 = vpack.c.bf16 %v2313_v15, %v2313_v15  ;;  %v1688_v13 = vmax.f32 %v1569_v10, 0.0  ;;  %v2216_v1 = vmax.f32 %v2097_v21, 0.0  ;;  %v1572_v55 = vadd.f32 %v4399_v9, %v1571_v11  ;;  %v3297_v41 = vpop.f32.mrb[155].mxu0  ;;  %v3407_v6 = vpop.f32.mrb[155].mxu1 }
 0x21c   :  { %v2100_v7 = vadd.f32 %v4399_v9, %v2099_v4 }
 0x21d   :  { %2560 = vst.msk [vmem:[%s4795_s6 + $0x64] sm:$0xf] %vm2534_vm4, %v2868_v63  ;;  %v2265_v60 = vmax.f32 %v1688_v13, %v2216_v1  ;;  %v1689_v2 = vmax.f32 %v1572_v55, 0.0 }
 0x21e   :  { %v2217_v57 = vmax.f32 %v2100_v7, 0.0 }
 0x21f   :  { %v2314_v39 = vmax.f32 %v4238_v33, %v2265_v60 }
 0x220   :  { %v2266_v25 = vmax.f32 %v1689_v2, %v2217_v57  ;;  %v1576_v3 = vpop.f32.mrb[156].mxu0  ;;  %v2104_v48 = vpop.f32.mrb[156].mxu1 }
 0x221   :  { %v2869_v34 = vpack.c.bf16 %v2314_v39, %v2314_v39  ;;  %v1577_v54 = vadd.f32 %v4399_v9, %v1576_v3  ;;  %v2105_v31 = vadd.f32 %v4399_v9, %v2104_v48  ;;  %v3300_v43 = vpop.f32.mrb[157].mxu0  ;;  %v3410_v19 = vpop.f32.mrb[157].mxu1 }
 0x222   :  { %v2315_v16 = vmax.f32 %v4246_v40, %v2266_v25  ;;  %v1579_v36 = vpop.f32.mrb[158].mxu0  ;;  %v2107_v49 = vpop.f32.mrb[158].mxu1 }
 0x223   :  { %2561 = vst.msk [vmem:[%s4795_s6 + $0x68] sm:$0xf] %vm2534_vm4, %v2869_v34  ;;  %v1690_v33 = vmax.f32 %v1577_v54, 0.0  ;;  %v2218_v56 = vmax.f32 %v2105_v31, 0.0  ;;  %v1580_v32 = vadd.f32 %v4399_v9, %v1579_v36  ;;  %v2108_v0 = vadd.f32 %v4399_v9, %v2107_v49  ;;  %v3301_v51 = vpop.f32.mrb[159].mxu0  ;;  %v3411_v58 = vpop.f32.mrb[159].mxu1 }
 0x224   :  { %v2870_v52 = vpack.c.bf16 %v2315_v16, %v2315_v16 }
 0x225   :  { %v2267_v24 = vmax.f32 %v1690_v33, %v2218_v56  ;;  %v1691_v38 = vmax.f32 %v1580_v32, 0.0  ;;  %v2219_v18 = vmax.f32 %v2108_v0, 0.0 }
 0x226   :  { %2562 = vst.msk [vmem:[%s4795_s6 + $0x6c] sm:$0xf] %vm2534_vm4, %v2870_v52 }
 0x227   :  { %v2316_v40 = vmax.f32 %v4258_v8, %v2267_v24  ;;  %v2268_v42 = vmax.f32 %v1691_v38, %v2219_v18 }
 0x228   :  { %v1584_v44 = vpop.f32.mrb[160].mxu0  ;;  %v2112_v35 = vpop.f32.mrb[160].mxu1 }
 0x229   :  { %v2871_v61 = vpack.c.bf16 %v2316_v40, %v2316_v40  ;;  %v2317_v27 = vmax.f32 %v4266_v12, %v2268_v42  ;;  %v1585_v20 = vadd.f32 %v4399_v9, %v1584_v44  ;;  %v2113_v45 = vadd.f32 %v4399_v9, %v2112_v35  ;;  %v3304_v15 = vpop.f32.mrb[161].mxu0  ;;  %v3414_v10 = vpop.f32.mrb[161].mxu1 }
 0x22a   :  { %v1587_v21 = vpop.f32.mrb[162].mxu0  ;;  %v2115_v28 = vpop.f32.mrb[162].mxu1 }
 0x22b   :  { %2563 = vst.msk [vmem:[%s4795_s6 + $0x70] sm:$0xf] %vm2534_vm4, %v2871_v61  ;;  %v2872_v8 = vpack.c.bf16 %v2317_v27, %v2317_v27  ;;  %v1692_v62 = vmax.f32 %v1585_v20, 0.0  ;;  %v2220_v11 = vmax.f32 %v2113_v45, 0.0  ;;  %v1588_v4 = vadd.f32 %v4399_v9, %v1587_v21  ;;  %v3305_v63 = vpop.f32.mrb[163].mxu0  ;;  %v3415_v12 = vpop.f32.mrb[163].mxu1 }
 0x22c   :  { %v2116_v13 = vadd.f32 %v4399_v9, %v2115_v28 }
 0x22d   :  { %2564 = vst.msk [vmem:[%s4795_s6 + $0x74] sm:$0xf] %vm2534_vm4, %v2872_v8  ;;  %v2269_v1 = vmax.f32 %v1692_v62, %v2220_v11  ;;  %v1693_v55 = vmax.f32 %v1588_v4, 0.0 }
 0x22e   :  { %v2221_v41 = vmax.f32 %v2116_v13, 0.0 }
 0x22f   :  { %v2318_v6 = vmax.f32 %v4278_v46, %v2269_v1 }
 0x230   :  { %v2270_v7 = vmax.f32 %v1693_v55, %v2221_v41  ;;  %v1592_v60 = vpop.f32.mrb[164].mxu0  ;;  %v2120_v2 = vpop.f32.mrb[164].mxu1 }
 0x231   :  { %v2873_v57 = vpack.c.bf16 %v2318_v6, %v2318_v6  ;;  %v1593_v39 = vadd.f32 %v4399_v9, %v1592_v60  ;;  %v2121_v25 = vadd.f32 %v4399_v9, %v2120_v2  ;;  %v3308_v3 = vpop.f32.mrb[165].mxu0  ;;  %v3418_v48 = vpop.f32.mrb[165].mxu1 }
 0x232   :  { %v2319_v34 = vmax.f32 %v4286_v50, %v2270_v7  ;;  %v1595_v54 = vpop.f32.mrb[166].mxu0  ;;  %v2123_v31 = vpop.f32.mrb[166].mxu1 }
 0x233   :  { %2565 = vst.msk [vmem:[%s4795_s6 + $0x78] sm:$0xf] %vm2534_vm4, %v2873_v57  ;;  %v1694_v46 = vmax.f32 %v1593_v39, 0.0  ;;  %v2222_v43 = vmax.f32 %v2121_v25, 0.0  ;;  %v1596_v19 = vadd.f32 %v4399_v9, %v1595_v54  ;;  %v2124_v16 = vadd.f32 %v4399_v9, %v2123_v31  ;;  %v3309_v36 = vpop.f32.mrb[167].mxu0  ;;  %v3419_v49 = vpop.f32.mrb[167].mxu1 }
 0x234   :  { %v2874_v33 = vpack.c.bf16 %v2319_v34, %v2319_v34 }
 0x235   :  { %v2271_v56 = vmax.f32 %v1694_v46, %v2222_v43  ;;  %v1695_v32 = vmax.f32 %v1596_v19, 0.0  ;;  %v2223_v0 = vmax.f32 %v2124_v16, 0.0 }
 0x236   :  { %2566 = vst.msk [vmem:[%s4795_s6 + $0x7c] sm:$0xf] %vm2534_vm4, %v2874_v33 }
 0x237   :  { %v2320_v50 = vmax.f32 %v4298_v22, %v2271_v56  ;;  %v2272_v51 = vmax.f32 %v1695_v32, %v2223_v0 }
 0x238   :  { %v1600_v58 = vpop.f32.mrb[168].mxu0  ;;  %v2128_v52 = vpop.f32.mrb[168].mxu1 }
 0x239   :  { %v2875_v24 = vpack.c.bf16 %v2320_v50, %v2320_v50  ;;  %v2321_v38 = vmax.f32 %v4306_v26, %v2272_v51  ;;  %v1601_v18 = vadd.f32 %v4399_v9, %v1600_v58  ;;  %v2129_v40 = vadd.f32 %v4399_v9, %v2128_v52  ;;  %v3312_v42 = vpop.f32.mrb[169].mxu0  ;;  %v3422_v44 = vpop.f32.mrb[169].mxu1 }
 0x23a   :  { %v1603_v35 = vpop.f32.mrb[170].mxu0  ;;  %v2131_v61 = vpop.f32.mrb[170].mxu1 }
 0x23b   :  { %2567 = vst.msk [vmem:[%s4795_s6 + $0x80] sm:$0xf] %vm2534_vm4, %v2875_v24  ;;  %v2876_v22 = vpack.c.bf16 %v2321_v38, %v2321_v38  ;;  %v1696_v27 = vmax.f32 %v1601_v18, 0.0  ;;  %v2224_v20 = vmax.f32 %v2129_v40, 0.0  ;;  %v1604_v45 = vadd.f32 %v4399_v9, %v1603_v35  ;;  %v3313_v15 = vpop.f32.mrb[171].mxu0  ;;  %v3423_v26 = vpop.f32.mrb[171].mxu1 }
 0x23c   :  { %v2132_v10 = vadd.f32 %v4399_v9, %v2131_v61 }
 0x23d   :  { %2568 = vst.msk [vmem:[%s4795_s6 + $0x84] sm:$0xf] %vm2534_vm4, %v2876_v22  ;;  %v2273_v21 = vmax.f32 %v1696_v27, %v2224_v20  ;;  %v1697_v28 = vmax.f32 %v1604_v45, 0.0 }
 0x23e   :  { %v2225_v8 = vmax.f32 %v2132_v10, 0.0 }
 0x23f   :  { %v2322_v62 = vmax.f32 %v4318_v59, %v2273_v21 }
 0x240   :  { %v2274_v11 = vmax.f32 %v1697_v28, %v2225_v8  ;;  %v1608_v4 = vpop.f32.mrb[172].mxu0  ;;  %v2136_v63 = vpop.f32.mrb[172].mxu1 }
 0x241   :  { %v2877_v12 = vpack.c.bf16 %v2322_v62, %v2322_v62  ;;  %v1609_v13 = vadd.f32 %v4399_v9, %v1608_v4  ;;  %v2137_v1 = vadd.f32 %v4399_v9, %v2136_v63  ;;  %v3316_v55 = vpop.f32.mrb[173].mxu0  ;;  %v3426_v41 = vpop.f32.mrb[173].mxu1 }
 0x242   :  { %v2323_v6 = vmax.f32 %v4326_v5, %v2274_v11  ;;  %v1611_v7 = vpop.f32.mrb[174].mxu0  ;;  %v2139_v60 = vpop.f32.mrb[174].mxu1 }
 0x243   :  { %2569 = vst.msk [vmem:[%s4795_s6 + $0x88] sm:$0xf] %vm2534_vm4, %v2877_v12  ;;  %v1698_v59 = vmax.f32 %v1609_v13, 0.0  ;;  %v2226_v2 = vmax.f32 %v2137_v1, 0.0  ;;  %v1612_v57 = vadd.f32 %v4399_v9, %v1611_v7  ;;  %v2140_v39 = vadd.f32 %v4399_v9, %v2139_v60  ;;  %v3317_v25 = vpop.f32.mrb[175].mxu0  ;;  %v3427_v3 = vpop.f32.mrb[175].mxu1 }
 0x244   :  { %v2878_v48 = vpack.c.bf16 %v2323_v6, %v2323_v6  ;;  %v4702_v9 = vld [vmem:[%s4794_s5] ss:$0 sm:$0xff] }
 0x245   :  { %v2275_v34 = vmax.f32 %v1698_v59, %v2226_v2  ;;  %v1699_v54 = vmax.f32 %v1612_v57, 0.0  ;;  %v2227_v31 = vmax.f32 %v2140_v39, 0.0 }
 0x246   :  { %2570 = vst.msk [vmem:[%s4795_s6 + $0x8c] sm:$0xf] %vm2534_vm4, %v2878_v48 }
 0x247   :  { %v2324_v5 = vmax.f32 %v4338_v47, %v2275_v34  ;;  %v2276_v46 = vmax.f32 %v1699_v54, %v2227_v31 }
 0x248   :  { %v1616_v43 = vpop.f32.mrb[176].mxu0  ;;  %v2144_v19 = vpop.f32.mrb[176].mxu1 }
 0x249   :  { %v2879_v16 = vpack.c.bf16 %v2324_v5, %v2324_v5  ;;  %v2325_v36 = vmax.f32 %v4346_v53, %v2276_v46  ;;  %v1617_v49 = vadd.f32 %v4702_v9, %v1616_v43  ;;  %v2145_v33 = vadd.f32 %v4702_v9, %v2144_v19  ;;  %v3320_v56 = vpop.f32.mrb[177].mxu0  ;;  %v3430_v32 = vpop.f32.mrb[177].mxu1 }
 0x24a   :  { %v1619_v0 = vpop.f32.mrb[178].mxu0  ;;  %v2147_v50 = vpop.f32.mrb[178].mxu1 }
 0x24b   :  { %2571 = vst.msk [vmem:[%s4795_s6 + $0x90] sm:$0xf] %vm2534_vm4, %v2879_v16  ;;  %v2880_v47 = vpack.c.bf16 %v2325_v36, %v2325_v36  ;;  %v1700_v53 = vmax.f32 %v1617_v49, 0.0  ;;  %v2228_v51 = vmax.f32 %v2145_v33, 0.0  ;;  %v1620_v58 = vadd.f32 %v4702_v9, %v1619_v0  ;;  %v3321_v52 = vpop.f32.mrb[179].mxu0  ;;  %v3431_v24 = vpop.f32.mrb[179].mxu1 }
 0x24c   :  { %v2148_v38 = vadd.f32 %v4702_v9, %v2147_v50 }
 0x24d   :  { %2572 = vst.msk [vmem:[%s4795_s6 + $0x94] sm:$0xf] %vm2534_vm4, %v2880_v47  ;;  %v2277_v18 = vmax.f32 %v1700_v53, %v2228_v51  ;;  %v1701_v40 = vmax.f32 %v1620_v58, 0.0  ;;  %v4801_v51 = vld [vmem:[#allocation2_spill] sm:$0xff] }
 0x24e   :  { %v2229_v42 = vmax.f32 %v2148_v38, 0.0 }
 0x24f   :  { %v2326_v44 = vmax.f32 %v4358_v30, %v2277_v18 }
 0x250   :  { %v2278_v35 = vmax.f32 %v1701_v40, %v2229_v42  ;;  %v1624_v61 = vpop.f32.mrb[180].mxu0  ;;  %v2152_v22 = vpop.f32.mrb[180].mxu1 }
 0x251   :  { %v2881_v27 = vpack.c.bf16 %v2326_v44, %v2326_v44  ;;  %v1625_v20 = vadd.f32 %v4702_v9, %v1624_v61  ;;  %v2153_v45 = vadd.f32 %v4702_v9, %v2152_v22  ;;  %v3324_v15 = vpop.f32.mrb[181].mxu0  ;;  %v3434_v26 = vpop.f32.mrb[181].mxu1 }
 0x252   :  { %v2327_v10 = vmax.f32 %v4366_v37, %v2278_v35  ;;  %v1627_v21 = vpop.f32.mrb[182].mxu0  ;;  %v2155_v28 = vpop.f32.mrb[182].mxu1 }
 0x253   :  { %2573 = vst.msk [vmem:[%s4795_s6 + $0x98] sm:$0xf] %vm2534_vm4, %v2881_v27  ;;  %v1702_v30 = vmax.f32 %v1625_v20, 0.0  ;;  %v2230_v8 = vmax.f32 %v2153_v45, 0.0  ;;  %v1628_v62 = vadd.f32 %v4702_v9, %v1627_v21  ;;  %v2156_v11 = vadd.f32 %v4702_v9, %v2155_v28  ;;  %v3325_v4 = vpop.f32.mrb[183].mxu0  ;;  %v3435_v63 = vpop.f32.mrb[183].mxu1 }
 0x254   :  { %v2882_v12 = vpack.c.bf16 %v2327_v10, %v2327_v10  ;;  %v4802_v20 = vld [vmem:[#allocation3_spill] sm:$0xff]  ;;  %v4803_v28 = vld [vmem:[#allocation4_spill] sm:$0xff] }
 0x255   :  { %v2279_v13 = vmax.f32 %v1702_v30, %v2230_v8  ;;  %v1703_v1 = vmax.f32 %v1628_v62, 0.0  ;;  %v2231_v55 = vmax.f32 %v2156_v11, 0.0 }
 0x256   :  { %2574 = vst.msk [vmem:[%s4795_s6 + $0x9c] sm:$0xf] %vm2534_vm4, %v2882_v12 }
 0x257   :  { %v2328_v37 = vmax.f32 %v4378_v23, %v2279_v13  ;;  %v2280_v41 = vmax.f32 %v1703_v1, %v2231_v55 }
 0x258   :  { %v1632_v6 = vpop.f32.mrb[184].mxu0  ;;  %v2160_v7 = vpop.f32.mrb[184].mxu1 }
 0x259   :  { %v2883_v60 = vpack.c.bf16 %v2328_v37, %v2328_v37  ;;  %v2329_v59 = vmax.f32 %v4386_v29, %v2280_v41  ;;  %v1633_v2 = vadd.f32 %v4702_v9, %v1632_v6  ;;  %v2161_v57 = vadd.f32 %v4702_v9, %v2160_v7  ;;  %v3328_v39 = vpop.f32.mrb[185].mxu0  ;;  %v3438_v25 = vpop.f32.mrb[185].mxu1 }
 0x25a   :  { %v1635_v3 = vpop.f32.mrb[186].mxu0  ;;  %v2163_v48 = vpop.f32.mrb[186].mxu1 }
 0x25b   :  { %2575 = vst.msk [vmem:[%s4795_s6 + $0xa0] sm:$0xf] %vm2534_vm4, %v2883_v60  ;;  %v2884_v23 = vpack.c.bf16 %v2329_v59, %v2329_v59  ;;  %v1704_v34 = vmax.f32 %v1633_v2, 0.0  ;;  %v2232_v54 = vmax.f32 %v2161_v57, 0.0  ;;  %v1636_v31 = vadd.f32 %v4702_v9, %v1635_v3  ;;  %v3329_v5 = vpop.f32.mrb[187].mxu0  ;;  %v3439_v29 = vpop.f32.mrb[187].mxu1 }
 0x25c   :  { %v2164_v46 = vadd.f32 %v4702_v9, %v2163_v48  ;;  %v4804_v5 = vld [vmem:[#allocation5_spill] sm:$0xff] }
 0x25d   :  { %2576 = vst.msk [vmem:[%s4795_s6 + $0xa4] sm:$0xf] %vm2534_vm4, %v2884_v23  ;;  %v2281_v43 = vmax.f32 %v1704_v34, %v2232_v54  ;;  %v1705_v19 = vmax.f32 %v1636_v31, 0.0 }
 0x25e   :  { %v2233_v16 = vmax.f32 %v2164_v46, 0.0 }
 0x25f   :  { %v2330_v36 = vmax.f32 %v4403_v17, %v2281_v43 }
 0x260   :  { %v2282_v49 = vmax.f32 %v1705_v19, %v2233_v16  ;;  %v1640_v33 = vpop.f32.mrb[188].mxu0  ;;  %v2168_v56 = vpop.f32.mrb[188].mxu1 }
 0x261   :  { %v2885_v32 = vpack.c.bf16 %v2330_v36, %v2330_v36  ;;  %v1641_v0 = vadd.f32 %v4702_v9, %v1640_v33  ;;  %v2169_v50 = vadd.f32 %v4702_v9, %v2168_v56  ;;  %v3332_v47 = vpop.f32.mrb[189].mxu0  ;;  %v3442_v53 = vpop.f32.mrb[189].mxu1 }
 0x262   :  { %v2331_v58 = vmax.f32 %v4801_v51, %v2282_v49  ;;  %v1643_v52 = vpop.f32.mrb[190].mxu0  ;;  %v2171_v24 = vpop.f32.mrb[190].mxu1 }
 0x263   :  { %2577 = vst.msk [vmem:[%s4795_s6 + $0xa8] sm:$0xf] %vm2534_vm4, %v2885_v32  ;;  %v1706_v17 = vmax.f32 %v1641_v0, 0.0  ;;  %v2234_v38 = vmax.f32 %v2169_v50, 0.0  ;;  %v1644_v18 = vadd.f32 %v4702_v9, %v1643_v52  ;;  %v2172_v40 = vadd.f32 %v4702_v9, %v2171_v24  ;;  %v3333_v42 = vpop.f32.mrb[191].mxu0  ;;  %v3443_v44 = vpop.f32.mrb[191].mxu1 }
 0x264   :  { %v2886_v35 = vpack.c.bf16 %v2331_v58, %v2331_v58 }
 0x265   :  { %v2283_v61 = vmax.f32 %v1706_v17, %v2234_v38  ;;  %v1707_v22 = vmax.f32 %v1644_v18, 0.0  ;;  %v2235_v27 = vmax.f32 %v2172_v40, 0.0 }
 0x266   :  { %2578 = vst.msk [vmem:[%s4795_s6 + $0xac] sm:$0xf] %vm2534_vm4, %v2886_v35 }
 0x267   :  { %v2332_v45 = vmax.f32 %v4802_v20, %v2283_v61  ;;  %v2284_v15 = vmax.f32 %v1707_v22, %v2235_v27 }
 0x268   :  { %v1648_v26 = vpop.f32.mrb[192].mxu0  ;;  %v2176_v10 = vpop.f32.mrb[192].mxu1 }
 0x269   :  { %v2887_v21 = vpack.c.bf16 %v2332_v45, %v2332_v45  ;;  %v2333_v30 = vmax.f32 %v4803_v28, %v2284_v15  ;;  %v1649_v8 = vadd.f32 %v4702_v9, %v1648_v26  ;;  %v2177_v62 = vadd.f32 %v4702_v9, %v2176_v10  ;;  %v3336_v11 = vpop.f32.mrb[193].mxu0  ;;  %v3446_v4 = vpop.f32.mrb[193].mxu1 }
 0x26a   :  { %v1651_v63 = vpop.f32.mrb[194].mxu0  ;;  %v2179_v12 = vpop.f32.mrb[194].mxu1 }
 0x26b   :  { %2579 = vst.msk [vmem:[%s4795_s6 + $0xb0] sm:$0xf] %vm2534_vm4, %v2887_v21  ;;  %v2888_v13 = vpack.c.bf16 %v2333_v30, %v2333_v30  ;;  %v1708_v1 = vmax.f32 %v1649_v8, 0.0  ;;  %v2236_v55 = vmax.f32 %v2177_v62, 0.0  ;;  %v1652_v37 = vadd.f32 %v4702_v9, %v1651_v63  ;;  %v3337_v41 = vpop.f32.mrb[195].mxu0  ;;  %v3447_v6 = vpop.f32.mrb[195].mxu1 }
 0x26c   :  { %v2180_v7 = vadd.f32 %v4702_v9, %v2179_v12 }
 0x26d   :  { %2580 = vst.msk [vmem:[%s4795_s6 + $0xb4] sm:$0xf] %vm2534_vm4, %v2888_v13  ;;  %v2285_v60 = vmax.f32 %v1708_v1, %v2236_v55  ;;  %v1709_v59 = vmax.f32 %v1652_v37, 0.0 }
 0x26e   :  { %v2237_v2 = vmax.f32 %v2180_v7, 0.0 }
 0x26f   :  { %v2334_v57 = vmax.f32 %v4433_v14, %v2285_v60 }
 0x270   :  { %v2286_v39 = vmax.f32 %v1709_v59, %v2237_v2  ;;  %v1656_v25 = vpop.f32.mrb[196].mxu0  ;;  %v2184_v3 = vpop.f32.mrb[196].mxu1 }
 0x271   :  { %v2889_v48 = vpack.c.bf16 %v2334_v57, %v2334_v57  ;;  %v1657_v23 = vadd.f32 %v4702_v9, %v1656_v25  ;;  %v2185_v34 = vadd.f32 %v4702_v9, %v2184_v3  ;;  %v3340_v54 = vpop.f32.mrb[197].mxu0  ;;  %v3450_v31 = vpop.f32.mrb[197].mxu1  ;;  %v4805_v9 = vld [vmem:[#allocation6_spill] sm:$0xff] }
 0x272   :  { %v2335_v29 = vmax.f32 %v4804_v5, %v2286_v39  ;;  %v1659_v46 = vpop.f32.mrb[198].mxu0  ;;  %v2187_v43 = vpop.f32.mrb[198].mxu1 }
 0x273   :  { %2581 = vst.msk [vmem:[%s4795_s6 + $0xb8] sm:$0xf] %vm2534_vm4, %v2889_v48  ;;  %v1710_v14 = vmax.f32 %v1657_v23, 0.0  ;;  %v2238_v19 = vmax.f32 %v2185_v34, 0.0  ;;  %v3341_v16 = vpop.f32.mrb[199].mxu0  ;;  %v3451_v36 = vpop.f32.mrb[199].mxu1 }
 0x274   :  { %v2890_v49 = vpack.c.bf16 %v2335_v29, %v2335_v29 }
 0x275   :  { %v2287_v33 = vmax.f32 %v1710_v14, %v2238_v19 }
 0x276   :  { %2582 = vst.msk [vmem:[%s4795_s6 + $0xbc] sm:$0xf] %vm2534_vm4, %v2890_v49 }
 0x277   :  { %v2336_v56 = vmax.f32 %v4805_v9, %v2287_v33 }
 0x279   :  { %v2891_v32 = vpack.c.bf16 %v2336_v56, %v2336_v56 }
 0x27b   :  { %2583 = vst.msk [vmem:[%s4795_s6 + $0xc0] sm:$0xf] %vm2534_vm4, %v2891_v32 }

// kernel: forward.4
= control target key start
LH: loop header
LB: loop body
LE: loop exit
PB: predicated region body
PF: predicated region fallthrough
CT: control target
= control target key end

     0   :  { %v795_v0 = vmov 0   ;;  %vm147_vm0 = vcmask 179200   ;;  %vm160_vm1 = vcmask 1042432   ;;  %vm654_vm2 = vcmask 125952   ;;  %s1142_s4 = inlined_call_operand.vmem [shape: bf16[150,16], index: 4, kind: input, shape index: {}]   ;;  %s1143_s0 = inlined_call_operand.vmem [shape: bf16[50,150], index: 0, kind: input, shape index: {}]   ;;  %s1144_s1 = inlined_call_operand.vmem [shape: bf16[50,150], index: 1, kind: input, shape index: {}]   ;;  %s1145_s2 = inlined_call_operand.vmem [shape: bf16[50,150], index: 2, kind: input, shape index: {}]   ;;  %s1146_s3 = inlined_call_operand.vmem [shape: bf16[50,150], index: 3, kind: input, shape index: {}]   ;;  %s1147_s5 = inlined_call_operand.vmem [shape: f32[1,16], index: 5, kind: input, shape index: {}]   ;;  %s1148_s6 = inlined_call_operand.vmem [shape: bf16[50,16], index: 6, kind: output, shape index: {}]  }
   0x1   :  { %164 = vmatprep.subr.bf16.mxu0 %v795_v0  ;;  %287 = vmatprep.subr.bf16.mxu1 %v795_v0  ;;  %v836_v1 = vld [vmem:[%s1142_s4] sm:$0xff]   ;;  %v843_v2 = vld [vmem:[%s1142_s4 + $0x8] sm:$0xff]   ;;  %v852_v3 = vld [vmem:[%s1142_s4 + $0x10] sm:$0xff]   ;;  %vm661_vm3 = vcmask 122880  }
   0x2   :  { %165 = vmatpush1.bf16.msra.mxu0 %v836_v1  ;;  %288 = vmatpush1.bf16.msra.mxu1 %v836_v1  ;;  %v861_v4 = vld [vmem:[%s1142_s4 + $0x18] sm:$0xff]   ;;  %v753_v5 = vld [vmem:[%s1143_s0 + $0x4] ss:$8 sps:$4 sm:$0xff]   ;;  %v896_v9 = vld [vmem:[%s1142_s4 + $0x30] sm:$0xff]  }
   0x3   :  { %166 = vmatprep.subr.bf16.mxu0 %v795_v0  ;;  %289 = vmatprep.subr.bf16.mxu1 %v795_v0  ;;  %v756_v6 = vld [vmem:[%s1144_s1 + $0x4] ss:$8 sps:$4 sm:$0xff]   ;;  %v905_v10 = vld [vmem:[%s1142_s4 + $0x38] sm:$0xff]   ;;  %v750_v12 = vld [vmem:[%s1142_s4 + $0x48] ss:$0 sps:$4 sm:$0x77]  }
   0x4   :  { %686 = vmatprep.mubr.msk.bf16.mxu0 %vm147_vm0, %v753_v5  ;;  %v877_v7 = vld [vmem:[%s1142_s4 + $0x20] sm:$0xff]   ;;  %698 = vmatprep.mubr.msk.bf16.mxu1 %vm147_vm0, %v756_v6  ;;  %v887_v8 = vld [vmem:[%s1142_s4 + $0x28] sm:$0xff]   ;;  %v925_v13 = vsel %vm160_vm1, %v750_v12, 0  ;;  %v757_v16 = vld [vmem:[%s1143_s0 + $0x14] ss:$8 sps:$4 sm:$0xff]  }
   0x5   :  { %v914_v11 = vld [vmem:[%s1142_s4 + $0x40] sm:$0xff]   ;;  %v759_v17 = vld [vmem:[%s1144_s1 + $0x14] ss:$8 sps:$4 sm:$0xff]   ;;  %v761_v18 = vld [vmem:[%s1143_s0 + $0x10] ss:$8 sps:$4 sm:$0xff]  }
   0x6   :  { %167 = vmatpush1.bf16.msra.mxu0 %v843_v2  ;;  %290 = vmatpush1.bf16.msra.mxu1 %v843_v2  ;;  %v751_v14 = vld [vmem:[%s1143_s0] ss:$8 sps:$4 sm:$0xff]   ;;  %v762_v19 = vld [vmem:[%s1144_s1 + $0x10] ss:$8 sps:$4 sm:$0xff]   ;;  %v763_v20 = vld [vmem:[%s1143_s0 + $0x24] ss:$8 sps:$4 sm:$0xff]  }
   0x7   :  { %168 = vmatprep.subr.bf16.mxu0 %v795_v0  ;;  %291 = vmatprep.subr.bf16.mxu1 %v795_v0  ;;  %v754_v15 = vld [vmem:[%s1144_s1] ss:$8 sps:$4 sm:$0xff]   ;;  %v765_v21 = vld [vmem:[%s1144_s1 + $0x24] ss:$8 sps:$4 sm:$0xff]   ;;  %v50_v24 = vld [vmem:[%s1143_s0 + $0x30] sm:$0x11] }
   0x8   :  { %v767_v22 = vld [vmem:[%s1143_s0 + $0x20] ss:$8 sps:$4 sm:$0xff]   ;;  %v241_v25 = vld [vmem:[%s1144_s1 + $0x30] sm:$0x11]  ;;  %v675_v26 = vcombine.high %v50_v24, %v50_v24  ;;  %v674_v28 = vcombine.low %v50_v24, %v50_v24  ;;  %v775_v30 = vld [vmem:[%s1145_s2 + $0x4] ss:$8 sps:$4 sm:$0xff]  }
   0x9   :  { %v768_v23 = vld [vmem:[%s1144_s1 + $0x20] ss:$8 sps:$4 sm:$0xff]   ;;  %v697_v27 = vcombine.high %v241_v25, %v241_v25  ;;  %v696_v29 = vcombine.low %v241_v25, %v241_v25  ;;  %v778_v31 = vld [vmem:[%s1146_s3 + $0x4] ss:$8 sps:$4 sm:$0xff]   ;;  %v779_v34 = vld [vmem:[%s1145_s2 + $0x14] ss:$8 sps:$4 sm:$0xff]  }
   0xa   :  { %169 = vmatpush1.bf16.msra.mxu0 %v852_v3  ;;  %292 = vmatpush1.bf16.msra.mxu1 %v852_v3  ;;  %v773_v32 = vld [vmem:[%s1145_s2] ss:$8 sps:$4 sm:$0xff]   ;;  %v781_v35 = vld [vmem:[%s1146_s3 + $0x14] ss:$8 sps:$4 sm:$0xff]   ;;  %v783_v36 = vld [vmem:[%s1145_s2 + $0x10] ss:$8 sps:$4 sm:$0xff]  }
   0xb   :  { %170 = vmatprep.subr.bf16.mxu0 %v795_v0  ;;  %293 = vmatprep.subr.bf16.mxu1 %v795_v0  ;;  %v776_v33 = vld [vmem:[%s1146_s3] ss:$8 sps:$4 sm:$0xff]   ;;  %v784_v37 = vld [vmem:[%s1146_s3 + $0x10] ss:$8 sps:$4 sm:$0xff]   ;;  %v785_v38 = vld [vmem:[%s1145_s2 + $0x24] ss:$8 sps:$4 sm:$0xff]  }
   0xc   :  { %v787_v39 = vld [vmem:[%s1146_s3 + $0x24] ss:$8 sps:$4 sm:$0xff]   ;;  %v371_v40 = vld [vmem:[%s1145_s2 + $0x30] sm:$0x11]  ;;  %v789_v42 = vld [vmem:[%s1145_s2 + $0x20] ss:$8 sps:$4 sm:$0xff]  }
   0xd   :  { %v494_v41 = vld [vmem:[%s1146_s3 + $0x30] sm:$0x11]  ;;  %v790_v43 = vld [vmem:[%s1146_s3 + $0x20] ss:$8 sps:$4 sm:$0xff]   ;;  %v709_v44 = vcombine.high %v371_v40, %v371_v40  ;;  %v708_v46 = vcombine.low %v371_v40, %v371_v40 }
   0xe   :  { %171 = vmatpush1.bf16.msra.mxu0 %v861_v4  ;;  %294 = vmatpush1.bf16.msra.mxu1 %v861_v4  ;;  %v721_v45 = vcombine.high %v494_v41, %v494_v41  ;;  %v720_v47 = vcombine.low %v494_v41, %v494_v41  ;;  %v1064_v48 = vld [vmem:[%s1147_s5] ss:$0 sm:$0xff] }
   0xf   :  { %172 = vmatprep.subr.bf16.mxu0 %v795_v0  ;;  %295 = vmatprep.subr.bf16.mxu1 %v795_v0 }
  0x12   :  { %173 = vmatpush1.bf16.msra.mxu0 %v877_v7  ;;  %296 = vmatpush1.bf16.msra.mxu1 %v877_v7 }
  0x13   :  { %174 = vmatprep.subr.bf16.mxu0 %v795_v0  ;;  %297 = vmatprep.subr.bf16.mxu1 %v795_v0 }
  0x16   :  { %175 = vmatpush1.bf16.msra.mxu0 %v887_v8  ;;  %298 = vmatpush1.bf16.msra.mxu1 %v887_v8 }
  0x17   :  { %176 = vmatprep.subr.bf16.mxu0 %v795_v0  ;;  %299 = vmatprep.subr.bf16.mxu1 %v795_v0 }
  0x1a   :  { %177 = vmatpush1.bf16.msra.mxu0 %v896_v9  ;;  %300 = vmatpush1.bf16.msra.mxu1 %v896_v9 }
  0x1b   :  { %178 = vmatprep.subr.bf16.mxu0 %v795_v0  ;;  %301 = vmatprep.subr.bf16.mxu1 %v795_v0 }
  0x1e   :  { %179 = vmatpush1.bf16.msra.mxu0 %v905_v10  ;;  %302 = vmatpush1.bf16.msra.mxu1 %v905_v10 }
  0x1f   :  { %180 = vmatprep.subr.bf16.mxu0 %v795_v0  ;;  %303 = vmatprep.subr.bf16.mxu1 %v795_v0 }
  0x22   :  { %181 = vmatpush1.bf16.msra.mxu0 %v914_v11  ;;  %304 = vmatpush1.bf16.msra.mxu1 %v914_v11 }
  0x23   :  { %182 = vmatprep.subr.bf16.mxu0 %v795_v0  ;;  %305 = vmatprep.subr.bf16.mxu1 %v795_v0 }
  0x26   :  { %183 = vmatpush1.bf16.msra.mxu0 %v925_v13  ;;  %306 = vmatpush1.bf16.msra.mxu1 %v925_v13 }
  0x27   :  { %417 = vmatprep.subr.bf16.mxu0 %v795_v0  ;;  %540 = vmatprep.subr.bf16.mxu1 %v795_v0 }
  0x29   :  { %197 = vmatmul.mubr.bf16.vlgmr.msra.gmra.mrb[0].mxu0 %v751_v14  ;;  %320 = vmatmul.mubr.bf16.vlgmr.msra.gmra.mrb[0].mxu1 %v754_v15 }
  0x2a   :  { %418 = vmatpush1.bf16.msra.mxu0 %v836_v1  ;;  %541 = vmatpush1.bf16.msra.mxu1 %v836_v1 }
  0x2b   :  { %419 = vmatprep.subr.bf16.mxu0 %v795_v0  ;;  %542 = vmatprep.subr.bf16.mxu1 %v795_v0 }
  0x2c   :  { %687 = vmatprep.mubr.msk.bf16.mxu0 %vm147_vm0, %v757_v16  ;;  %699 = vmatprep.mubr.msk.bf16.mxu1 %vm147_vm0, %v759_v17 }
  0x2e   :  { %420 = vmatpush1.bf16.msra.mxu0 %v843_v2  ;;  %543 = vmatpush1.bf16.msra.mxu1 %v843_v2 }
  0x2f   :  { %421 = vmatprep.subr.bf16.mxu0 %v795_v0  ;;  %544 = vmatprep.subr.bf16.mxu1 %v795_v0 }
  0x31   :  { %205 = vmatmul.mubr.bf16.gmra.mrb[4].mxu0 %v761_v18  ;;  %328 = vmatmul.mubr.bf16.gmra.mrb[4].mxu1 %v762_v19 }
  0x32   :  { %422 = vmatpush1.bf16.msra.mxu0 %v852_v3  ;;  %545 = vmatpush1.bf16.msra.mxu1 %v852_v3 }
  0x33   :  { %423 = vmatprep.subr.bf16.mxu0 %v795_v0  ;;  %546 = vmatprep.subr.bf16.mxu1 %v795_v0 }
  0x34   :  { %688 = vmatprep.mubr.msk.bf16.mxu0 %vm147_vm0, %v763_v20  ;;  %700 = vmatprep.mubr.msk.bf16.mxu1 %vm147_vm0, %v765_v21 }
  0x36   :  { %424 = vmatpush1.bf16.msra.mxu0 %v861_v4  ;;  %547 = vmatpush1.bf16.msra.mxu1 %v861_v4 }
  0x37   :  { %425 = vmatprep.subr.bf16.mxu0 %v795_v0  ;;  %548 = vmatprep.subr.bf16.mxu1 %v795_v0 }
  0x39   :  { %213 = vmatmul.mubr.bf16.gmra.mrb[8].mxu0 %v767_v22  ;;  %336 = vmatmul.mubr.bf16.gmra.mrb[8].mxu1 %v768_v23 }
  0x3a   :  { %426 = vmatpush1.bf16.msra.mxu0 %v877_v7  ;;  %549 = vmatpush1.bf16.msra.mxu1 %v877_v7 }
  0x3b   :  { %427 = vmatprep.subr.bf16.mxu0 %v795_v0  ;;  %550 = vmatprep.subr.bf16.mxu1 %v795_v0 }
  0x3c   :  { %689 = vmatprep.mubr.msk.bf16.mxu0 %vm147_vm0, %v675_v26  ;;  %701 = vmatprep.mubr.msk.bf16.mxu1 %vm147_vm0, %v697_v27 }
  0x3e   :  { %428 = vmatpush1.bf16.msra.mxu0 %v887_v8  ;;  %551 = vmatpush1.bf16.msra.mxu1 %v887_v8 }
  0x3f   :  { %429 = vmatprep.subr.bf16.mxu0 %v795_v0  ;;  %552 = vmatprep.subr.bf16.mxu1 %v795_v0 }
  0x41   :  { %221 = vmatmul.mubr.bf16.gmra.mrb[12].mxu0 %v674_v28  ;;  %344 = vmatmul.mubr.bf16.gmra.mrb[12].mxu1 %v696_v29 }
  0x42   :  { %430 = vmatpush1.bf16.msra.mxu0 %v896_v9  ;;  %553 = vmatpush1.bf16.msra.mxu1 %v896_v9 }
  0x43   :  { %431 = vmatprep.subr.bf16.mxu0 %v795_v0  ;;  %554 = vmatprep.subr.bf16.mxu1 %v795_v0 }
  0x44   :  { %710 = vmatprep.mubr.msk.bf16.mxu0 %vm147_vm0, %v775_v30  ;;  %722 = vmatprep.mubr.msk.bf16.mxu1 %vm147_vm0, %v778_v31 }
  0x46   :  { %432 = vmatpush1.bf16.msra.mxu0 %v905_v10  ;;  %555 = vmatpush1.bf16.msra.mxu1 %v905_v10 }
  0x47   :  { %433 = vmatprep.subr.bf16.mxu0 %v795_v0  ;;  %556 = vmatprep.subr.bf16.mxu1 %v795_v0 }
  0x4a   :  { %434 = vmatpush1.bf16.msra.mxu0 %v914_v11  ;;  %557 = vmatpush1.bf16.msra.mxu1 %v914_v11 }
  0x4b   :  { %435 = vmatprep.subr.bf16.mxu0 %v795_v0  ;;  %558 = vmatprep.subr.bf16.mxu1 %v795_v0 }
  0x4e   :  { %436 = vmatpush1.bf16.msra.mxu0 %v925_v13  ;;  %559 = vmatpush1.bf16.msra.mxu1 %v925_v13 }
  0x51   :  { %450 = vmatmul.mubr.bf16.vlgmr.msra.gmra.mrb[16].mxu0 %v773_v32  ;;  %573 = vmatmul.mubr.bf16.vlgmr.msra.gmra.mrb[16].mxu1 %v776_v33 }
  0x52   :  { %711 = vmatprep.mubr.msk.bf16.mxu0 %vm147_vm0, %v779_v34  ;;  %723 = vmatprep.mubr.msk.bf16.mxu1 %vm147_vm0, %v781_v35 }
  0x59   :  { %458 = vmatmul.mubr.bf16.gmra.mrb[20].mxu0 %v783_v36  ;;  %581 = vmatmul.mubr.bf16.gmra.mrb[20].mxu1 %v784_v37 }
  0x5a   :  { %712 = vmatprep.mubr.msk.bf16.mxu0 %vm147_vm0, %v785_v38  ;;  %724 = vmatprep.mubr.msk.bf16.mxu1 %vm147_vm0, %v787_v39 }
  0x61   :  { %466 = vmatmul.mubr.bf16.gmra.mrb[24].mxu0 %v789_v42  ;;  %589 = vmatmul.mubr.bf16.gmra.mrb[24].mxu1 %v790_v43 }
  0x62   :  { %713 = vmatprep.mubr.msk.bf16.mxu0 %vm147_vm0, %v709_v44  ;;  %725 = vmatprep.mubr.msk.bf16.mxu1 %vm147_vm0, %v721_v45 }
  0x69   :  { %474 = vmatmul.mubr.bf16.gmra.mrb[28].mxu0 %v708_v46  ;;  %597 = vmatmul.mubr.bf16.gmra.mrb[28].mxu1 %v720_v47 }
  0xfc   :  { %v198_v49 = vpop.f32.mrb[0].mxu0  ;;  %v321_v50 = vpop.f32.mrb[0].mxu1 }
  0xfd   :  { %v199_v51 = vadd.f32 %v1064_v48, %v198_v49  ;;  %v322_v52 = vadd.f32 %v1064_v48, %v321_v50  ;;  %v200_v53 = vpop.f32.mrb[1].mxu0  ;;  %v323_v54 = vpop.f32.mrb[1].mxu1 }
  0xfe   :  { %v201_v55 = vpop.f32.mrb[2].mxu0  ;;  %v324_v56 = vpop.f32.mrb[2].mxu1 }
  0xff   :  { %v228_v57 = vmax.f32 %v199_v51, 0.0  ;;  %v351_v58 = vmax.f32 %v322_v52, 0.0  ;;  %v202_v59 = vadd.f32 %v1064_v48, %v201_v55  ;;  %v325_v60 = vadd.f32 %v1064_v48, %v324_v56  ;;  %v203_v61 = vpop.f32.mrb[3].mxu0  ;;  %v326_v62 = vpop.f32.mrb[3].mxu1 }
 0x101   :  { %v1070_v63 = vmax.f32 %v228_v57, %v351_v58  ;;  %v229_v0 = vmax.f32 %v202_v59, 0.0  ;;  %v352_v1 = vmax.f32 %v325_v60, 0.0 }
 0x103   :  { %v1072_v2 = vmax.f32 %v229_v0, %v352_v1 }
 0x104   :  { %v206_v3 = vpop.f32.mrb[4].mxu0  ;;  %v329_v4 = vpop.f32.mrb[4].mxu1 }
 0x105   :  { %v207_v5 = vadd.f32 %v1064_v48, %v206_v3  ;;  %v330_v6 = vadd.f32 %v1064_v48, %v329_v4  ;;  %v208_v7 = vpop.f32.mrb[5].mxu0  ;;  %v331_v8 = vpop.f32.mrb[5].mxu1 }
 0x106   :  { %v209_v9 = vpop.f32.mrb[6].mxu0  ;;  %v332_v10 = vpop.f32.mrb[6].mxu1 }
 0x107   :  { %v230_v11 = vmax.f32 %v207_v5, 0.0  ;;  %v353_v12 = vmax.f32 %v330_v6, 0.0  ;;  %v210_v13 = vadd.f32 %v1064_v48, %v209_v9  ;;  %v333_v14 = vadd.f32 %v1064_v48, %v332_v10  ;;  %v211_v15 = vpop.f32.mrb[7].mxu0  ;;  %v334_v16 = vpop.f32.mrb[7].mxu1 }
 0x109   :  { %v1078_v17 = vmax.f32 %v230_v11, %v353_v12  ;;  %v231_v18 = vmax.f32 %v210_v13, 0.0  ;;  %v354_v19 = vmax.f32 %v333_v14, 0.0 }
 0x10b   :  { %v1080_v20 = vmax.f32 %v231_v18, %v354_v19 }
 0x10c   :  { %v214_v21 = vpop.f32.mrb[8].mxu0  ;;  %v337_v22 = vpop.f32.mrb[8].mxu1 }
 0x10d   :  { %v215_v23 = vadd.f32 %v1064_v48, %v214_v21  ;;  %v338_v24 = vadd.f32 %v1064_v48, %v337_v22  ;;  %v216_v25 = vpop.f32.mrb[9].mxu0  ;;  %v339_v26 = vpop.f32.mrb[9].mxu1 }
 0x10e   :  { %v217_v27 = vpop.f32.mrb[10].mxu0  ;;  %v340_v28 = vpop.f32.mrb[10].mxu1 }
 0x10f   :  { %v232_v29 = vmax.f32 %v215_v23, 0.0  ;;  %v355_v30 = vmax.f32 %v338_v24, 0.0  ;;  %v218_v31 = vadd.f32 %v1064_v48, %v217_v27  ;;  %v341_v32 = vadd.f32 %v1064_v48, %v340_v28  ;;  %v219_v33 = vpop.f32.mrb[11].mxu0  ;;  %v342_v34 = vpop.f32.mrb[11].mxu1 }
 0x111   :  { %v1086_v35 = vmax.f32 %v232_v29, %v355_v30  ;;  %v233_v36 = vmax.f32 %v218_v31, 0.0  ;;  %v356_v37 = vmax.f32 %v341_v32, 0.0 }
 0x113   :  { %v1088_v38 = vmax.f32 %v233_v36, %v356_v37 }
 0x114   :  { %v222_v39 = vpop.f32.mrb[12].mxu0  ;;  %v345_v40 = vpop.f32.mrb[12].mxu1 }
 0x115   :  { %v223_v41 = vadd.f32 %v1064_v48, %v222_v39  ;;  %v346_v42 = vadd.f32 %v1064_v48, %v345_v40  ;;  %v224_v43 = vpop.f32.mrb[13].mxu0  ;;  %v347_v44 = vpop.f32.mrb[13].mxu1 }
 0x116   :  { %v225_v45 = vpop.f32.mrb[14].mxu0  ;;  %v348_v46 = vpop.f32.mrb[14].mxu1 }
 0x117   :  { %v234_v47 = vmax.f32 %v223_v41, 0.0  ;;  %v357_v49 = vmax.f32 %v346_v42, 0.0  ;;  %v226_v50 = vpop.f32.mrb[15].mxu0  ;;  %v349_v51 = vpop.f32.mrb[15].mxu1 }
 0x119   :  { %v1092_v52 = vmax.f32 %v234_v47, %v357_v49 }
 0x124   :  { %v451_v53 = vpop.f32.mrb[16].mxu0  ;;  %v574_v54 = vpop.f32.mrb[16].mxu1 }
 0x125   :  { %v452_v55 = vadd.f32 %v1064_v48, %v451_v53  ;;  %v575_v56 = vadd.f32 %v1064_v48, %v574_v54  ;;  %v453_v57 = vpop.f32.mrb[17].mxu0  ;;  %v576_v58 = vpop.f32.mrb[17].mxu1 }
 0x126   :  { %v454_v59 = vpop.f32.mrb[18].mxu0  ;;  %v577_v60 = vpop.f32.mrb[18].mxu1 }
 0x127   :  { %v481_v61 = vmax.f32 %v452_v55, 0.0  ;;  %v604_v62 = vmax.f32 %v575_v56, 0.0  ;;  %v455_v0 = vadd.f32 %v1064_v48, %v454_v59  ;;  %v578_v1 = vadd.f32 %v1064_v48, %v577_v60  ;;  %v456_v3 = vpop.f32.mrb[19].mxu0  ;;  %v579_v4 = vpop.f32.mrb[19].mxu1 }
 0x129   :  { %v611_v5 = vmax.f32 %v481_v61, %v604_v62  ;;  %v482_v6 = vmax.f32 %v455_v0, 0.0  ;;  %v605_v7 = vmax.f32 %v578_v1, 0.0 }
 0x12b   :  { %v618_v8 = vmax.f32 %v1070_v63, %v611_v5  ;;  %v612_v9 = vmax.f32 %v482_v6, %v605_v7 }
 0x12c   :  { %v459_v10 = vpop.f32.mrb[20].mxu0  ;;  %v582_v11 = vpop.f32.mrb[20].mxu1 }
 0x12d   :  { %v733_v12 = vpack.c.bf16 %v618_v8, %v618_v8  ;;  %v619_v13 = vmax.f32 %v1072_v2, %v612_v9  ;;  %v460_v14 = vadd.f32 %v1064_v48, %v459_v10  ;;  %v583_v15 = vadd.f32 %v1064_v48, %v582_v11  ;;  %v461_v16 = vpop.f32.mrb[21].mxu0  ;;  %v584_v18 = vpop.f32.mrb[21].mxu1 }
 0x12e   :  { %v462_v19 = vpop.f32.mrb[22].mxu0  ;;  %v585_v21 = vpop.f32.mrb[22].mxu1 }
 0x12f   :  { %655 = vst.msk [vmem:[%s1148_s6] sm:$0xf] %vm654_vm2, %v733_v12  ;;  %v734_v63 = vpack.c.bf16 %v619_v13, %v619_v13  ;;  %v483_v22 = vmax.f32 %v460_v14, 0.0  ;;  %v606_v23 = vmax.f32 %v583_v15, 0.0  ;;  %v463_v24 = vadd.f32 %v1064_v48, %v462_v19  ;;  %v464_v25 = vpop.f32.mrb[23].mxu0  ;;  %v587_v2 = vpop.f32.mrb[23].mxu1 }
 0x130   :  { %v586_v26 = vadd.f32 %v1064_v48, %v585_v21 }
 0x131   :  { %656 = vst.msk [vmem:[%s1148_s6 + $0x4] sm:$0xf] %vm654_vm2, %v734_v63  ;;  %v613_v27 = vmax.f32 %v483_v22, %v606_v23  ;;  %v484_v28 = vmax.f32 %v463_v24, 0.0 }
 0x132   :  { %v607_v29 = vmax.f32 %v586_v26, 0.0 }
 0x133   :  { %v620_v30 = vmax.f32 %v1078_v17, %v613_v27 }
 0x134   :  { %v614_v31 = vmax.f32 %v484_v28, %v607_v29  ;;  %v467_v32 = vpop.f32.mrb[24].mxu0  ;;  %v590_v33 = vpop.f32.mrb[24].mxu1 }
 0x135   :  { %v735_v34 = vpack.c.bf16 %v620_v30, %v620_v30  ;;  %v468_v36 = vadd.f32 %v1064_v48, %v467_v32  ;;  %v591_v37 = vadd.f32 %v1064_v48, %v590_v33  ;;  %v469_v39 = vpop.f32.mrb[25].mxu0  ;;  %v592_v40 = vpop.f32.mrb[25].mxu1 }
 0x136   :  { %v621_v41 = vmax.f32 %v1080_v20, %v614_v31  ;;  %v470_v42 = vpop.f32.mrb[26].mxu0  ;;  %v593_v43 = vpop.f32.mrb[26].mxu1 }
 0x137   :  { %657 = vst.msk [vmem:[%s1148_s6 + $0x8] sm:$0xf] %vm654_vm2, %v735_v34  ;;  %v485_v17 = vmax.f32 %v468_v36, 0.0  ;;  %v608_v44 = vmax.f32 %v591_v37, 0.0  ;;  %v471_v45 = vadd.f32 %v1064_v48, %v470_v42  ;;  %v594_v46 = vadd.f32 %v1064_v48, %v593_v43  ;;  %v472_v47 = vpop.f32.mrb[27].mxu0  ;;  %v595_v49 = vpop.f32.mrb[27].mxu1 }
 0x138   :  { %v736_v50 = vpack.c.bf16 %v621_v41, %v621_v41 }
 0x139   :  { %v615_v51 = vmax.f32 %v485_v17, %v608_v44  ;;  %v486_v53 = vmax.f32 %v471_v45, 0.0  ;;  %v609_v54 = vmax.f32 %v594_v46, 0.0 }
 0x13a   :  { %658 = vst.msk [vmem:[%s1148_s6 + $0xc] sm:$0xf] %vm654_vm2, %v736_v50 }
 0x13b   :  { %v622_v20 = vmax.f32 %v1086_v35, %v615_v51  ;;  %v616_v55 = vmax.f32 %v486_v53, %v609_v54 }
 0x13c   :  { %v475_v56 = vpop.f32.mrb[28].mxu0  ;;  %v598_v57 = vpop.f32.mrb[28].mxu1 }
 0x13d   :  { %v737_v58 = vpack.c.bf16 %v622_v20, %v622_v20  ;;  %v623_v59 = vmax.f32 %v1088_v38, %v616_v55  ;;  %v476_v60 = vadd.f32 %v1064_v48, %v475_v56  ;;  %v599_v61 = vadd.f32 %v1064_v48, %v598_v57  ;;  %v477_v62 = vpop.f32.mrb[29].mxu0  ;;  %v600_v0 = vpop.f32.mrb[29].mxu1 }
 0x13e   :  { %v478_v1 = vpop.f32.mrb[30].mxu0  ;;  %v601_v3 = vpop.f32.mrb[30].mxu1 }
 0x13f   :  { %659 = vst.msk [vmem:[%s1148_s6 + $0x10] sm:$0xf] %vm654_vm2, %v737_v58  ;;  %v738_v35 = vpack.c.bf16 %v623_v59, %v623_v59  ;;  %v487_v4 = vmax.f32 %v476_v60, 0.0  ;;  %v610_v5 = vmax.f32 %v599_v61, 0.0  ;;  %v479_v6 = vpop.f32.mrb[31].mxu0  ;;  %v602_v7 = vpop.f32.mrb[31].mxu1 }
 0x141   :  { %660 = vst.msk [vmem:[%s1148_s6 + $0x14] sm:$0xf] %vm654_vm2, %v738_v35  ;;  %v617_v48 = vmax.f32 %v487_v4, %v610_v5 }
 0x143   :  { %v624_v38 = vmax.f32 %v1092_v52, %v617_v48 }
 0x145   :  { %v739_v8 = vpack.c.bf16 %v624_v38, %v624_v38 }
 0x147   :  { %662 = vst.msk [vmem:[%s1148_s6 + $0x18] sm:$0x1] %vm661_vm3, %v739_v8 }

// kernel: forward.5
= control target key start
LH: loop header
LB: loop body
LE: loop exit
PB: predicated region body
PF: predicated region fallthrough
CT: control target
= control target key end

     0   :  { %v785_v1 = vmov 0   ;;  %v98_v20 = vlaneseq  ;;  %v786_v25 = vmov 1966171168   ;;  %vm264_vm0 = vcmask 130048   ;;  %s999_s0 = inlined_call_operand.vmem [shape: bf16[2,400], index: 0, kind: input, shape index: {}]   ;;  %s1000_s1 = inlined_call_operand.vmem [shape: bf16[400,120], index: 1, kind: input, shape index: {}]   ;;  %s1001_s2 = inlined_call_operand.vmem [shape: f32[1,120], index: 2, kind: input, shape index: {}]   ;;  %s1002_s3 = inlined_call_operand.vmem [shape: bf16[120,84], index: 3, kind: input, shape index: {}]   ;;  %s1003_s4 = inlined_call_operand.vmem [shape: f32[1,84], index: 4, kind: input, shape index: {}]   ;;  %s1004_s5 = inlined_call_operand.vmem [shape: bf16[84,4], index: 5, kind: input, shape index: {}]   ;;  %s1005_s6 = inlined_call_operand.vmem [shape: f32[1,4], index: 6, kind: input, shape index: {}]   ;;  %s1006_s7 = inlined_call_operand.hbm [shape: f32[2,4], index: 7, kind: output, shape index: {}]  }
   0x1   :  { %v718_v0 = vld [vmem:[%s1000_s1 + $0x40] sm:$0xff]   ;;  %308 = vmatprep.subr.bf16.mxu1 %v785_v1  ;;  %v721_v4 = vld [vmem:[%s1000_s1 + $0x48] sm:$0xff]   ;;  %v724_v7 = vld [vmem:[%s1000_s1 + $0x50] sm:$0xff]   ;;  %v96_v26 = vunpack.c.l.s4 %v786_v25  ;;  %v787_v38 = vmov 0.0  }
   0x2   :  { %v719_v2 = vld [vmem:[%s1000_s1 + $0x80] sm:$0xff]   ;;  %639 = vmatprep.subr.bf16.mxu0 %v718_v0  ;;  %v722_v5 = vld [vmem:[%s1000_s1 + $0x88] sm:$0xff]   ;;  %v725_v8 = vld [vmem:[%s1000_s1 + $0x90] sm:$0xff]   ;;  %v99_v27 = vshrl.u32 %v98_v20, 7 }
   0x3   :  { %v720_v3 = vld [vmem:[%s1000_s1] sm:$0xff]   ;;  %309 = vmatpush1.bf16.msra.mxu1 %v719_v2  ;;  %v723_v6 = vld [vmem:[%s1000_s1 + $0x8] sm:$0xff]   ;;  %v726_v9 = vld [vmem:[%s1000_s1 + $0x10] sm:$0xff]   ;;  %v97_v30 = vunpack.c.0.s8 %v96_v26 }
   0x4   :  { %640 = vmatpush3.bf16.msra.mxu0 %v720_v3  ;;  %310 = vmatprep.subr.bf16.mxu1 %v785_v1  ;;  %v727_v10 = vld [vmem:[%s1000_s1 + $0x58] sm:$0xff]   ;;  %v730_v13 = vld [vmem:[%s1000_s1 + $0x60] sm:$0xff]   ;;  %v733_v16 = vld [vmem:[%s1000_s1 + $0x68] sm:$0xff]  }
   0x5   :  { %641 = vmatprep.subr.bf16.mxu0 %v721_v4  ;;  %v728_v11 = vld [vmem:[%s1000_s1 + $0x98] sm:$0xff]   ;;  %v731_v14 = vld [vmem:[%s1000_s1 + $0xa0] sm:$0xff]   ;;  %v734_v17 = vld [vmem:[%s1000_s1 + $0xa8] sm:$0xff]   ;;  %v100_v32 = vsub.s32 %v97_v30, %v99_v27 }
   0x6   :  { %v729_v12 = vld [vmem:[%s1000_s1 + $0x18] sm:$0xff]   ;;  %v732_v15 = vld [vmem:[%s1000_s1 + $0x20] sm:$0xff]   ;;  %v735_v18 = vld [vmem:[%s1000_s1 + $0x28] sm:$0xff]  }
   0x7   :  { %311 = vmatpush1.bf16.msra.mxu1 %v722_v5  ;;  %v736_v19 = vld [vmem:[%s1000_s1 + $0x70] sm:$0xff]   ;;  %v594_v23 = vld.sshfl [vmem:[%s999_s0] sm:$0x33 pattern:$0x75316420]  ;;  %v739_v24 = vld [vmem:[%s1000_s1 + $0x78] sm:$0xff]  }
   0x8   :  { %642 = vmatpush3.bf16.msra.mxu0 %v723_v6  ;;  %312 = vmatprep.subr.bf16.mxu1 %v785_v1  ;;  %v737_v21 = vld [vmem:[%s1000_s1 + $0xb0] sm:$0xff]   ;;  %v740_v28 = vld [vmem:[%s1000_s1 + $0xb8] sm:$0xff]   ;;  %v94_v29 = vcombine.high %v594_v23, %v594_v23  ;;  %v742_v33 = vld [vmem:[%s1000_s1 + $0xc0] sm:$0xff]   ;;  %v101_v36 = vrot.slane %v594_v23, %v100_v32 }
   0x9   :  { %643 = vmatprep.subr.bf16.mxu0 %v724_v7  ;;  %v738_v22 = vld [vmem:[%s1000_s1 + $0x30] sm:$0xff]   ;;  %v741_v31 = vld [vmem:[%s1000_s1 + $0x38] sm:$0xff]   ;;  %v743_v34 = vld [vmem:[%s1002_s3] sm:$0xff]  }
   0xa   :  { %v108_v35 = vrot.slane %v94_v29, %v100_v32  ;;  %v109_v39 = vcombine.high %v101_v36, %v101_v36  ;;  %v744_v40 = vld [vmem:[%s1002_s3 + $0x8] sm:$0xff]  }
   0xb   :  { %313 = vmatpush1.bf16.msra.mxu1 %v725_v8 }
   0xc   :  { %644 = vmatpush3.bf16.msra.mxu0 %v726_v9  ;;  %314 = vmatprep.subr.bf16.mxu1 %v785_v1  ;;  %v110_v37 = vcombine.high %v108_v35, %v108_v35 }
   0xd   :  { %645 = vmatprep.subr.bf16.mxu0 %v727_v10  ;;  %300 = vmatprep.mubr.bf16.mxu0 %v108_v35 }
   0xe   :  { %620 = vmatprep.mubr.msk.bf16.mxu1 %vm264_vm0, %v110_v37 }
   0xf   :  { %315 = vmatpush1.bf16.msra.mxu1 %v728_v11 }
  0x10   :  { %646 = vmatpush3.bf16.msra.mxu0 %v729_v12  ;;  %316 = vmatprep.subr.bf16.mxu1 %v785_v1 }
  0x11   :  { %647 = vmatprep.subr.bf16.mxu0 %v730_v13 }
  0x13   :  { %317 = vmatpush1.bf16.msra.mxu1 %v731_v14 }
  0x14   :  { %648 = vmatpush3.bf16.msra.mxu0 %v732_v15  ;;  %318 = vmatprep.subr.bf16.mxu1 %v785_v1 }
  0x15   :  { %649 = vmatprep.subr.bf16.mxu0 %v733_v16 }
  0x17   :  { %319 = vmatpush1.bf16.msra.mxu1 %v734_v17 }
  0x18   :  { %650 = vmatpush3.bf16.msra.mxu0 %v735_v18  ;;  %320 = vmatprep.subr.bf16.mxu1 %v785_v1 }
  0x19   :  { %651 = vmatprep.subr.bf16.mxu0 %v736_v19 }
  0x1b   :  { %321 = vmatpush1.bf16.msra.mxu1 %v737_v21 }
  0x1c   :  { %652 = vmatpush3.bf16.msra.mxu0 %v738_v22  ;;  %322 = vmatprep.subr.bf16.mxu1 %v785_v1 }
  0x1d   :  { %653 = vmatprep.subr.bf16.mxu0 %v739_v24 }
  0x1f   :  { %323 = vmatpush1.bf16.msra.mxu1 %v740_v28 }
  0x20   :  { %654 = vmatpush3.bf16.msra.mxu0 %v741_v31  ;;  %324 = vmatprep.subr.bf16.mxu1 %v785_v1 }
  0x21   :  { %677 = vmatprep.subr.bf16.mxu0 %v787_v38 }
  0x23   :  { %301 = vmatmul.mubr.bf16.vlgmr.msra.gmra.mrb[0].mxu0 %v101_v36  ;;  %325 = vmatpush1.bf16.msra.mxu1 %v742_v33 }
  0x24   :  { %678 = vmatpush3.bf16.msra.mxu0 %v743_v34 }
  0x25   :  { %12 = vsyncpa [#allocation3], 0  ;;  %679 = vmatprep.subr.bf16.mxu0 %v787_v38  ;;  %697 = vmatprep.subr.bf16.mxu1 %v787_v38  ;;  %v745_v41 = vld [vmem:[%s1002_s3 + $0x10] sm:$0xff]   ;;  %v746_v42 = vld [vmem:[%s1002_s3 + $0x18] sm:$0xff]   ;;  %vm421_vm1 = vcmask 1043456   ;;  %vm788_vm2 = vmmov 0  }
  0x26   :  { %341 = vmatmul.mubr.bf16.vlgmr.msra.gmra.mrb[0].mxu1 %v109_v39  ;;  %v747_v43 = vld [vmem:[%s1002_s3 + $0x20] sm:$0xff]   ;;  %v748_v44 = vld [vmem:[%s1002_s3 + $0x28] sm:$0xff]   ;;  %v749_v45 = vld [vmem:[%s1002_s3 + $0x30] sm:$0xff]   ;;  %693 = vmatprep.mubr.msk.bf16.mxu0 %vm788_vm2, %v787_v38  ;;  %vm417_vm3 = vcmask 982016   ;;  %vm522_vm4 = vcmask 1041408   ;;  %vm518_vm5 = vcmask 687104  }
  0x27   :  { %v750_v46 = vld [vmem:[%s1002_s3 + $0x38] ss:$0 sps:$4 sm:$0xff]   ;;  %709 = vmatprep.mubr.msk.bf16.mxu1 %vm788_vm2, %v787_v38  ;;  %v751_v48 = vld [vmem:[%s1004_s5] sm:$0xff]   ;;  %v752_v49 = vld [vmem:[%s1004_s5 + $0x8] sm:$0xff]   ;;  %vm566_vm6 = vcmask 25600  }
  0x28   :  { %680 = vmatpush3.bf16.msra.mxu0 %v744_v40  ;;  %v423_v47 = vsel %vm421_vm1, %v750_v46, 0  ;;  %698 = vmatpush3.bf16.msra.mxu1 %v751_v48  ;;  %v753_v50 = vld [vmem:[%s1004_s5 + $0x10] sm:$0xff]   ;;  %v754_v51 = vld [vmem:[%s1004_s5 + $0x18] sm:$0xff]   ;;  %v593_v54 = vld [vmem:[%s1001_s2] ss:$0 sm:$0xff] }
  0x29   :  { %681 = vmatprep.subr.bf16.mxu0 %v787_v38  ;;  %699 = vmatprep.subr.bf16.mxu1 %v787_v38  ;;  %v755_v2 = vld [vmem:[%s1004_s5 + $0x20] sm:$0xff]   ;;  %v756_v3 = vld [vmem:[%s1004_s5 + $0x28] ss:$0 sps:$4 sm:$0x33]  }
  0x2a   :  { %v524_v4 = vsel %vm522_vm4, %v756_v3, 0  ;;  %v621_v5 = vld [vmem:[%s1003_s4] ss:$0 sm:$0xff]  ;;  %s789_s4 = smov [#allocation2]  }
  0x2b   :  { %v631_v13 = vld [vmem:[%s1005_s6] ss:$0 sm:$0xff]  ;;  %s585_s5 = sshll.u32 %s789_s4, 4  ;;  %s586_s5 = int_to_ptr.vmem [resolvable:$true] %s585_s5 }
  0x2c   :  { %682 = vmatpush3.bf16.msra.mxu0 %v745_v41  ;;  %700 = vmatpush3.bf16.msra.mxu1 %v752_v49  ;;  %s761_s6 = scalar_lea.vmem %s586_s5, 32  ;;  %p766_p1 = scmp.lt.s32.totalorder %s586_s5, %s586_s5 }
  0x2d   :  { %683 = vmatprep.subr.bf16.mxu0 %v787_v38  ;;  %701 = vmatprep.subr.bf16.mxu1 %v787_v38  ;;  %p762_p0 = scmp.ne.s32.totalorder %s586_s5, %s761_s6  ;;  %p767_p2 = scmp.lt.s32.totalorder %s761_s6, %s761_s6 }
  0x2f   :  { %p768_p3 = por %p767_p2, %p766_p1 }
  0x30   :  { %684 = vmatpush3.bf16.msra.mxu0 %v746_v42  ;;  %702 = vmatpush3.bf16.msra.mxu1 %v753_v50 }
  0x31   :  { %685 = vmatprep.subr.bf16.mxu0 %v787_v38  ;;  %703 = vmatprep.subr.bf16.mxu1 %v787_v38  ;;  %p769_p4 = pnand %p768_p3, %p762_p0 }
  0x34   :  { %686 = vmatpush3.bf16.msra.mxu0 %v747_v43  ;;  %704 = vmatpush3.bf16.msra.mxu1 %v754_v51 }
  0x35   :  { %687 = vmatprep.subr.bf16.mxu0 %v787_v38  ;;  %705 = vmatprep.subr.bf16.mxu1 %v787_v38 }
  0x38   :  { %688 = vmatpush3.bf16.msra.mxu0 %v748_v44  ;;  %706 = vmatpush3.bf16.msra.mxu1 %v755_v2 }
  0x39   :  { %689 = vmatprep.subr.bf16.mxu0 %v787_v38  ;;  %707 = vmatprep.subr.bf16.mxu1 %v787_v38 }
  0x3c   :  { %690 = vmatpush3.bf16.msra.mxu0 %v749_v45  ;;  %708 = vmatpush3.bf16.msra.mxu1 %v524_v4 }
  0x3d   :  { %691 = vmatprep.subr.bf16.mxu0 %v787_v38 }
  0x40   :  { %692 = vmatpush3.bf16.msra.mxu0 %v423_v47 }
  0xf6   :  { %v655_v52 = vpop.f32.mrb[0].mxu0 }
  0xf7   :  { %v656_v53 = vpop.f32.mrb[1].mxu0 }
  0xf8   :  { %v657_v55 = vadd.f32 %v656_v53, %v655_v52  ;;  %v658_v56 = vpop.f32.mrb[2].mxu0 }
  0xf9   :  { %v659_v57 = vpop.f32.mrb[3].mxu0  ;;  %v342_v58 = vpop.f32.mrb[0].mxu1 }
  0xfa   :  { %v303_v59 = vadd.f32 %v657_v55, %v593_v54  ;;  %v344_v60 = vpop.f32.mrb[1].mxu1 }
  0xfb   :  { %v345_v61 = vpop.f32.mrb[2].mxu1 }
  0xfc   :  { %v343_v62 = vadd.f32 %v342_v58, %v303_v59  ;;  %v346_v63 = vpop.f32.mrb[3].mxu1 }
  0xfe   :  { %v348_v0 = vmax.f32 %v343_v62, 0.0 }
 0x100   :  { %v349_v1 = vpack.c.bf16 %v348_v0, %v348_v0 }
 0x102   :  { %694 = vmatmul.mubr.msk.bf16.vlgmr.msra.gmra.mrb[4].mxu0 %vm417_vm3, %v349_v1 }
 0x1d5   :  { %v459_v6 = vpop.f32.mrb[4].mxu0 }
 0x1d6   :  { %v460_v7 = vadd.f32 %v621_v5, %v459_v6  ;;  %v695_v8 = vpop.f32.mrb[5].mxu0 }
 0x1d7   :  { %v462_v9 = vpop.f32.mrb[6].mxu0 }
 0x1d8   :  { %v465_v10 = vmax.f32 %v460_v7, 0.0  ;;  %v696_v11 = vpop.f32.mrb[7].mxu0 }
 0x1da   :  { %v466_v12 = vpack.c.bf16 %v465_v10, %v465_v10 }
 0x1dc   :  { %710 = vmatmul.mubr.msk.bf16.vlgmr.msra.gmra.mrb[4].mxu1 %vm518_vm5, %v466_v12 }
 0x2af   :  { %v560_v14 = vpop.f32.mrb[4].mxu1 }
 0x2b0   :  { %v561_v15 = vadd.f32 %v631_v13, %v560_v14  ;;  %v711_v16 = vpop.f32.mrb[5].mxu1 }
 0x2b1   :  { %v563_v17 = vpop.f32.mrb[6].mxu1 }
 0x2b2   :  { %v712_v18 = vpop.f32.mrb[7].mxu1  ;;  %v567_v19 = vsel %vm566_vm6, %v561_v15, -inf }
 0x2b3   :  { %568 = vmax.xlane.f32.xlu0 %v567_v19 }
 0x340   :  { %v569_v20 = vpop.xlane.xlu0 %568 }
 0x341   :  { %v570_v21 = vsub.f32 %v561_v15, %v569_v20 }
 0x343   :  { %v571_v22 = vmul.f32 1.442695, %v570_v21 }
 0x345   :  { %757 = vpow2.f32 %v571_v22 }
 0x34f   :  { %v758_v23 = vpop.eup %757 }
 0x350   :  { %v573_v24 = vsel %vm566_vm6, %v758_v23, 0.0 }
 0x351   :  { %574 = vadd.xlane.f32.xlu0 %v573_v24 }
 0x3de   :  { %v575_v25 = vpop.xlane.xlu0 %574 }
 0x3df   :  { %759 = vrcp.f32 %v575_v25 }
 0x3e9   :  { %v760_v26 = vpop.eup %759 }
 0x3ea   :  { %v577_v27 = vmul.f32 %v760_v26, %v758_v23 }
 0x3ec   :  { %578 = vst.msk [vmem:[#allocation2] sm:$0x3] %vm566_vm6, %v577_v27 }
 0x3ed   :  { %772 = shalt.err (!%p769_p4)
}
 0x3ee   :  { %s773_s14 = scalar_lea.hbm %s1006_s7, 32 }
 0x3ef   :  { %p774_p5 = scmp.ne.s32.totalorder %s1006_s7, %s773_s14  ;;  %p777_p6 = scmp.lt.u32.totalorder %s773_s14, %s1006_s7 }
 0x3f1   :  { %p779_p7 = pnand %p777_p6, %p774_p5 }
 0x3f3   :  { %782 = shalt.err (!%p779_p7)
}
 0x3f4   :  { %588 = dma.vmem_to_hbm [thread:$0]  %s586_s5, 32, %s1006_s7, [#allocation3]  }
 0x3f5   :  { %783 = dma.done.wait [#allocation3], 32  }
 0x3f6   :  { %784 = vsyncadd [#allocation3], 4294967264 }
 0x3f7   :  { %592 = vsyncpa [#allocation3], 1 }

</bundles_post_ra>
